<compile_context>
chip_gen: v7x
topology: tpu7x:2x2x1
jax: 0.10.0
libtpu: 0.0.40
codegen_flags: <defaults>
</compile_context>

<pallas_src>
import functools

import jax
import jax.numpy as jnp
import numpy as np
from jax.experimental import pallas as pl
from jax.experimental.pallas import tpu as pltpu

GRID_SIZE = 5
SPLINE_ORDER = 3
GRID_RANGE = (-1.0, 1.0)


# ---------------------------------------------------------------------------
# Fused KAN forward kernel (feature-major, batch on lanes).
# refs = (w_fused_0, ..., w_fused_{L-1}, out_ref)
#   per layer:  h_next = W_fused @ [ flatten(B_spline(h)) ; SiLU(h) ]
# ---------------------------------------------------------------------------
def _kan_forward_kernel(x_ref, *refs, spline_order, grid_size, grid_spacing,
                        grid_min):
    num_layers = len(refs) - 1
    out_ref = refs[-1]

    n_knots = grid_size + 2 * spline_order + 1          # 12 for (5, 3)

    h = x_ref[...]                                       # [IN0, TB] f32
    for l in range(num_layers):
        w_ref = refs[l]                                  # [OUT, IN*(n_coef+1)]
        in_f, tb = h.shape

        # --- baked uniform knots (no grid input / DMA) ---
        j = jax.lax.broadcasted_iota(jnp.int32, (1, n_knots, 1), 1)
        g = (j.astype(jnp.float32) - float(spline_order)) * grid_spacing + grid_min

        # d_j = x - g_j, computed once; everything below derives from d.
        d = h[:, None, :] - g                            # [IN, n_knots, TB]

        # --- B-spline bases (Cox-de Boor, unrolled; uniform-grid reciprocals) ---
        bases = ((d[:, :-1, :] >= 0.0) & (d[:, 1:, :] < 0.0)).astype(jnp.float32)
        for k in range(1, spline_order + 1):
            inv_den = 1.0 / (k * grid_spacing)
            bases = (d[:, :-(k + 1), :] * bases[:, :-1, :]
                     - d[:, (k + 1):, :] * bases[:, 1:, :]) * inv_den
        # bases: [IN, n_coef, TB]; n_coef == 8 == sublane tile -> free reshape,
        # ordering stays in-major / coef-fastest (matches torch view(out, -1)).
        n_coef = bases.shape[1]
        bases_flat = bases.reshape(in_f * n_coef, tb)    # [IN*n_coef, TB]

        # --- base branch (exact SiLU; exp runs on the EUP slot) ---
        silu_h = h * (1.0 / (1.0 + jnp.exp(-h)))         # [IN, TB]

        # --- single fused matmul per layer ---
        # bases first so the concat boundary (IN*n_coef rows) is 8-aligned.
        act = jnp.concatenate([bases_flat, silu_h], axis=0)   # [IN*(n_coef+1), TB]
        h = jnp.dot(w_ref[...], act, preferred_element_type=jnp.float32)  # [OUT, TB]

    out_ref[...] = h                                     # lane-dense store


def kan_forward(x, params, *, block_batch=128):
    """Fused KAN forward.

    x: [batch, in0].  params: list of fused weights [out, in*(n_coef+1)].
    block_batch: batch tile (lanes).  Keep >=2 grid steps for v7x megacore;
    on single-TC parts (v5e/v6e) a single fat tile (block_batch=batch) is fine.
    """
    batch, in0 = x.shape
    out_f = params[-1].shape[0]
    tb = min(block_batch, batch)
    assert batch % tb == 0, "demo keeps batch a multiple of the batch tile"

    grid_spacing = (GRID_RANGE[1] - GRID_RANGE[0]) / GRID_SIZE

    x_t = x.T                                            # [in0, batch], batch on lanes

    in_specs = [pl.BlockSpec((in0, tb), lambda b: (0, b))]
    flat_inputs = [x_t]
    for w in params:
        # Weights are tiny: pass as full-array (replicated) blocks.
        in_specs.append(pl.BlockSpec(w.shape, lambda b: (0, 0)))
        flat_inputs.append(w)

    kernel = functools.partial(_kan_forward_kernel,
                               spline_order=SPLINE_ORDER,
                               grid_size=GRID_SIZE,
                               grid_spacing=grid_spacing,
                               grid_min=GRID_RANGE[0])

    out_t = pl.pallas_call(
        kernel,
        out_shape=jax.ShapeDtypeStruct((out_f, batch), jnp.float32),
        grid_spec=pltpu.PrefetchScalarGridSpec(
            num_scalar_prefetch=0,
            grid=(batch // tb,),
            in_specs=in_specs,
            out_specs=pl.BlockSpec((out_f, tb), lambda b: (0, b)),
        ),
        compiler_params=pltpu.CompilerParams(
            dimension_semantics=("parallel",)),          # shard batch tiles on v7x
    )(*flat_inputs)
    return out_t.T                                       # [batch, out_f]


# ---------------------------------------------------------------------------
# Deterministic parameter construction (synthetic init; shapes match KANLinear).
# TODO(synk): torch init uses kaiming_uniform + lstsq-based curve2coeff; here we
# use deterministic uniform draws with the same parameter shapes.
# ---------------------------------------------------------------------------
def init_kan_params(key, layers_hidden,
                    grid_size=GRID_SIZE, spline_order=SPLINE_ORDER):
    n_coef = grid_size + spline_order
    params = []
    for in_f, out_f in zip(layers_hidden[:-1], layers_hidden[1:]):
        key, k1, k2, k3 = jax.random.split(key, 4)
        bound = 1.0 / float(np.sqrt(in_f))
        base_w = jax.random.uniform(k1, (out_f, in_f), jnp.float32, -bound, bound)
        spline_w = jax.random.uniform(k2, (out_f, in_f, n_coef), jnp.float32, -0.1, 0.1)
        spline_scaler = jax.random.uniform(k3, (out_f, in_f), jnp.float32, -bound, bound)
        scaled = spline_w * spline_scaler[:, :, None]          # [out, in, n_coef]
        # Flatten exactly like torch's scaled_spline_weight.view(out, -1), then
        # pack [spline | base] along K so the kernel's [bases ; silu] concat
        # multiplies the right columns.
        sw_flat = scaled.reshape(out_f, in_f * n_coef)         # [out, in*n_coef]
        w_fused = jnp.concatenate([sw_flat, base_w], axis=1)   # [out, in*(n_coef+1)]
        params.append(w_fused)
    return params


# ---------------------------------------------------------------------------
# Pure-JAX reference (mirrors the PyTorch forward) for correctness check.
# ---------------------------------------------------------------------------
def _ref_b_splines(x, grid, spline_order):
    xg = x[:, :, None]
    g = grid[None, :, :]
    bases = ((xg >= g[:, :, :-1]) & (xg < g[:, :, 1:])).astype(jnp.float32)
    for k in range(1, spline_order + 1):
        bases = ((xg - g[:, :, :-(k + 1)]) /
                 (g[:, :, k:-1] - g[:, :, :-(k + 1)]) * bases[:, :, :-1]
                 + (g[:, :, k + 1:] - xg) /
                 (g[:, :, k + 1:] - g[:, :, 1:-k]) * bases[:, :, 1:])
    return bases


def _ref_kan(x, params):
    h_sp = (GRID_RANGE[1] - GRID_RANGE[0]) / GRID_SIZE
    grid_1d = (jnp.arange(-SPLINE_ORDER, GRID_SIZE + SPLINE_ORDER + 1,
                          dtype=jnp.float32) * h_sp + GRID_RANGE[0])
    n_coef = GRID_SIZE + SPLINE_ORDER
    h = x
    for w_fused in params:
        in_f = h.shape[1]
        sw_flat = w_fused[:, :in_f * n_coef]                   # [out, in*n_coef]
        base_w = w_fused[:, in_f * n_coef:]                    # [out, in]
        grid = jnp.broadcast_to(grid_1d, (in_f, grid_1d.shape[0]))
        bases = _ref_b_splines(h, grid, SPLINE_ORDER)
        base = jax.nn.silu(h) @ base_w.T
        spline = bases.reshape(h.shape[0], -1) @ sw_flat.T
        h = base + spline
    return h


if __name__ == "__main__":
    layers_hidden = [2, 32, 2]     # KAN([2, 32, 2])
    batch = 256

    key = jax.random.PRNGKey(0)
    kx, kp = jax.random.split(key)
    x = jax.random.normal(kx, (batch, layers_hidden[0]), jnp.float32)
    params = init_kan_params(kp, layers_hidden)

    out = kan_forward(x, params, block_batch=128)
    out = jax.block_until_ready(out)
    assert out.shape == (batch, layers_hidden[-1])

    ref = _ref_kan(x, params)
    np.testing.assert_allclose(np.asarray(out), np.asarray(ref),
                               rtol=1e-4, atol=1e-5)
    print("KERNEL_OK")
</pallas_src>

<mosaic_0001>
module attributes {stable_mosaic.version = 11 : i64} {
  func.func @_kan_forward_kernel(%arg0: i32, %arg1: memref<2x128xf32, #tpu.memory_space<vmem>>, %arg2: memref<32x18xf32, #tpu.memory_space<vmem>>, %arg3: memref<2x288xf32, #tpu.memory_space<vmem>>, %arg4: memref<2x128xf32, #tpu.memory_space<vmem>>) attributes {dimension_semantics = [#tpu.dimension_semantics<parallel>], iteration_bounds = array<i64: 2>, scalar_prefetch = 0 : i64, scratch_operands = 0 : i64, tpu.core_type = #tpu.core_type<tc>, window_params = [{transform_indices = @transform_0, window_bounds = array<i64: 2, 128>}, {pipeline_mode = #tpu.pipeline_mode<synchronous>, transform_indices = @transform_1, window_bounds = array<i64: 32, 18>}, {pipeline_mode = #tpu.pipeline_mode<synchronous>, transform_indices = @transform_2, window_bounds = array<i64: 2, 288>}, {transform_indices = @transform_3, window_bounds = array<i64: 2, 128>}]} {
    %c0 = arith.constant 0 : index
    %c0_0 = arith.constant 0 : index
    %0 = vector.load %arg1[%c0, %c0_0] : memref<2x128xf32, #tpu.memory_space<vmem>>, vector<2x128xf32>
    %1 = tpu.iota {dimensions = array<i32: 1>} : vector<1x12x1xi32>
    %2 = arith.sitofp %1 : vector<1x12x1xi32> to vector<1x12x1xf32>
    %cst = arith.constant 3.000000e+00 : f32
    %3 = vector.broadcast %cst : f32 to vector<1x12x1xf32>
    %4 = arith.subf %2, %3 : vector<1x12x1xf32>
    %cst_1 = arith.constant 4.000000e-01 : f32
    %5 = vector.broadcast %cst_1 : f32 to vector<1x12x1xf32>
    %6 = arith.mulf %4, %5 : vector<1x12x1xf32>
    %cst_2 = arith.constant -1.000000e+00 : f32
    %7 = vector.broadcast %cst_2 : f32 to vector<1x12x1xf32>
    %8 = arith.addf %6, %7 : vector<1x12x1xf32>
    %9 = vector.shape_cast %0 : vector<2x128xf32> to vector<2x1x128xf32>
    %10 = vector.broadcast %9 : vector<2x1x128xf32> to vector<2x12x128xf32>
    %11 = vector.broadcast %8 : vector<1x12x1xf32> to vector<2x12x128xf32>
    %12 = arith.subf %10, %11 : vector<2x12x128xf32>
    %13 = vector.extract_strided_slice %12 {offsets = [0, 0, 0], sizes = [2, 11, 128], strides = [1, 1, 1]} : vector<2x12x128xf32> to vector<2x11x128xf32>
    %cst_3 = arith.constant 0.000000e+00 : f32
    %14 = vector.broadcast %cst_3 : f32 to vector<2x11x128xf32>
    %15 = arith.cmpf oge, %13, %14 : vector<2x11x128xf32>
    %16 = vector.extract_strided_slice %12 {offsets = [0, 1, 0], sizes = [2, 11, 128], strides = [1, 1, 1]} : vector<2x12x128xf32> to vector<2x11x128xf32>
    %cst_4 = arith.constant 0.000000e+00 : f32
    %17 = vector.broadcast %cst_4 : f32 to vector<2x11x128xf32>
    %18 = arith.cmpf olt, %16, %17 : vector<2x11x128xf32>
    %19 = arith.andi %15, %18 : vector<2x11x128xi1>
    %20 = arith.extui %19 : vector<2x11x128xi1> to vector<2x11x128xi32>
    %21 = arith.sitofp %20 : vector<2x11x128xi32> to vector<2x11x128xf32>
    %22 = vector.extract_strided_slice %12 {offsets = [0, 0, 0], sizes = [2, 10, 128], strides = [1, 1, 1]} : vector<2x12x128xf32> to vector<2x10x128xf32>
    %23 = vector.extract_strided_slice %21 {offsets = [0, 0, 0], sizes = [2, 10, 128], strides = [1, 1, 1]} : vector<2x11x128xf32> to vector<2x10x128xf32>
    %24 = arith.mulf %22, %23 : vector<2x10x128xf32>
    %25 = vector.extract_strided_slice %12 {offsets = [0, 2, 0], sizes = [2, 10, 128], strides = [1, 1, 1]} : vector<2x12x128xf32> to vector<2x10x128xf32>
    %26 = vector.extract_strided_slice %21 {offsets = [0, 1, 0], sizes = [2, 10, 128], strides = [1, 1, 1]} : vector<2x11x128xf32> to vector<2x10x128xf32>
    %27 = arith.mulf %25, %26 : vector<2x10x128xf32>
    %28 = arith.subf %24, %27 : vector<2x10x128xf32>
    %cst_5 = arith.constant 2.500000e+00 : f32
    %29 = vector.broadcast %cst_5 : f32 to vector<2x10x128xf32>
    %30 = arith.mulf %28, %29 : vector<2x10x128xf32>
    %31 = vector.extract_strided_slice %12 {offsets = [0, 0, 0], sizes = [2, 9, 128], strides = [1, 1, 1]} : vector<2x12x128xf32> to vector<2x9x128xf32>
    %32 = vector.extract_strided_slice %30 {offsets = [0, 0, 0], sizes = [2, 9, 128], strides = [1, 1, 1]} : vector<2x10x128xf32> to vector<2x9x128xf32>
    %33 = arith.mulf %31, %32 : vector<2x9x128xf32>
    %34 = vector.extract_strided_slice %12 {offsets = [0, 3, 0], sizes = [2, 9, 128], strides = [1, 1, 1]} : vector<2x12x128xf32> to vector<2x9x128xf32>
    %35 = vector.extract_strided_slice %30 {offsets = [0, 1, 0], sizes = [2, 9, 128], strides = [1, 1, 1]} : vector<2x10x128xf32> to vector<2x9x128xf32>
    %36 = arith.mulf %34, %35 : vector<2x9x128xf32>
    %37 = arith.subf %33, %36 : vector<2x9x128xf32>
    %cst_6 = arith.constant 1.250000e+00 : f32
    %38 = vector.broadcast %cst_6 : f32 to vector<2x9x128xf32>
    %39 = arith.mulf %37, %38 : vector<2x9x128xf32>
    %40 = vector.extract_strided_slice %12 {offsets = [0, 0, 0], sizes = [2, 8, 128], strides = [1, 1, 1]} : vector<2x12x128xf32> to vector<2x8x128xf32>
    %41 = vector.extract_strided_slice %39 {offsets = [0, 0, 0], sizes = [2, 8, 128], strides = [1, 1, 1]} : vector<2x9x128xf32> to vector<2x8x128xf32>
    %42 = arith.mulf %40, %41 : vector<2x8x128xf32>
    %43 = vector.extract_strided_slice %12 {offsets = [0, 4, 0], sizes = [2, 8, 128], strides = [1, 1, 1]} : vector<2x12x128xf32> to vector<2x8x128xf32>
    %44 = vector.extract_strided_slice %39 {offsets = [0, 1, 0], sizes = [2, 8, 128], strides = [1, 1, 1]} : vector<2x9x128xf32> to vector<2x8x128xf32>
    %45 = arith.mulf %43, %44 : vector<2x8x128xf32>
    %46 = arith.subf %42, %45 : vector<2x8x128xf32>
    %cst_7 = arith.constant 0.833333313 : f32
    %47 = vector.broadcast %cst_7 : f32 to vector<2x8x128xf32>
    %48 = arith.mulf %46, %47 : vector<2x8x128xf32>
    %49 = vector.shape_cast %48 : vector<2x8x128xf32> to vector<16x128xf32>
    %cst_8 = arith.constant 0.000000e+00 : f32
    %50 = vector.broadcast %cst_8 : f32 to vector<2x128xf32>
    %51 = arith.subf %50, %0 : vector<2x128xf32>
    %52 = math.exp %51 : vector<2x128xf32>
    %cst_9 = arith.constant 1.000000e+00 : f32
    %53 = vector.broadcast %cst_9 : f32 to vector<2x128xf32>
    %54 = arith.addf %53, %52 : vector<2x128xf32>
    %cst_10 = arith.constant 1.000000e+00 : f32
    %55 = vector.broadcast %cst_10 : f32 to vector<2x128xf32>
    %56 = arith.divf %55, %54 : vector<2x128xf32>
    %57 = arith.mulf %0, %56 : vector<2x128xf32>
    %58 = tpu.concatenate %49, %57 in 0 : vector<16x128xf32>, vector<2x128xf32> -> vector<18x128xf32>
    %c0_11 = arith.constant 0 : index
    %c0_12 = arith.constant 0 : index
    %59 = vector.load %arg2[%c0_11, %c0_12] : memref<32x18xf32, #tpu.memory_space<vmem>>, vector<32x18xf32>
    %cst_13 = arith.constant dense<0.000000e+00> : vector<32x128xf32>
    %60 = tpu.matmul %59, %58, %cst_13 {dimension_numbers = #tpu.dot_dimension_numbers<[1], [0], [0], [1], [0, 0, 1, 1], [], []>} : vector<32x18xf32>, vector<18x128xf32>, vector<32x128xf32> -> vector<32x128xf32>
    %61 = tpu.iota {dimensions = array<i32: 1>} : vector<1x12x1xi32>
    %62 = arith.sitofp %61 : vector<1x12x1xi32> to vector<1x12x1xf32>
    %cst_14 = arith.constant 3.000000e+00 : f32
    %63 = vector.broadcast %cst_14 : f32 to vector<1x12x1xf32>
    %64 = arith.subf %62, %63 : vector<1x12x1xf32>
    %cst_15 = arith.constant 4.000000e-01 : f32
    %65 = vector.broadcast %cst_15 : f32 to vector<1x12x1xf32>
    %66 = arith.mulf %64, %65 : vector<1x12x1xf32>
    %cst_16 = arith.constant -1.000000e+00 : f32
    %67 = vector.broadcast %cst_16 : f32 to vector<1x12x1xf32>
    %68 = arith.addf %66, %67 : vector<1x12x1xf32>
    %69 = vector.shape_cast %60 : vector<32x128xf32> to vector<32x1x128xf32>
    %70 = vector.broadcast %69 : vector<32x1x128xf32> to vector<32x12x128xf32>
    %71 = vector.broadcast %68 : vector<1x12x1xf32> to vector<32x12x128xf32>
    %72 = arith.subf %70, %71 : vector<32x12x128xf32>
    %73 = vector.extract_strided_slice %72 {offsets = [0, 0, 0], sizes = [32, 11, 128], strides = [1, 1, 1]} : vector<32x12x128xf32> to vector<32x11x128xf32>
    %cst_17 = arith.constant 0.000000e+00 : f32
    %74 = vector.broadcast %cst_17 : f32 to vector<32x11x128xf32>
    %75 = arith.cmpf oge, %73, %74 : vector<32x11x128xf32>
    %76 = vector.extract_strided_slice %72 {offsets = [0, 1, 0], sizes = [32, 11, 128], strides = [1, 1, 1]} : vector<32x12x128xf32> to vector<32x11x128xf32>
    %cst_18 = arith.constant 0.000000e+00 : f32
    %77 = vector.broadcast %cst_18 : f32 to vector<32x11x128xf32>
    %78 = arith.cmpf olt, %76, %77 : vector<32x11x128xf32>
    %79 = arith.andi %75, %78 : vector<32x11x128xi1>
    %80 = arith.extui %79 : vector<32x11x128xi1> to vector<32x11x128xi32>
    %81 = arith.sitofp %80 : vector<32x11x128xi32> to vector<32x11x128xf32>
    %82 = vector.extract_strided_slice %72 {offsets = [0, 0, 0], sizes = [32, 10, 128], strides = [1, 1, 1]} : vector<32x12x128xf32> to vector<32x10x128xf32>
    %83 = vector.extract_strided_slice %81 {offsets = [0, 0, 0], sizes = [32, 10, 128], strides = [1, 1, 1]} : vector<32x11x128xf32> to vector<32x10x128xf32>
    %84 = arith.mulf %82, %83 : vector<32x10x128xf32>
    %85 = vector.extract_strided_slice %72 {offsets = [0, 2, 0], sizes = [32, 10, 128], strides = [1, 1, 1]} : vector<32x12x128xf32> to vector<32x10x128xf32>
    %86 = vector.extract_strided_slice %81 {offsets = [0, 1, 0], sizes = [32, 10, 128], strides = [1, 1, 1]} : vector<32x11x128xf32> to vector<32x10x128xf32>
    %87 = arith.mulf %85, %86 : vector<32x10x128xf32>
    %88 = arith.subf %84, %87 : vector<32x10x128xf32>
    %cst_19 = arith.constant 2.500000e+00 : f32
    %89 = vector.broadcast %cst_19 : f32 to vector<32x10x128xf32>
    %90 = arith.mulf %88, %89 : vector<32x10x128xf32>
    %91 = vector.extract_strided_slice %72 {offsets = [0, 0, 0], sizes = [32, 9, 128], strides = [1, 1, 1]} : vector<32x12x128xf32> to vector<32x9x128xf32>
    %92 = vector.extract_strided_slice %90 {offsets = [0, 0, 0], sizes = [32, 9, 128], strides = [1, 1, 1]} : vector<32x10x128xf32> to vector<32x9x128xf32>
    %93 = arith.mulf %91, %92 : vector<32x9x128xf32>
    %94 = vector.extract_strided_slice %72 {offsets = [0, 3, 0], sizes = [32, 9, 128], strides = [1, 1, 1]} : vector<32x12x128xf32> to vector<32x9x128xf32>
    %95 = vector.extract_strided_slice %90 {offsets = [0, 1, 0], sizes = [32, 9, 128], strides = [1, 1, 1]} : vector<32x10x128xf32> to vector<32x9x128xf32>
    %96 = arith.mulf %94, %95 : vector<32x9x128xf32>
    %97 = arith.subf %93, %96 : vector<32x9x128xf32>
    %cst_20 = arith.constant 1.250000e+00 : f32
    %98 = vector.broadcast %cst_20 : f32 to vector<32x9x128xf32>
    %99 = arith.mulf %97, %98 : vector<32x9x128xf32>
    %100 = vector.extract_strided_slice %72 {offsets = [0, 0, 0], sizes = [32, 8, 128], strides = [1, 1, 1]} : vector<32x12x128xf32> to vector<32x8x128xf32>
    %101 = vector.extract_strided_slice %99 {offsets = [0, 0, 0], sizes = [32, 8, 128], strides = [1, 1, 1]} : vector<32x9x128xf32> to vector<32x8x128xf32>
    %102 = arith.mulf %100, %101 : vector<32x8x128xf32>
    %103 = vector.extract_strided_slice %72 {offsets = [0, 4, 0], sizes = [32, 8, 128], strides = [1, 1, 1]} : vector<32x12x128xf32> to vector<32x8x128xf32>
    %104 = vector.extract_strided_slice %99 {offsets = [0, 1, 0], sizes = [32, 8, 128], strides = [1, 1, 1]} : vector<32x9x128xf32> to vector<32x8x128xf32>
    %105 = arith.mulf %103, %104 : vector<32x8x128xf32>
    %106 = arith.subf %102, %105 : vector<32x8x128xf32>
    %cst_21 = arith.constant 0.833333313 : f32
    %107 = vector.broadcast %cst_21 : f32 to vector<32x8x128xf32>
    %108 = arith.mulf %106, %107 : vector<32x8x128xf32>
    %109 = vector.shape_cast %108 : vector<32x8x128xf32> to vector<256x128xf32>
    %cst_22 = arith.constant 0.000000e+00 : f32
    %110 = vector.broadcast %cst_22 : f32 to vector<32x128xf32>
    %111 = arith.subf %110, %60 : vector<32x128xf32>
    %112 = math.exp %111 : vector<32x128xf32>
    %cst_23 = arith.constant 1.000000e+00 : f32
    %113 = vector.broadcast %cst_23 : f32 to vector<32x128xf32>
    %114 = arith.addf %113, %112 : vector<32x128xf32>
    %cst_24 = arith.constant 1.000000e+00 : f32
    %115 = vector.broadcast %cst_24 : f32 to vector<32x128xf32>
    %116 = arith.divf %115, %114 : vector<32x128xf32>
    %117 = arith.mulf %60, %116 : vector<32x128xf32>
    %118 = tpu.concatenate %109, %117 in 0 : vector<256x128xf32>, vector<32x128xf32> -> vector<288x128xf32>
    %c0_25 = arith.constant 0 : index
    %c0_26 = arith.constant 0 : index
    %119 = vector.load %arg3[%c0_25, %c0_26] : memref<2x288xf32, #tpu.memory_space<vmem>>, vector<2x288xf32>
    %cst_27 = arith.constant dense<0.000000e+00> : vector<2x128xf32>
    %120 = tpu.matmul %119, %118, %cst_27 {dimension_numbers = #tpu.dot_dimension_numbers<[1], [0], [0], [1], [0, 0, 1, 1], [], []>} : vector<2x288xf32>, vector<288x128xf32>, vector<2x128xf32> -> vector<2x128xf32>
    %c0_28 = arith.constant 0 : index
    %c0_29 = arith.constant 0 : index
    %121 = vector.load %arg4[%c0_28, %c0_29] : memref<2x128xf32, #tpu.memory_space<vmem>>, vector<2x128xf32>
    tpu.vector_store %arg4[%c0_28, %c0_29], %120 {strides = array<i32>} : memref<2x128xf32, #tpu.memory_space<vmem>>, vector<2x128xf32>,
    return
  }
  func.func @transform_0(%arg0: i32) -> (i32, i32) {
    %c0_i32 = arith.constant 0 : i32
    %c0_i32_0 = arith.constant 0 : i32
    return %c0_i32, %arg0 : i32, i32
  }
  func.func @transform_1(%arg0: i32) -> (i32, i32) {
    %c0_i32 = arith.constant 0 : i32
    %c0_i32_0 = arith.constant 0 : i32
    %c0_i32_1 = arith.constant 0 : i32
    return %c0_i32, %c0_i32_0 : i32, i32
  }
  func.func @transform_2(%arg0: i32) -> (i32, i32) {
    %c0_i32 = arith.constant 0 : i32
    %c0_i32_0 = arith.constant 0 : i32
    %c0_i32_1 = arith.constant 0 : i32
    return %c0_i32, %c0_i32_0 : i32, i32
  }
  func.func @transform_3(%arg0: i32) -> (i32, i32) {
    %c0_i32 = arith.constant 0 : i32
    %c0_i32_0 = arith.constant 0 : i32
    return %c0_i32, %arg0 : i32, i32
  }
}

</mosaic_0001>

<bundles_post_ra>
// kernel: tpu_custom_call.1
= control target key start
LH: loop header
LB: loop body
LE: loop exit
PB: predicated region body
PF: predicated region fallthrough
CT: control target
= control target key end

     0   :  { %8 = vsyncpa [#allocation3], 0  ;;  %s5685_s0 = inlined_call_operand.vmem [shape: f32[2,256], index: 0, kind: input, shape index: {}]   ;;  %s5686_s1 = inlined_call_operand.vmem [shape: f32[32,18], index: 1, kind: input, shape index: {}]   ;;  %s5687_s2 = inlined_call_operand.vmem [shape: f32[2,288], index: 2, kind: input, shape index: {}]   ;;  %s5688_s3 = inlined_call_operand.hbm [shape: f32[2,256], index: 3, kind: output, shape index: {}]  }
   0x1   :  { %10 = vsyncpa [#allocation3 + $0x1], 0  ;;  %s4064_s12 = smov 0   ;;  %s4066_s13 = smov 0  }
   0x2   :  { %s4068_s14 = smov 0   ;;  %s4070_s15 = smov 0  }
   0x3 LB: > { %s4085_s16 = sadd.s32 4294967295, %s4035_s15   ;;  %s3709_s17 = sadd.s32 4294967294, %s4035_s15   ;;  %s4035_s15 = sphi %s4070_s15, %s6006_s15   ;;  %s4031_s14 = sphi %s4068_s14, %s6005_s14   ;;  %s4027_s13 = sphi %s4066_s13, %s6004_s13   ;;  %s4023_s12 = sphi %s4064_s12, %s6003_s12  }
   0x4   : > { %s4089_s18 = sadd.s32 1, %s4035_s15   ;;  %s91_s19 = sadd.s32 1, %s4031_s14 }
   0x5   : > { %s88_s20 = ssub.s32 %s4035_s15, %s4089_s18  ;;  %p101_p0 = scmp.ne.s32.totalorder %s4031_s14, %s4027_s13 }
   0x6   : > { %p89_p1 = scmp.eq.s32.totalorder %s88_s20, 0  ;;  %p102_p2 = scmp.eq.s32.totalorder %s4085_s16, 1 }
   0x7   : > { %p107_p3 = scmp.ne.s32.totalorder %s4027_s13, %s4023_s12  ;;  %p108_p4 = scmp.eq.s32.totalorder %s3709_s17, 1 }
   0x8   : > { %s4100_s21 = scalar_select %p89_p1, %s4031_s14, %s91_s19  }
   0x9   : > { %p4102_p5 = por %p102_p2, %p101_p0  ;;  %p4106_p6 = por %p108_p4, %p107_p3 }
   0xa   : > { %p3712_p7 = scmp.ge.s32.totalorder %s4035_s15, 1  ;;  %p139_p8 = scmp.lt.s32.totalorder %s4035_s15, 3 }
   0xc   : > { %p140_p9 = pnand %p3712_p7, %p139_p8 }
   0xe   : > { %143 = sbr.rel (%p140_p9) target bundleno = 1043 (0x413), region = 32 }
  0x15   : > { %p162_p10 = scmp.lt.s32.totalorder %s4085_s16, 1  ;;  %v167_v0 = vlaneseq  ;;  %v4037_v1 = vmov 1966171168   ;;  %v387_v3 = vld [vmem:[%s5686_s1] sm:$0xff]  ;;  %vm391_vm0 = vcmask 146432   ;;  %v5710_v28 = vmov 0  }
  0x16   : > { %v180_v2 = vunpack.c.l.s4 %v4037_v1  ;;  %3848 = vmatprep.mubr.msk.f32.mxu0 %vm391_vm0, %v387_v3  ;;  %vm5700_vm5 = vcmask 1046528   ;;  %v5689_v39 = vmov 0.0   ;;  %s159_s17 = sand.u32 1, %s4027_s13   ;;  %s3792_s20 = sshll.u32 %s4085_s16, 5 }
  0x17   : > { %s163_s26 = scalar_select %p162_p10, %s4085_s16, 1  ;;  %v4117_v4 = vshrl.u32 %v167_v0, 7 }
  0x18   : > { %v181_v5 = vunpack.c.0.s8 %v180_v2  ;;  %s3713_s19 = sshll.u32 %s159_s17, 1  ;;  %s5643_s28 = scalar_lea.hbm %s5688_s3, %s3792_s20 }
  0x19   : > { %5724 = vst [vmem:[#allocation5_spill] sm:$0xff] %v4117_v4  ;;  %s3714_s27 = sshll.u32 %s163_s26, 1  ;;  %v169_v6 = vadd.s32 8, %v4117_v4  ;;  %v170_v7 = vcvt.s32.f32 %v4117_v4  ;;  %v4133_v13 = vsub.s32 0, %v4117_v4  ;;  %s161_s24 = scalar_lea.vmem [#allocation2], %s3713_s19 }
  0x1a   : > { %s165_s30 = scalar_lea.vmem %s5685_s0, %s3714_s27  ;;  %v4126_v8 = vsub.s32 %v181_v5, %v4117_v4  ;;  %s3650_s25 = sshll.u32 %s161_s24, 4  ;;  %s5645_s25 = int_to_ptr.vmem [resolvable:$true] %s3650_s25 }
  0x1b   : > { %v4128_v9 = vld [vmem:[%s165_s30] sm:$0x3]  ;;  %v171_v10 = vcvt.s32.f32 %v169_v6  ;;  %v3715_v11 = vadd.f32 -3.0, %v170_v7  ;;  %s3637_s29 = scalar_lea.sflag [#allocation3], %s159_s17  ;;  %s3973_s30 = scalar_lea.vmem %s5645_s25, 32 }
  0x1c   : > { %v185_v12 = vrot.slane %v4128_v9, %v4126_v8  ;;  %v380_v45 = vsub.f32 0.0, %v4128_v9  ;;  %p3974_p11 = scmp.ne.s32.totalorder %s5645_s25, %s3973_s30  ;;  %s4043_s16 = smov [#allocation2]  }
  0x1d   : > { %v3716_v14 = vadd.f32 -3.0, %v171_v10  ;;  %v174_v15 = vmul.f32 0.4, %v3715_v11  ;;  %s3977_s4 = sshll.u32 %s4043_s16, 4  ;;  %s3978_s4 = int_to_ptr.vmem [resolvable:$false] %s3977_s4 }
  0x1e   : > { %v186_v16 = vcombine.high %v185_v12, %v185_v12  ;;  %v193_v17 = vrot.slane %v185_v12, %v4126_v8  ;;  %v381_v57 = vmul.f32 1.442695, %v380_v45  ;;  %p3975_p12 = pnand %p3974_p11, %p4102_p5  ;;  %s3979_s5 = scalar_lea.vmem %s3978_s4, 64 }
  0x1f   : > { %v175_v18 = vmul.f32 0.4, %v3716_v14  ;;  %v4136_v19 = vadd.f32 -1.0, %v174_v15  ;;  %p3980_p0 = scmp.lt.s32.totalorder %s5645_s25, %s3978_s4  ;;  %p3981_p1 = scmp.lt.s32.totalorder %s3979_s5, %s3973_s30 }
  0x20   : > { %v200_v20 = vrot.slane %v186_v16, %v4126_v8  ;;  %v204_v21 = vrot.slane %v193_v17, %v4133_v13  ;;  %3953 = vpow2.f32 %v381_v57  ;;  %p3976_p13 = pneg %p3975_p12 }
  0x21   : > { %v4140_v22 = vadd.f32 -1.0, %v175_v18  ;;  %p3982_p2 = por %p3981_p1, %p3980_p0 }
  0x22   : > { %v208_v23 = vrot.slane %v200_v20, %v4133_v13  ;;  %v4144_v24 = vsub.f32 %v204_v21, %v4136_v19 }
  0x23   : > { %v4147_v25 = vsub.f32 %v204_v21, %v4140_v22  ;;  %p3983_p3 = pnand %p3982_p2, %p3976_p13 }
  0x24   : > { %v4150_v26 = vsub.f32 %v208_v23, %v4136_v19  ;;  %v4153_v27 = vsub.f32 %v208_v23, %v4140_v22  ;;  %vm219_vm1 = vcmp.lt.f32.partialorder %v4144_v24, 0.0  ;;  %vm215_vm7 = vcmp.ge.f32.partialorder %v4144_v24, 0.0 }
  0x25   : > { %vm220_vm2 = vcmp.lt.f32.partialorder %v4147_v25, 0.0  ;;  %v223_v29 = vsel %vm219_vm1, 1, %v5710_v28  ;;  %vm216_vm6 = vcmp.ge.f32.partialorder %v4147_v25, 0.0 }
  0x26   : > { %vm221_vm3 = vcmp.lt.f32.partialorder %v4150_v26, 0.0  ;;  %vm222_vm4 = vcmp.lt.f32.partialorder %v4153_v27, 0.0  ;;  %v224_v30 = vsel %vm220_vm2, 1, %v5710_v28  ;;  %v228_v33 = vrot.slane %v223_v29, 1 }
  0x27   : > { %v225_v31 = vsel %vm221_vm3, 1, %v5710_v28  ;;  %v226_v32 = vsel %vm222_vm4, 1, %v5710_v28  ;;  %v229_v34 = vrot.slane %v224_v30, 1  ;;  %vm217_vm8 = vcmp.ge.f32.partialorder %v4150_v26, 0.0 }
  0x28   : > { %v231_v35 = vrot.slane %v225_v31, 1  ;;  %v232_v36 = vrot.slane %v226_v32, 1  ;;  %vm218_vm10 = vcmp.ge.f32.partialorder %v4153_v27, 0.0  ;;  %vm5699_vm2 = vcmask 1040384  }
  0x29   : > { %v230_v37 = vsel %vm5700_vm5, %v228_v33, %v229_v34  ;;  %vm235_vm9 = vcmp.ne.s32.totalorder %v229_v34, 0  ;;  %vm5698_vm4 = vcmask 1045504  }
  0x2a   : > { %v233_v38 = vsel %vm5700_vm5, %v231_v35, %v232_v36  ;;  %vm234_vm11 = vcmp.ne.s32.totalorder %v230_v37, 0  ;;  %vm237_vm13 = vcmp.ne.s32.totalorder %v232_v36, 0  ;;  %vm239_vm14 = vmand %vm216_vm6, %vm235_vm9  ;;  %vm5697_vm6 = vcmask 1041408   ;;  %v3954_v36 = vpop.eup %3953 }
  0x2b   : > { %vm236_vm12 = vcmp.ne.s32.totalorder %v233_v38, 0  ;;  %vm238_vm15 = vmand %vm215_vm7, %vm234_vm11  ;;  %v3718_v40 = vsel %vm239_vm14, 1.0, %v5689_v39  ;;  %vm5696_vm7 = vcmask 1044480   ;;  %vm5694_vm9 = vcmask 1043456  }
  0x2c   : > { %vm240_vm1 = vmand %vm217_vm8, %vm236_vm12  ;;  %v3717_v41 = vsel %vm238_vm15, 1.0, %v5689_v39  ;;  %v260_v42 = vrot.slane %v3718_v40, 7  ;;  %v251_v51 = vmul.f32 %v3718_v40, %v4147_v25  ;;  %vm5695_vm8 = vcmask 1042432  }
  0x2d   : > { %vm241_vm3 = vmand %vm218_vm10, %vm237_vm13  ;;  %v3719_v43 = vsel %vm240_vm1, 1.0, %v5689_v39  ;;  %v259_v44 = vrot.slane %v3717_v41, 7  ;;  %v250_v54 = vmul.f32 %v3717_v41, %v4144_v24 }
  0x2e   : > { %v3720_v46 = vsel %vm241_vm3, 1.0, %v5689_v39  ;;  %v262_v47 = vrot.slane %v3719_v43, 7  ;;  %v252_v62 = vmul.f32 %v3719_v43, %v4150_v26 }
  0x2f   : > { %v261_v48 = vsel %vm5699_vm2, %v259_v44, %v260_v42  ;;  %v263_v49 = vrot.slane %v3720_v46, 7  ;;  %v269_v50 = vmul.f32 %v259_v44, %v4144_v24  ;;  %v253_v58 = vmul.f32 %v3720_v46, %v4153_v27 }
  0x30   : > { %v270_v52 = vmul.f32 %v261_v48, %v4147_v25  ;;  %v271_v53 = vmul.f32 %v262_v47, %v4150_v26 }
  0x31   : > { %v264_v55 = vsel %vm5699_vm2, %v262_v47, %v263_v49  ;;  %v278_v56 = vrot.slane %v269_v50, 2  ;;  %v383_v47 = vadd.f32 1.0, %v3954_v36 }
  0x32   : > { %v272_v59 = vmul.f32 %v264_v55, %v4153_v27  ;;  %v279_v60 = vrot.slane %v270_v52, 2  ;;  %v281_v61 = vrot.slane %v271_v53, 2 }
  0x33   : > { %3955 = vrcp.f32 %v383_v47 }
  0x34   : > { %v280_v63 = vsel %vm5698_vm4, %v278_v56, %v279_v60  ;;  %v282_v0 = vrot.slane %v272_v59, 2  ;;  %v289_v1 = vsub.f32 %v251_v51, %v279_v60 }
  0x35   : > { %v288_v2 = vsub.f32 %v250_v54, %v280_v63 }
  0x36   : > { %v283_v3 = vsel %vm5698_vm4, %v281_v61, %v282_v0  ;;  %v291_v5 = vsub.f32 %v253_v58, %v282_v0  ;;  %v293_v6 = vmul.f32 2.5, %v289_v1 }
  0x37   : > { %v290_v7 = vsub.f32 %v252_v62, %v283_v3  ;;  %v292_v10 = vmul.f32 2.5, %v288_v2 }
  0x38   : > { %v295_v11 = vmul.f32 2.5, %v291_v5  ;;  %v306_v12 = vrot.slane %v293_v6, 6  ;;  %v297_v21 = vmul.f32 %v293_v6, %v4147_v25 }
  0x39   : > { %v294_v14 = vmul.f32 2.5, %v290_v7  ;;  %v305_v15 = vrot.slane %v292_v10, 6  ;;  %v296_v29 = vmul.f32 %v292_v10, %v4144_v24 }
  0x3a   : > { %v309_v16 = vrot.slane %v295_v11, 6  ;;  %v299_v33 = vmul.f32 %v295_v11, %v4153_v27 }
  0x3b   : > { %v307_v17 = vsel %vm5697_vm6, %v305_v15, %v306_v12  ;;  %v308_v18 = vrot.slane %v294_v14, 6  ;;  %v315_v20 = vmul.f32 %v305_v15, %v4144_v24  ;;  %v298_v37 = vmul.f32 %v294_v14, %v4150_v26 }
  0x3c   : > { %v316_v23 = vmul.f32 %v307_v17, %v4147_v25  ;;  %v4040_v15 = vmov 0.0|0.0  }
  0x3d   : > { %v310_v30 = vsel %vm5697_vm6, %v308_v18, %v309_v16  ;;  %v317_v31 = vmul.f32 %v308_v18, %v4150_v26  ;;  %v324_v32 = vrot.slane %v315_v20, 3 }
  0x3e   : > { %v318_v34 = vmul.f32 %v310_v30, %v4153_v27  ;;  %v325_v35 = vrot.slane %v316_v23, 3 }
  0x3f   : > { %v327_v38 = vrot.slane %v317_v31, 3 }
  0x40   : > { %v326_v40 = vsel %vm5696_vm7, %v324_v32, %v325_v35  ;;  %v328_v41 = vrot.slane %v318_v34, 3  ;;  %v335_v42 = vsub.f32 %v297_v21, %v325_v35 }
  0x41   : > { %v334_v43 = vsub.f32 %v296_v29, %v326_v40 }
  0x42   : > { %v329_v44 = vsel %vm5696_vm7, %v327_v38, %v328_v41  ;;  %v337_v45 = vsub.f32 %v299_v33, %v328_v41  ;;  %v339_v46 = vmul.f32 1.25, %v335_v42 }
  0x43   : > { %v336_v48 = vsub.f32 %v298_v37, %v329_v44  ;;  %v338_v49 = vmul.f32 1.25, %v334_v43 }
  0x44   : > { %v341_v50 = vmul.f32 1.25, %v337_v45  ;;  %v350_v51 = vrot.slane %v339_v46, 5 }
  0x45   : > { %v340_v52 = vmul.f32 1.25, %v336_v48  ;;  %v349_v53 = vrot.slane %v338_v49, 5  ;;  %v342_v59 = vmul.f32 %v338_v49, %v4144_v24 }
  0x46   : > { %v353_v54 = vrot.slane %v341_v50, 5 }
  0x47   : > { %v351_v55 = vsel %vm5695_vm8, %v349_v53, %v350_v51  ;;  %v352_v56 = vrot.slane %v340_v52, 5  ;;  %v359_v57 = vmul.f32 %v349_v53, %v4144_v24  ;;  %v343_v1 = vmul.f32 %v340_v52, %v4150_v26  ;;  %v3956_v24 = vpop.eup %3955 }
  0x48   : > { %v360_v58 = vmul.f32 %v351_v55, %v4147_v25  ;;  %v386_v14 = vmul.f32 %v3956_v24, %v4128_v9  ;;  %v390_v9 = vld [vmem:[%s5686_s1 + $0x18] sm:$0xff] }
  0x49   : > { %v354_v60 = vsel %vm5695_vm8, %v352_v56, %v353_v54  ;;  %v361_v61 = vmul.f32 %v352_v56, %v4150_v26  ;;  %v368_v62 = vrot.slane %v359_v57, 4  ;;  %v388_v26 = vld [vmem:[%s5686_s1 + $0x8] sm:$0xff] }
  0x4a   : > { %v362_v63 = vmul.f32 %v354_v60, %v4153_v27  ;;  %v369_v0 = vrot.slane %v360_v58, 4  ;;  %v389_v27 = vld [vmem:[%s5686_s1 + $0x10] sm:$0xff] }
  0x4b   : > { %v371_v2 = vrot.slane %v361_v61, 4 }
  0x4c   : > { %v370_v3 = vsel %vm5694_vm9, %v368_v62, %v369_v0  ;;  %v372_v5 = vrot.slane %v362_v63, 4 }
  0x4d   : > { %v376_v6 = vsub.f32 %v342_v59, %v370_v3 }
  0x4e   : > { %v373_v25 = vsel %vm5694_vm9, %v371_v2, %v372_v5 }
  0x4f   : > { %v377_v7 = vsub.f32 %v343_v1, %v373_v25  ;;  %v378_v10 = vmul.f32 0.8333333, %v376_v6 }
  0x51   : > { %v379_v11 = vmul.f32 0.8333333, %v377_v7 }
  0x53   : > { %v3865_v12 = vpack.c.bf16 %v379_v11, %v378_v10 }
  0x55   : > { %3866 = vmatprep.subr.bf16.mxu0 %v3865_v12 }
  0x56   : > { %3868 = vmatpush3.bf16.msra.mxu0 %v3865_v12 }
  0x57   : > { %3846 = vmatprep.subr.msk.mxu0 %vm5697_vm6, %v386_v14 }
  0x5a   : > { %3847 = vmatpush3.msk.msra.mxu0 %vm5697_vm6, %v386_v14 }
  0x5b   : > { %3849 = vmatmul.mubr.msk.f32.vlgmr.msra.gmra.mrb[0].mxu0 %vm391_vm0, %v388_v26  ;;  %3901 = vmatprep.subr.bf16.mxu0 %v4040_v15 }
  0x5c   : > { %3851 = vmatprep.mubr.msk.f32.mxu0 %vm391_vm0, %v389_v27 }
  0x5f   : > { %3852 = vmatmul.mubr.msk.f32.gmra.mrb[2].mxu0 %vm391_vm0, %v390_v9 }
 0x12e   : > { %v4224_v16 = vpop.f32.mrb[0].mxu0 }
 0x12f   : > { %v545_v17 = vcombine.high %v4224_v16, %v4224_v16  ;;  %v3445_v18 = vsub.f32 0.0, %v4224_v16  ;;  %v4229_v20 = vpop.f32.mrb[1].mxu0  ;;  %v552_v21 = vrot.slane %v4224_v16, %v4126_v8 }
 0x130   : > { %v3444_v33 = vsub.f32 0.0, %v4229_v20  ;;  %v496_v37 = vcombine.high %v4229_v20, %v4229_v20  ;;  %v503_v41 = vrot.slane %v4229_v20, %v4126_v8 }
 0x131   : > { %v559_v29 = vrot.slane %v545_v17, %v4126_v8  ;;  %v3450_v30 = vmul.f32 1.442695, %v3445_v18  ;;  %v560_v32 = vcombine.high %v552_v21, %v552_v21  ;;  %v568_v35 = vrot.slane %v552_v21, %v4126_v8 }
 0x132   : > { %v4233_v23 = vpop.f32.mrb[2].mxu0  ;;  %v3448_v38 = vmul.f32 1.442695, %v3444_v33  ;;  %v510_v45 = vrot.slane %v496_v37, %v4126_v8  ;;  %v511_v49 = vcombine.high %v503_v41, %v503_v41  ;;  %v519_v54 = vrot.slane %v503_v41, %v4126_v8 }
 0x133   : > { %v4236_v31 = vpop.f32.mrb[3].mxu0  ;;  %v561_v34 = vcombine.high %v559_v29, %v559_v29  ;;  %3957 = vpow2.f32 %v3450_v30  ;;  %v582_v36 = vrot.slane %v560_v32, %v4126_v8  ;;  %v575_v40 = vrot.slane %v559_v29, %v4126_v8 }
 0x134   : > { %v590_v43 = vcombine.high %v568_v35, %v568_v35  ;;  %v727_v46 = vrot.slane %v568_v35, %v4133_v13  ;;  %3959 = vpow2.f32 %v3448_v38  ;;  %v512_v53 = vcombine.high %v510_v45, %v510_v45 }
 0x135   : > { %v589_v42 = vrot.slane %v561_v34, %v4126_v8  ;;  %v592_v44 = vcombine.high %v582_v36, %v582_v36  ;;  %v591_v47 = vcombine.high %v575_v40, %v575_v40  ;;  %v731_v48 = vrot.slane %v582_v36, %v4133_v13 }
 0x136   : > { %v735_v51 = vrot.slane %v590_v43, %v4133_v13  ;;  %v743_v56 = vrot.slane %v575_v40, %v4133_v13  ;;  %v4255_v57 = vsub.f32 %v727_v46, %v4136_v19  ;;  %v4258_v58 = vsub.f32 %v727_v46, %v4140_v22 }
 0x137   : > { %v593_v50 = vcombine.high %v589_v42, %v589_v42  ;;  %v739_v52 = vrot.slane %v592_v44, %v4133_v13  ;;  %v526_v59 = vrot.slane %v510_v45, %v4126_v8  ;;  %v747_v60 = vrot.slane %v589_v42, %v4133_v13 }
 0x138   : > { %5725 = vst [vmem:[#allocation6_spill] sm:$0xff] %v4255_v57  ;;  %5726 = vst [vmem:[#allocation7_spill] sm:$0xff] %v4258_v58  ;;  %v751_v61 = vrot.slane %v591_v47, %v4133_v13  ;;  %v4264_v62 = vsub.f32 %v731_v48, %v4136_v19  ;;  %v533_v63 = vrot.slane %v511_v49, %v4126_v8  ;;  %v3447_v7 = vsub.f32 0.0, %v4233_v23 }
 0x139   : > { %v4268_v0 = vrot.slane %v593_v50, %v4133_v13  ;;  %v4271_v1 = vsub.f32 %v731_v48, %v4140_v22  ;;  %v4274_v2 = vsub.f32 %v735_v51, %v4136_v19  ;;  %v4277_v3 = vsub.f32 %v735_v51, %v4140_v22 }
 0x13a   : > { %5727 = vst [vmem:[#allocation8_spill] sm:$0xff] %v4264_v62  ;;  %v4280_v5 = vsub.f32 %v739_v52, %v4136_v19  ;;  %v540_v25 = vrot.slane %v512_v53, %v4126_v8  ;;  %v4285_v10 = vsub.f32 %v739_v52, %v4140_v22  ;;  %v4288_v24 = vsub.f32 %v743_v56, %v4136_v19 }
 0x13b   : > { %5728 = vst [vmem:[#allocation9_spill] sm:$0xff] %v4268_v0  ;;  %5729 = vst [vmem:[#allocation10_spill] sm:$0xff] %v4271_v1  ;;  %v4291_v11 = vsub.f32 %v743_v56, %v4140_v22  ;;  %v541_v12 = vcombine.high %v519_v54, %v519_v54  ;;  %v4294_v14 = vsub.f32 %v747_v60, %v4136_v19  ;;  %v3454_v9 = vmul.f32 1.442695, %v3447_v7 }
 0x13c   : > { %5730 = vst [vmem:[#allocation11_spill] sm:$0xff] %v4274_v2  ;;  %5731 = vst [vmem:[#allocation12_spill] sm:$0xff] %v4277_v3  ;;  %v4297_v26 = vsub.f32 %v747_v60, %v4140_v22  ;;  %v543_v27 = vcombine.high %v533_v63, %v533_v63  ;;  %v4300_v18 = vsub.f32 %v751_v61, %v4136_v19  ;;  %v3446_v41 = vsub.f32 0.0, %v4236_v31 }
 0x13d   : > { %v3958_v55 = vpop.eup %3957  ;;  %5732 = vst [vmem:[#allocation13_spill] sm:$0xff] %v4280_v5  ;;  %5733 = vst [vmem:[#allocation14_spill] sm:$0xff] %v4285_v10  ;;  %v4303_v21 = vsub.f32 %v751_v61, %v4140_v22  ;;  %v542_v29 = vcombine.high %v526_v59, %v526_v59  ;;  %v695_v30 = vrot.slane %v519_v54, %v4133_v13 }
 0x13e   : > { %v3457_v6 = vadd.f32 1.0, %v3958_v55  ;;  %5734 = vst [vmem:[#allocation15_spill] sm:$0xff] %v4288_v24  ;;  %5735 = vst [vmem:[#allocation16_spill] sm:$0xff] %v4291_v11  ;;  %v3960_v17 = vpop.eup %3959  ;;  %v544_v32 = vcombine.high %v540_v25, %v540_v25  ;;  %v699_v33 = vrot.slane %v533_v63, %v4133_v13  ;;  %v703_v35 = vrot.slane %v541_v12, %v4133_v13 }
 0x13f   : > { %5736 = vst [vmem:[#allocation17_spill] sm:$0xff] %v4294_v14  ;;  %5737 = vst [vmem:[#allocation18_spill] sm:$0xff] %v4297_v26  ;;  %v3456_v34 = vadd.f32 1.0, %v3960_v17  ;;  %v594_v36 = vcombine.high %v4236_v31, %v4236_v31  ;;  %v601_v37 = vrot.slane %v4236_v31, %v4126_v8  ;;  %v707_v38 = vrot.slane %v543_v27, %v4133_v13 }
 0x140   : > { %5738 = vst [vmem:[#allocation19_spill] sm:$0xff] %v4300_v18  ;;  %5739 = vst [vmem:[#allocation20_spill] sm:$0xff] %v4303_v21  ;;  %3961 = vrcp.f32 %v3457_v6  ;;  %v711_v40 = vrot.slane %v526_v59, %v4133_v13  ;;  %v715_v42 = vrot.slane %v540_v25, %v4133_v13  ;;  %v719_v43 = vrot.slane %v542_v29, %v4133_v13 }
 0x141   : > { %3963 = vpow2.f32 %v3454_v9  ;;  %v4318_v44 = vsub.f32 %v695_v30, %v4136_v19  ;;  %v643_v45 = vcombine.high %v4233_v23, %v4233_v23  ;;  %v723_v46 = vrot.slane %v544_v32, %v4133_v13 }
 0x142   : > { %3965 = vrcp.f32 %v3456_v34  ;;  %v4324_v47 = vsub.f32 %v695_v30, %v4140_v22  ;;  %v4327_v48 = vsub.f32 %v699_v33, %v4136_v19  ;;  %v650_v49 = vrot.slane %v4233_v23, %v4126_v8 }
 0x143   : > { %v4332_v50 = vsub.f32 %v699_v33, %v4140_v22  ;;  %v4335_v51 = vsub.f32 %v703_v35, %v4136_v19  ;;  %v608_v52 = vrot.slane %v594_v36, %v4126_v8  ;;  %v609_v53 = vcombine.high %v601_v37, %v601_v37 }
 0x144   : > { %v4339_v54 = vsub.f32 %v703_v35, %v4140_v22  ;;  %v4342_v55 = vsub.f32 %v707_v38, %v4136_v19  ;;  %v617_v56 = vrot.slane %v601_v37, %v4126_v8  ;;  %v3452_v59 = vmul.f32 1.442695, %v3446_v41 }
 0x145   : > { %v4346_v60 = vsub.f32 %v707_v38, %v4140_v22  ;;  %v4349_v61 = vsub.f32 %v711_v40, %v4136_v19  ;;  %v4352_v63 = vsub.f32 %v711_v40, %v4140_v22  ;;  %v657_v6 = vrot.slane %v643_v45, %v4126_v8 }
 0x146   : > { %v4356_v25 = vsub.f32 %v715_v42, %v4136_v19  ;;  %v4359_v7 = vsub.f32 %v715_v42, %v4140_v22  ;;  %v658_v12 = vcombine.high %v650_v49, %v650_v49  ;;  %v4362_v27 = vrot.slane %v650_v49, %v4126_v8 }
 0x147   : > { %v4365_v9 = vsub.f32 %v719_v43, %v4136_v19  ;;  %v4368_v17 = vsub.f32 %v719_v43, %v4140_v22  ;;  %v610_v29 = vcombine.high %v608_v52, %v608_v52  ;;  %v631_v30 = vrot.slane %v609_v53, %v4126_v8 }
 0x148   : > { %v4372_v33 = vsub.f32 %v723_v46, %v4136_v19  ;;  %v624_v34 = vrot.slane %v608_v52, %v4126_v8  ;;  %v639_v35 = vcombine.high %v617_v56, %v617_v56  ;;  %3967 = vpow2.f32 %v3452_v59 }
 0x149   : > { %v4376_v37 = vsub.f32 %v723_v46, %v4140_v22  ;;  %v659_v38 = vcombine.high %v657_v6, %v657_v6  ;;  %v4379_v40 = vrot.slane %v657_v6, %v4126_v8  ;;  %v759_v41 = vrot.slane %v617_v56, %v4133_v13 }
 0x14a   : > { %v3962_v32 = vpop.eup %3961  ;;  %5740 = vst [vmem:[#allocation21_spill] sm:$0xff] %v4372_v33  ;;  %v4383_v43 = vrot.slane %v658_v12, %v4126_v8  ;;  %v763_v52 = vrot.slane %v631_v30, %v4133_v13  ;;  %v4391_v46 = vrot.slane %v4362_v27, %v4133_v13  ;;  %v4394_v59 = vrot.slane %v610_v29, %v4126_v8 }
 0x14b   : > { %v3964_v36 = vpop.eup %3963  ;;  %5741 = vst [vmem:[#allocation22_spill] sm:$0xff] %v4376_v37  ;;  %v3469_v53 = vmul.f32 %v3962_v32, %v4224_v16  ;;  %v641_v56 = vcombine.high %v631_v30, %v631_v30  ;;  %v640_v12 = vcombine.high %v624_v34, %v624_v34  ;;  %v767_v39 = vrot.slane %v639_v35, %v4133_v13 }
 0x14c   : > { %v3966_v42 = vpop.eup %3965  ;;  %5742 = vst [vmem:[#allocation23_spill] sm:$0xff] %v4383_v43  ;;  %v3459_v49 = vadd.f32 1.0, %v3964_v36  ;;  %v4399_v36 = vrot.slane %v659_v38, %v4126_v8  ;;  %v4404_v32 = vsub.f32 %v759_v41, %v4136_v19  ;;  %v4407_v45 = vsub.f32 %v759_v41, %v4140_v22 }
 0x14d   : > { %v3468_v6 = vmul.f32 %v3966_v42, %v4229_v20  ;;  %v4413_v20 = vrot.slane %v4383_v43, %v4133_v13  ;;  %v4416_v30 = vsub.f32 %v763_v52, %v4136_v19  ;;  %v4419_v8 = vsub.f32 %v763_v52, %v4140_v22 }
 0x14e   : > { %3969 = vrcp.f32 %v3459_v49  ;;  %5743 = vst [vmem:[#allocation24_spill] sm:$0xff] %v4399_v36  ;;  %v4424_v38 = vrot.slane %v641_v56, %v4133_v13  ;;  %v4427_v41 = vrot.slane %v624_v34, %v4133_v13  ;;  %v4431_v42 = vrot.slane %v4394_v59, %v4133_v13 }
 0x14f   : > { %5744 = vst [vmem:[#allocation25_spill] sm:$0xff] %v4413_v20  ;;  %v4434_v49 = vrot.slane %v640_v12, %v4133_v13  ;;  %v4437_v16 = vsub.f32 %v767_v39, %v4136_v19  ;;  %v4440_v52 = vsub.f32 %v767_v39, %v4140_v22  ;;  %v3902_v29 = vpack.c.bf16 %v3469_v53, %v3468_v6 }
 0x150   : > { %vm948_vm0 = vcmp.ge.f32.partialorder %v4404_v32, 0.0  ;;  %vm949_vm10 = vcmp.ge.f32.partialorder %v4407_v45, 0.0  ;;  %vm1012_vm11 = vcmp.lt.f32.partialorder %v4404_v32, 0.0  ;;  %vm1013_vm12 = vcmp.lt.f32.partialorder %v4407_v45, 0.0 }
 0x151   : > { %3903 = vmatpush3.bf16.msra.mxu0 %v3902_v29  ;;  %vm1014_vm13 = vcmp.lt.f32.partialorder %v4416_v30, 0.0  ;;  %vm1015_vm14 = vcmp.lt.f32.partialorder %v4419_v8, 0.0  ;;  %v1076_v56 = vsel %vm1012_vm11, 1, %v5710_v28  ;;  %v1077_v39 = vsel %vm1013_vm12, 1, %v5710_v28 }
 0x152   : > { %v3968_v34 = vpop.eup %3967  ;;  %3904 = vmatprep.subr.bf16.mxu0 %v4040_v15  ;;  %v1078_v53 = vsel %vm1014_vm13, 1, %v5710_v28  ;;  %v1079_v6 = vsel %vm1015_vm14, 1, %v5710_v28  ;;  %v1156_v35 = vrot.slane %v1076_v56, 1  ;;  %vm950_vm15 = vcmp.ge.f32.partialorder %v4416_v30, 0.0 }
 0x153   : > { %v3458_v12 = vadd.f32 1.0, %v3968_v34  ;;  %v1157_v4 = vrot.slane %v1077_v39, 1  ;;  %v1159_v29 = vrot.slane %v1078_v53, 1  ;;  %v1160_v21 = vrot.slane %v1079_v6, 1 }
 0x154   : > { %vm951_vm1 = vcmp.ge.f32.partialorder %v4419_v8, 0.0  ;;  %vm980_vm3 = vcmp.lt.f32.partialorder %v4318_v44, 0.0  ;;  %vm981_vm11 = vcmp.lt.f32.partialorder %v4324_v47, 0.0  ;;  %vm982_vm14 = vcmp.lt.f32.partialorder %v4327_v48, 0.0 }
 0x155   : > { %3971 = vrcp.f32 %v3458_v12  ;;  %v1158_v15 = vsel %vm5700_vm5, %v1156_v35, %v1157_v4  ;;  %v1161_v18 = vsel %vm5700_vm5, %v1159_v29, %v1160_v21  ;;  %vm1237_vm12 = vcmp.ne.s32.totalorder %v1157_v4, 0 }
 0x156   : > { %vm1236_vm9 = vcmp.ne.s32.totalorder %v1158_v15, 0  ;;  %vm1238_vm8 = vcmp.ne.s32.totalorder %v1161_v18, 0  ;;  %vm4461_vm7 = vcmp.ne.s32.totalorder %v1160_v21, 0  ;;  %vm1301_vm6 = vmand %vm949_vm10, %vm1237_vm12  ;;  %vm917_vm4 = vcmp.ge.f32.partialorder %v4324_v47, 0.0 }
 0x157   : > { %vm983_vm2 = vcmp.lt.f32.partialorder %v4332_v50, 0.0  ;;  %vm1300_vm13 = vmand %vm948_vm0, %vm1236_vm9  ;;  %v5747_v4 = vmov 0.0   ;;  %vm919_vm5 = vcmp.ge.f32.partialorder %v4332_v50, 0.0  ;;  %v1044_v18 = vsel %vm980_vm3, 1, %v5710_v28 }
 0x158   : > { %v3970_v34 = vpop.eup %3969  ;;  %v3759_v39 = vsel %vm1301_vm6, 1.0, %v5747_v4  ;;  %v1045_v21 = vsel %vm981_vm11, 1, %v5710_v28  ;;  %vm1302_vm10 = vmand %vm950_vm15, %vm1238_vm8  ;;  %vm918_vm6 = vcmp.ge.f32.partialorder %v4327_v48, 0.0  ;;  %v1046_v6 = vsel %vm982_vm14, 1, %v5710_v28 }
 0x159   : > { %v3471_v35 = vmul.f32 %v3970_v34, %v4233_v23  ;;  %v3758_v23 = vsel %vm1300_vm13, 1.0, %v5747_v4  ;;  %v1493_v12 = vmul.f32 %v3759_v39, %v4407_v45  ;;  %v1637_v53 = vrot.slane %v3759_v39, 7  ;;  %vm1303_vm9 = vmand %vm951_vm1, %vm4461_vm7 }
 0x15a   : > { %v3760_v29 = vsel %vm1302_vm10, 1.0, %v5747_v4  ;;  %v1636_v34 = vrot.slane %v3758_v23, 7  ;;  %v1047_v15 = vsel %vm983_vm2, 1, %v5710_v28  ;;  %v1108_v0 = vrot.slane %v1044_v18, 1 }
 0x15b   : > { %v3761_v39 = vsel %vm1303_vm9, 1.0, %v5747_v4  ;;  %v1492_v26 = vmul.f32 %v3758_v23, %v4404_v32  ;;  %v1639_v14 = vrot.slane %v3760_v29, 7  ;;  %v1109_v11 = vrot.slane %v1045_v21, 1 }
 0x15c   : > { %v1495_v24 = vmul.f32 %v3761_v39, %v4419_v8  ;;  %vm5748_vm8 = vcmask 1040384   ;;  %v1640_v10 = vrot.slane %v3761_v39, 7  ;;  %v1780_v5 = vmul.f32 %v1636_v34, %v4404_v32 }
 0x15d   : > { %v1638_v56 = vsel %vm5748_vm8, %v1636_v34, %v1637_v53  ;;  %v1782_v2 = vmul.f32 %v1639_v14, %v4416_v30  ;;  %vm5749_vm7 = vcmask 1046528   ;;  %v1111_v18 = vrot.slane %v1046_v6, 1  ;;  %vm5750_vm2 = vmmov %vm5748_vm8 }
 0x15e   : > { %v1781_v3 = vmul.f32 %v1638_v56, %v4407_v45  ;;  %v1110_v28 = vsel %vm5749_vm7, %v1108_v0, %v1109_v11  ;;  %v1641_v1 = vsel %vm5750_vm2, %v1639_v14, %v1640_v10  ;;  %v1924_v62 = vrot.slane %v1780_v5, 2  ;;  %vm5752_vm11 = vmmov %vm5749_vm7 }
 0x15f   : > { %v1112_v23 = vrot.slane %v1047_v15, 1  ;;  %vm1204_vm0 = vcmp.ne.s32.totalorder %v1110_v28, 0  ;;  %v3972_v21 = vpop.eup %3971  ;;  %v1783_v58 = vmul.f32 %v1641_v1, %v4419_v8  ;;  %v1927_v53 = vrot.slane %v1782_v2, 2 }
 0x160   : > { %v1925_v57 = vrot.slane %v1781_v3, 2  ;;  %vm1205_vm15 = vcmp.ne.s32.totalorder %v1109_v11, 0  ;;  %vm5751_vm1 = vcmp.ge.f32.partialorder %v4318_v44, 0.0  ;;  %v3470_v34 = vmul.f32 %v3972_v21, %v4236_v31 }
 0x161   : > { %vm1268_vm3 = vmand %vm5751_vm1, %vm1204_vm0  ;;  %v1113_v39 = vsel %vm5752_vm11, %v1111_v18, %v1112_v23  ;;  %vm1207_vm12 = vcmp.ne.s32.totalorder %v1112_v23, 0  ;;  %vm5753_vm14 = vcmask 1045504   ;;  %v1928_v5 = vrot.slane %v1783_v58, 2 }
 0x162   : > { %vm1269_vm13 = vmand %vm917_vm4, %vm1205_vm15  ;;  %v3726_v0 = vsel %vm1268_vm3, 1.0, %v5747_v4  ;;  %v1926_v28 = vsel %vm5753_vm14, %v1924_v62, %v1925_v57  ;;  %v2069_v1 = vsub.f32 %v1493_v12, %v1925_v57  ;;  %vm1206_vm10 = vcmp.ne.s32.totalorder %v1113_v39, 0 }
 0x163   : > { %vm1271_vm9 = vmand %vm919_vm5, %vm1207_vm12  ;;  %v3905_v2 = vpack.c.bf16 %v3471_v35, %v3470_v34  ;;  %v1494_v3 = vmul.f32 %v3760_v29, %v4416_v30  ;;  %v2068_v31 = vsub.f32 %v1492_v26, %v1926_v28  ;;  %v3727_v10 = vsel %vm1269_vm13, 1.0, %v5747_v4 }
 0x164   : > { %vm1270_vm8 = vmand %vm918_vm6, %vm1206_vm10  ;;  %v2071_v14 = vsub.f32 %v1495_v24, %v1928_v5  ;;  %v2133_v6 = vmul.f32 2.5, %v2069_v1  ;;  %v3729_v12 = vsel %vm1271_vm9, 1.0, %v5747_v4  ;;  %v1460_v35 = vmul.f32 %v3726_v0, %v4318_v44 }
 0x165   : > { %vm5754_vm4 = vmmov %vm5753_vm14  ;;  %v3728_v58 = vsel %vm1270_vm8, 1.0, %v5747_v4  ;;  %3906 = vmatpush3.bf16.msra.mxu0 %v3905_v2  ;;  %v2132_v62 = vmul.f32 2.5, %v2068_v31  ;;  %v1461_v56 = vmul.f32 %v3727_v10, %v4324_v47  ;;  %v1463_v34 = vmul.f32 %v3729_v12, %v4332_v50 }
 0x166   : > { %v1929_v11 = vsel %vm5754_vm4, %v1927_v53, %v1928_v5  ;;  %v2135_v29 = vmul.f32 2.5, %v2071_v14  ;;  %v2197_v26 = vmul.f32 %v2133_v6, %v4407_v45  ;;  %v2341_v15 = vrot.slane %v2133_v6, 6  ;;  %vm5756_vm6 = vmmov %vm5750_vm2 }
 0x167   : > { %v2070_v57 = vsub.f32 %v1494_v3, %v1929_v11  ;;  %v2196_v23 = vmul.f32 %v2132_v62, %v4404_v32  ;;  %v2340_v24 = vrot.slane %v2132_v62, 6  ;;  %v1462_v21 = vmul.f32 %v3728_v58, %v4327_v48  ;;  %vm5760_vm1 = vmmov %vm5754_vm4 }
 0x168   : > { %v2344_v53 = vrot.slane %v2135_v29, 6  ;;  %v1588_v39 = vrot.slane %v3726_v0, 7  ;;  %v1589_v28 = vrot.slane %v3727_v10, 7  ;;  %v2199_v5 = vmul.f32 %v2135_v29, %v4419_v8  ;;  %vm5761_vm3 = vmmov %vm5760_vm1 }
 0x169   : > { %v2134_v18 = vmul.f32 2.5, %v2070_v57  ;;  %vm5755_vm5 = vcmask 1041408   ;;  %v2484_v3 = vmul.f32 %v2340_v24, %v4404_v32  ;;  %v1591_v14 = vrot.slane %v3728_v58, 7 }
 0x16a   : > { %v2342_v1 = vsel %vm5755_vm5, %v2340_v24, %v2341_v15  ;;  %v1590_v11 = vsel %vm5756_vm6, %v1588_v39, %v1589_v28  ;;  %v1592_v6 = vrot.slane %v3729_v12, 7  ;;  %vm5757_vm7 = vmmov %vm5755_vm5  ;;  %v1748_v0 = vmul.f32 %v1588_v39, %v4318_v44 }
 0x16b   : > { %v2343_v2 = vrot.slane %v2134_v18, 6  ;;  %v2485_v31 = vmul.f32 %v2342_v1, %v4407_v45  ;;  %v2628_v43 = vrot.slane %v2484_v3, 3  ;;  %v1749_v24 = vmul.f32 %v1590_v11, %v4324_v47  ;;  %vm5765_vm14 = vmmov %vm5755_vm5 }
 0x16c   : > { %v1593_v15 = vsel %vm5750_vm2, %v1591_v14, %v1592_v6  ;;  %v1750_v1 = vmul.f32 %v1591_v14, %v4327_v48  ;;  %v1876_v12 = vrot.slane %v1748_v0, 2  ;;  %vm5758_vm0 = vcmask 1044480   ;;  %vm5766_vm10 = vmmov %vm5755_vm5 }
 0x16d   : > { %v2345_v57 = vsel %vm5757_vm7, %v2343_v2, %v2344_v53  ;;  %v2486_v62 = vmul.f32 %v2343_v2, %v4416_v30  ;;  %v2629_v29 = vrot.slane %v2485_v31, 3  ;;  %v1751_v58 = vmul.f32 %v1593_v15, %v4332_v50  ;;  %vm5759_vm15 = vmmov %vm5758_vm0 }
 0x16e   : > { %v2487_v10 = vmul.f32 %v2345_v57, %v4419_v8  ;;  %v1877_v3 = vrot.slane %v1749_v24, 2  ;;  %v2198_v39 = vmul.f32 %v2134_v18, %v4416_v30  ;;  %v1879_v57 = vrot.slane %v1750_v1, 2  ;;  %vm5768_vm7 = vmmov %vm5758_vm0 }
 0x16f   : > { %v2631_v20 = vrot.slane %v2486_v62, 3  ;;  %v2630_v53 = vsel %vm5758_vm0, %v2628_v43, %v2629_v29  ;;  %v2773_v2 = vsub.f32 %v2197_v26, %v2629_v29  ;;  %v1880_v31 = vrot.slane %v1751_v58, 2  ;;  %vm5769_vm2 = vmmov %vm5758_vm0 }
 0x170   : > { %v2632_v28 = vrot.slane %v2487_v10, 3  ;;  %v2772_v36 = vsub.f32 %v2196_v23, %v2630_v53  ;;  %v1878_v62 = vsel %vm5760_vm1, %v1876_v12, %v1877_v3  ;;  %v2037_v26 = vsub.f32 %v1461_v56, %v1877_v3 }
 0x171   : > { %v2837_v11 = vmul.f32 1.25, %v2773_v2  ;;  %v1881_v0 = vsel %vm5761_vm3, %v1879_v57, %v1880_v31  ;;  %v2036_v15 = vsub.f32 %v1460_v35, %v1878_v62  ;;  %v4549_v18 = vsub.f32 %v4424_v38, %v4136_v19 }
 0x172   : > { %v2633_v6 = vsel %vm5759_vm15, %v2631_v20, %v2632_v28  ;;  %v2775_v37 = vsub.f32 %v2199_v5, %v2632_v28  ;;  %v2836_v33 = vmul.f32 1.25, %v2772_v36  ;;  %v2038_v29 = vsub.f32 %v1462_v21, %v1881_v0 }
 0x173   : > { %v2774_v14 = vsub.f32 %v2198_v39, %v2633_v6  ;;  %v3013_v10 = vrot.slane %v2837_v11, 5  ;;  %v2039_v20 = vsub.f32 %v1463_v34, %v1880_v31  ;;  %v4553_v5 = vsub.f32 %v4424_v38, %v4140_v22 }
 0x174   : > { %v2839_v43 = vmul.f32 1.25, %v2775_v37  ;;  %v3012_v24 = vrot.slane %v2836_v33, 5  ;;  %v2100_v36 = vmul.f32 2.5, %v2036_v15  ;;  %v2101_v58 = vmul.f32 2.5, %v2037_v26 }
 0x175   : > { %v2838_v23 = vmul.f32 1.25, %v2774_v14  ;;  %vm5762_vm11 = vcmask 1042432   ;;  %v2102_v21 = vmul.f32 2.5, %v2038_v29  ;;  %v4559_v12 = vsub.f32 %v4427_v41, %v4136_v19 }
 0x176   : > { %v3016_v1 = vrot.slane %v2839_v43, 5  ;;  %v3014_v35 = vsel %vm5762_vm11, %v3012_v24, %v3013_v10  ;;  %v3156_v56 = vmul.f32 %v3012_v24, %v4404_v32  ;;  %v2884_v53 = vmul.f32 %v2836_v33, %v4404_v32  ;;  %vm5763_vm12 = vmmov %vm5762_vm11 }
 0x177   : > { %v3015_v37 = vrot.slane %v2838_v23, 5  ;;  %v3157_v34 = vmul.f32 %v3014_v35, %v4407_v45  ;;  %v2103_v28 = vmul.f32 2.5, %v2039_v20  ;;  %v2885_v38 = vmul.f32 %v2838_v23, %v4416_v30 }
 0x178   : > { %v3300_v39 = vrot.slane %v3156_v56, 4  ;;  %v2164_v6 = vmul.f32 %v2100_v36, %v4318_v44  ;;  %v2292_v11 = vrot.slane %v2100_v36, 6  ;;  %v2293_v14 = vrot.slane %v2101_v58, 6 }
 0x179   : > { %v3017_v2 = vsel %vm5763_vm12, %v3015_v37, %v3016_v1  ;;  %v3158_v3 = vmul.f32 %v3015_v37, %v4416_v30  ;;  %v3301_v31 = vrot.slane %v3157_v34, 4  ;;  %v2295_v0 = vrot.slane %v2102_v21, 6 }
 0x17a   : > { %v3159_v57 = vmul.f32 %v3017_v2, %v4419_v8  ;;  %v2296_v33 = vrot.slane %v2103_v28, 6  ;;  %vm5764_vm13 = vcmask 1043456   ;;  %v2165_v15 = vmul.f32 %v2101_v58, %v4324_v47 }
 0x17b   : > { %v3303_v62 = vrot.slane %v3158_v3, 4  ;;  %v3302_v45 = vsel %vm5764_vm13, %v3300_v39, %v3301_v31  ;;  %v2452_v43 = vmul.f32 %v2292_v11, %v4318_v44  ;;  %v2294_v30 = vsel %vm5765_vm14, %v2292_v11, %v2293_v14  ;;  %vm5767_vm9 = vmmov %vm5764_vm13 }
 0x17c   : > { %v3304_v32 = vrot.slane %v3159_v57, 4  ;;  %v3396_v10 = vsub.f32 %v2884_v53, %v3302_v45  ;;  %v2297_v8 = vsel %vm5766_vm10, %v2295_v0, %v2296_v33  ;;  %v2454_v26 = vmul.f32 %v2295_v0, %v4327_v48 }
 0x17d   : > { %v2453_v23 = vmul.f32 %v2294_v30, %v4324_v47  ;;  %v2455_v24 = vmul.f32 %v2297_v8, %v4332_v50  ;;  %v2580_v20 = vrot.slane %v2452_v43, 3  ;;  %v2166_v36 = vmul.f32 %v2102_v21, %v4327_v48 }
 0x17e   : > { %v3305_v29 = vsel %vm5767_vm9, %v3303_v62, %v3304_v32  ;;  %v2167_v58 = vmul.f32 %v2103_v28, %v4332_v50  ;;  %v2583_v35 = vrot.slane %v2454_v26, 3  ;;  %v3428_v37 = vmul.f32 0.8333333, %v3396_v10 }
 0x17f   : > { %v3397_v1 = vsub.f32 %v2885_v38, %v3305_v29  ;;  %v2581_v56 = vrot.slane %v2453_v23, 3  ;;  %v2584_v53 = vrot.slane %v2455_v24, 3  ;;  %vm1016_vm8 = vcmp.lt.f32.partialorder %v4437_v16, 0.0 }
 0x180   : > { %vm1017_vm4 = vcmp.lt.f32.partialorder %v4440_v52, 0.0  ;;  %vm1018_vm5 = vcmp.lt.f32.partialorder %v4549_v18, 0.0  ;;  %vm1019_vm6 = vcmp.lt.f32.partialorder %v4553_v5, 0.0  ;;  %vm952_vm0 = vcmp.ge.f32.partialorder %v4437_v16, 0.0 }
 0x181   : > { %v3429_v34 = vmul.f32 0.8333333, %v3397_v1  ;;  %v2582_v2 = vsel %vm5768_vm7, %v2580_v20, %v2581_v56  ;;  %v2585_v38 = vsel %vm5769_vm2, %v2583_v35, %v2584_v53  ;;  %v2741_v21 = vsub.f32 %v2165_v15, %v2581_v56 }
 0x182   : > { %v2743_v3 = vsub.f32 %v2167_v58, %v2584_v53  ;;  %v2740_v39 = vsub.f32 %v2164_v6, %v2582_v2  ;;  %v2742_v57 = vsub.f32 %v2166_v36, %v2585_v38  ;;  %v5770_v31 = vmov 0  }
 0x183   : > { %v3869_v28 = vpack.c.bf16 %v3429_v34, %v3428_v37  ;;  %v1080_v11 = vsel %vm1016_vm8, 1, %v5770_v31  ;;  %v2805_v62 = vmul.f32 1.25, %v2741_v21  ;;  %v1081_v0 = vsel %vm1017_vm4, 1, %v5770_v31 }
 0x184   : > { %v2807_v14 = vmul.f32 1.25, %v2743_v3  ;;  %v1082_v33 = vsel %vm1018_vm5, 1, %v5770_v31  ;;  %v2804_v45 = vmul.f32 1.25, %v2740_v39  ;;  %v2806_v32 = vmul.f32 1.25, %v2742_v57 }
 0x185   : > { %3870 = vmatprep.subr.bf16.mxu1 %v3869_v28  ;;  %v1083_v15 = vsel %vm1019_vm6, 1, %v5770_v31  ;;  %v1162_v43 = vrot.slane %v1080_v11, 1  ;;  %v2965_v10 = vrot.slane %v2805_v62, 5  ;;  %v1163_v6 = vrot.slane %v1081_v0, 1 }
 0x186   : > { %v2968_v30 = vrot.slane %v2807_v14, 5  ;;  %v1165_v8 = vrot.slane %v1082_v33, 1  ;;  %v2964_v26 = vrot.slane %v2804_v45, 5  ;;  %v2967_v29 = vrot.slane %v2806_v32, 5 }
 0x187   : > { %vm953_vm15 = vcmp.ge.f32.partialorder %v4440_v52, 0.0  ;;  %vm954_vm1 = vcmp.ge.f32.partialorder %v4549_v18, 0.0  ;;  %vm955_vm3 = vcmp.ge.f32.partialorder %v4553_v5, 0.0  ;;  %vm5771_vm11 = vcmask 1046528  }
 0x188   : > { %v1164_v23 = vsel %vm5771_vm11, %v1162_v43, %v1163_v6  ;;  %v1166_v24 = vrot.slane %v1083_v15, 1  ;;  %vm1241_vm12 = vcmp.ne.s32.totalorder %v1163_v6, 0  ;;  %vm5772_vm13 = vcmask 1042432   ;;  %vm5774_vm9 = vmmov %vm5771_vm11 }
 0x189   : > { %v2966_v20 = vsel %vm5772_vm13, %v2964_v26, %v2965_v10  ;;  %vm5773_vm14 = vmmov %vm5772_vm13  ;;  %v3124_v36 = vmul.f32 %v2964_v26, %v4318_v44  ;;  %v3126_v58 = vmul.f32 %v2967_v29, %v4327_v48  ;;  %vm1240_vm8 = vcmp.ne.s32.totalorder %v1164_v23, 0 }
 0x18a   : > { %v2969_v1 = vsel %vm5773_vm14, %v2967_v29, %v2968_v30  ;;  %vm1305_vm10 = vmand %vm953_vm15, %vm1241_vm12  ;;  %v3125_v35 = vmul.f32 %v2966_v20, %v4324_v47  ;;  %v1167_v56 = vsel %vm5774_vm9, %v1165_v8, %v1166_v24  ;;  %vm1243_vm5 = vcmp.ne.s32.totalorder %v1166_v24, 0 }
 0x18b   : > { %v3127_v37 = vmul.f32 %v2969_v1, %v4332_v50  ;;  %v3252_v53 = vrot.slane %v3124_v36, 4  ;;  %v3255_v34 = vrot.slane %v3126_v58, 4  ;;  %vm1242_vm4 = vcmp.ne.s32.totalorder %v1167_v56, 0  ;;  %vm1304_vm6 = vmand %vm952_vm0, %vm1240_vm8 }
 0x18c   : > { %v3253_v2 = vrot.slane %v3125_v35, 4  ;;  %vm1306_vm7 = vmand %vm954_vm1, %vm1242_vm4  ;;  %v3762_v21 = vsel %vm1304_vm6, 1.0, %v5747_v4  ;;  %v3763_v47 = vsel %vm1305_vm10, 1.0, %v5747_v4  ;;  %v2868_v50 = vmul.f32 %v2804_v45, %v4318_v44 }
 0x18d   : > { %v3256_v38 = vrot.slane %v3127_v37, 4  ;;  %v2869_v3 = vmul.f32 %v2806_v32, %v4327_v48  ;;  %vm1307_vm2 = vmand %vm955_vm3, %vm1243_vm5  ;;  %v3764_v28 = vsel %vm1306_vm7, 1.0, %v5747_v4  ;;  %v1642_v39 = vrot.slane %v3762_v21, 7 }
 0x18e   : > { %v4616_v57 = vsub.f32 %v4427_v41, %v4140_v22  ;;  %vm5775_vm0 = vcmask 1043456   ;;  %v3765_v14 = vsel %vm1307_vm2, 1.0, %v5747_v4  ;;  %v1496_v48 = vmul.f32 %v3762_v21, %v4437_v16 }
 0x18f   : > { %v3254_v11 = vsel %vm5775_vm0, %v3252_v53, %v3253_v2  ;;  %vm5776_vm15 = vmmov %vm5775_vm0  ;;  %v1643_v33 = vrot.slane %v3763_v47, 7  ;;  %v1497_v45 = vmul.f32 %v3763_v47, %v4440_v52  ;;  %v1645_v32 = vrot.slane %v3764_v28, 7 }
 0x190   : > { %v3257_v62 = vsel %vm5776_vm15, %v3255_v34, %v3256_v38  ;;  %v3380_v0 = vsub.f32 %v2868_v50, %v3254_v11  ;;  %v1646_v15 = vrot.slane %v3765_v14, 7  ;;  %v1784_v43 = vmul.f32 %v1642_v39, %v4437_v16 }
 0x191   : > { %v3381_v44 = vsub.f32 %v2869_v3, %v3257_v62  ;;  %v1498_v30 = vmul.f32 %v3764_v28, %v4549_v18  ;;  %vm5777_vm1 = vcmask 1040384   ;;  %v1786_v29 = vmul.f32 %v1645_v32, %v4549_v18 }
 0x192   : > { %v3412_v10 = vmul.f32 0.8333333, %v3380_v0  ;;  %v1644_v6 = vsel %vm5777_vm1, %v1642_v39, %v1643_v33  ;;  %vm5778_vm3 = vmmov %vm5777_vm1  ;;  %v1930_v23 = vrot.slane %v1784_v43, 2  ;;  %v1499_v20 = vmul.f32 %v3765_v14, %v4553_v5 }
 0x193   : > { %v3413_v41 = vmul.f32 0.8333333, %v3381_v44  ;;  %v1647_v8 = vsel %vm5778_vm3, %v1645_v32, %v1646_v15  ;;  %v1785_v26 = vmul.f32 %v1644_v6, %v4440_v52  ;;  %vm984_vm11 = vcmp.lt.f32.partialorder %v4335_v51, 0.0 }
 0x194   : > { %v1787_v1 = vmul.f32 %v1647_v8, %v4553_v5  ;;  %v1933_v58 = vrot.slane %v1786_v29, 2  ;;  %vm920_vm12 = vcmp.ge.f32.partialorder %v4335_v51, 0.0  ;;  %vm985_vm13 = vcmp.lt.f32.partialorder %v4339_v54, 0.0 }
 0x195   : > { %v3871_v24 = vpack.c.bf16 %v3413_v41, %v3412_v10  ;;  %v1931_v36 = vrot.slane %v1785_v26, 2  ;;  %vm986_vm14 = vcmp.lt.f32.partialorder %v4342_v55, 0.0  ;;  %vm921_vm10 = vcmp.ge.f32.partialorder %v4339_v54, 0.0 }
 0x196   : > { %v1934_v35 = vrot.slane %v1787_v1, 2  ;;  %vm987_vm9 = vcmp.lt.f32.partialorder %v4346_v60, 0.0  ;;  %v1048_v37 = vsel %vm984_vm11, 1, %v5770_v31  ;;  %v1049_v56 = vsel %vm985_vm13, 1, %v5770_v31 }
 0x197   : > { %3872 = vmatpush3.bf16.msra.mxu1 %v3871_v24  ;;  %vm5779_vm8 = vcmask 1045504   ;;  %v2073_v34 = vsub.f32 %v1497_v45, %v1931_v36  ;;  %v1050_v2 = vsel %vm986_vm14, 1, %v5770_v31  ;;  %v1051_v38 = vsel %vm987_vm9, 1, %v5770_v31 }
 0x198   : > { %v1932_v53 = vsel %vm5779_vm8, %v1930_v23, %v1931_v36  ;;  %vm5780_vm4 = vmmov %vm5779_vm8  ;;  %v2075_v50 = vsub.f32 %v1499_v20, %v1934_v35  ;;  %v1114_v3 = vrot.slane %v1048_v37, 1  ;;  %v1115_v11 = vrot.slane %v1049_v56, 1 }
 0x199   : > { %v1935_v21 = vsel %vm5780_vm4, %v1933_v58, %v1934_v35  ;;  %v2072_v47 = vsub.f32 %v1496_v48, %v1932_v53  ;;  %v2137_v39 = vmul.f32 2.5, %v2073_v34  ;;  %v1117_v62 = vrot.slane %v1050_v2, 1 }
 0x19a   : > { %v2074_v28 = vsub.f32 %v1498_v30, %v1935_v21  ;;  %v2139_v0 = vmul.f32 2.5, %v2075_v50  ;;  %vm922_vm5 = vcmp.ge.f32.partialorder %v4342_v55, 0.0  ;;  %v1118_v44 = vrot.slane %v1051_v38, 1 }
 0x19b   : > { %v2136_v14 = vmul.f32 2.5, %v2072_v47  ;;  %v2347_v45 = vrot.slane %v2137_v39, 6  ;;  %vm923_vm6 = vcmp.ge.f32.partialorder %v4346_v60, 0.0  ;;  %vm5781_vm7 = vcmask 1046528  }
 0x19c   : > { %v2138_v33 = vmul.f32 2.5, %v2074_v28  ;;  %v1116_v32 = vsel %vm5781_vm7, %v1114_v3, %v1115_v11  ;;  %v2201_v48 = vmul.f32 %v2137_v39, %v4440_v52  ;;  %v2350_v10 = vrot.slane %v2139_v0, 6  ;;  %vm5782_vm2 = vmmov %vm5781_vm7 }
 0x19d   : > { %v2200_v15 = vmul.f32 %v2136_v14, %v4437_v16  ;;  %v2346_v43 = vrot.slane %v2136_v14, 6  ;;  %v2203_v41 = vmul.f32 %v2139_v0, %v4553_v5  ;;  %v1119_v6 = vsel %vm5782_vm2, %v1117_v62, %v1118_v44 }
 0x19e   : > { %v2349_v30 = vrot.slane %v2138_v33, 6  ;;  %vm1208_vm0 = vcmp.ne.s32.totalorder %v1116_v32, 0  ;;  %vm5783_vm15 = vcmask 1041408   ;;  %vm1209_vm1 = vcmp.ne.s32.totalorder %v1115_v11, 0 }
 0x19f   : > { %v2348_v8 = vsel %vm5783_vm15, %v2346_v43, %v2347_v45  ;;  %v2488_v26 = vmul.f32 %v2346_v43, %v4437_v16  ;;  %vm1210_vm3 = vcmp.ne.s32.totalorder %v1119_v6, 0  ;;  %vm1272_vm11 = vmand %vm920_vm12, %vm1208_vm0  ;;  %vm1211_vm14 = vcmp.ne.s32.totalorder %v1118_v44, 0 }
 0x1a0   : > { %vm5784_vm13 = vmmov %vm5783_vm15  ;;  %v2489_v23 = vmul.f32 %v2348_v8, %v4440_v52  ;;  %v2490_v24 = vmul.f32 %v2349_v30, %v4549_v18  ;;  %v3730_v36 = vsel %vm1272_vm11, 1.0, %v5747_v4  ;;  %v2202_v35 = vmul.f32 %v2138_v33, %v4549_v18 }
 0x1a1   : > { %v2351_v29 = vsel %vm5784_vm13, %v2349_v30, %v2350_v10  ;;  %vm1273_vm9 = vmand %vm921_vm10, %vm1209_vm1  ;;  %v2634_v1 = vrot.slane %v2488_v26, 3  ;;  %v1464_v38 = vmul.f32 %v3730_v36, %v4335_v51  ;;  %vm5785_vm10 = vcmask 1044480  }
 0x1a2   : > { %v2491_v20 = vmul.f32 %v2351_v29, %v4553_v5  ;;  %vm1274_vm8 = vmand %vm922_vm5, %vm1210_vm3  ;;  %v3731_v58 = vsel %vm1273_vm9, 1.0, %v5747_v4  ;;  %v2635_v37 = vrot.slane %v2489_v23, 3  ;;  %v2637_v56 = vrot.slane %v2490_v24, 3 }
 0x1a3   : > { %vm1275_vm12 = vmand %vm923_vm6, %vm1211_vm14  ;;  %v3732_v53 = vsel %vm1274_vm8, 1.0, %v5747_v4  ;;  %v1465_v21 = vmul.f32 %v3731_v58, %v4339_v54  ;;  %v1594_v28 = vrot.slane %v3730_v36, 7  ;;  %v1595_v14 = vrot.slane %v3731_v58, 7 }
 0x1a4   : > { %v2638_v34 = vrot.slane %v2491_v20, 3  ;;  %v3733_v2 = vsel %vm1275_vm12, 1.0, %v5747_v4  ;;  %v2636_v47 = vsel %vm5785_vm10, %v2634_v1, %v2635_v37  ;;  %v2777_v50 = vsub.f32 %v2201_v48, %v2635_v37  ;;  %vm5786_vm4 = vmmov %vm5785_vm10 }
 0x1a5   : > { %v1466_v3 = vmul.f32 %v3732_v53, %v4342_v55  ;;  %v2776_v11 = vsub.f32 %v2200_v15, %v2636_v47  ;;  %v1597_v33 = vrot.slane %v3732_v53, 7  ;;  %v1598_v45 = vrot.slane %v3733_v2, 7  ;;  %vm5795_vm12 = vmmov %vm5784_vm13 }
 0x1a6   : > { %v2639_v39 = vsel %vm5786_vm4, %v2637_v56, %v2638_v34  ;;  %v2779_v62 = vsub.f32 %v2203_v41, %v2638_v34  ;;  %v2841_v44 = vmul.f32 1.25, %v2777_v50  ;;  %vm5787_vm5 = vcmask 1040384  }
 0x1a7   : > { %v2778_v0 = vsub.f32 %v2202_v35, %v2639_v39  ;;  %v2840_v32 = vmul.f32 1.25, %v2776_v11  ;;  %v1596_v10 = vsel %vm5787_vm5, %v1594_v28, %v1595_v14  ;;  %v1752_v30 = vmul.f32 %v1594_v28, %v4335_v51  ;;  %vm5788_vm6 = vmmov %vm5787_vm5 }
 0x1a8   : > { %v2843_v43 = vmul.f32 1.25, %v2779_v62  ;;  %v3019_v48 = vrot.slane %v2841_v44, 5  ;;  %v1599_v8 = vsel %vm5788_vm6, %v1597_v33, %v1598_v45  ;;  %v1753_v26 = vmul.f32 %v1596_v10, %v4339_v54 }
 0x1a9   : > { %v2842_v6 = vmul.f32 1.25, %v2778_v0  ;;  %v3018_v29 = vrot.slane %v2840_v32, 5  ;;  %v1467_v41 = vmul.f32 %v3733_v2, %v4346_v60  ;;  %v1754_v23 = vmul.f32 %v1597_v33, %v4342_v55 }
 0x1aa   : > { %v3022_v15 = vrot.slane %v2843_v43, 5  ;;  %v2886_v24 = vmul.f32 %v2840_v32, %v4437_v16  ;;  %v1755_v1 = vmul.f32 %v1599_v8, %v4346_v60  ;;  %v1882_v36 = vrot.slane %v1752_v30, 2 }
 0x1ab   : > { %v3021_v20 = vrot.slane %v2842_v6, 5  ;;  %vm5789_vm7 = vcmask 1042432   ;;  %v3160_v35 = vmul.f32 %v3018_v29, %v4437_v16  ;;  %v1883_v37 = vrot.slane %v1753_v26, 2 }
 0x1ac   : > { %v3020_v58 = vsel %vm5789_vm7, %v3018_v29, %v3019_v48  ;;  %v1885_v56 = vrot.slane %v1754_v23, 2  ;;  %vm5790_vm2 = vmmov %vm5789_vm7  ;;  %v1886_v47 = vrot.slane %v1755_v1, 2  ;;  %vm5791_vm0 = vcmask 1045504  }
 0x1ad   : > { %v3023_v53 = vsel %vm5790_vm2, %v3021_v20, %v3022_v15  ;;  %v3161_v34 = vmul.f32 %v3020_v58, %v4440_v52  ;;  %v3162_v2 = vmul.f32 %v3021_v20, %v4549_v18  ;;  %v3306_v28 = vrot.slane %v3160_v35, 4  ;;  %vm5792_vm15 = vmmov %vm5791_vm0 }
 0x1ae   : > { %v3163_v50 = vmul.f32 %v3023_v53, %v4553_v5  ;;  %v1884_v39 = vsel %vm5791_vm0, %v1882_v36, %v1883_v37  ;;  %v2041_v11 = vsub.f32 %v1465_v21, %v1883_v37  ;;  %v1887_v0 = vsel %vm5792_vm15, %v1885_v56, %v1886_v47 }
 0x1af   : > { %v3307_v62 = vrot.slane %v3161_v34, 4  ;;  %v3309_v14 = vrot.slane %v3162_v2, 4  ;;  %v2040_v16 = vsub.f32 %v1464_v38, %v1884_v39  ;;  %v2042_v33 = vsub.f32 %v1466_v3, %v1887_v0 }
 0x1b0   : > { %v3310_v44 = vrot.slane %v3163_v50, 4  ;;  %v2043_v45 = vsub.f32 %v1467_v41, %v1886_v47  ;;  %v2105_v32 = vmul.f32 2.5, %v2041_v11  ;;  %v4692_v52 = vsub.f32 %v4431_v42, %v4136_v19 }
 0x1b1   : > { %v2887_v43 = vmul.f32 %v2842_v6, %v4549_v18  ;;  %vm5793_vm1 = vcmask 1043456   ;;  %v2104_v10 = vmul.f32 2.5, %v2040_v16  ;;  %v2106_v48 = vmul.f32 2.5, %v2042_v33 }
 0x1b2   : > { %v3308_v5 = vsel %vm5793_vm1, %v3306_v28, %v3307_v62  ;;  %vm5794_vm3 = vmmov %vm5793_vm1  ;;  %v2107_v8 = vmul.f32 2.5, %v2043_v45  ;;  %v4699_v38 = vsub.f32 %v4431_v42, %v4140_v22  ;;  %v2169_v41 = vmul.f32 %v2105_v32, %v4339_v54 }
 0x1b3   : > { %v3311_v21 = vsel %vm5794_vm3, %v3309_v14, %v3310_v44  ;;  %v3398_v30 = vsub.f32 %v2886_v24, %v3308_v5  ;;  %v2168_v26 = vmul.f32 %v2104_v10, %v4335_v51  ;;  %v2298_v29 = vrot.slane %v2104_v10, 6 }
 0x1b4   : > { %v3399_v3 = vsub.f32 %v2887_v43, %v3311_v21  ;;  %v2170_v18 = vmul.f32 %v2106_v48, %v4342_v55  ;;  %v2299_v6 = vrot.slane %v2105_v32, 6  ;;  %v2301_v20 = vrot.slane %v2106_v48, 6 }
 0x1b5   : > { %v3430_v15 = vmul.f32 0.8333333, %v3398_v30  ;;  %v2302_v1 = vrot.slane %v2107_v8, 6  ;;  %v2456_v24 = vmul.f32 %v2298_v29, %v4335_v51  ;;  %vm957_vm11 = vcmp.ge.f32.partialorder %v4616_v57, 0.0 }
 0x1b6   : > { %v3431_v23 = vmul.f32 0.8333333, %v3399_v3  ;;  %v2171_v42 = vmul.f32 %v2107_v8, %v4346_v60  ;;  %v2300_v36 = vsel %vm5784_vm13, %v2298_v29, %v2299_v6  ;;  %vm956_vm14 = vcmp.ge.f32.partialorder %v4559_v12, 0.0 }
 0x1b7   : > { %vm1020_vm9 = vcmp.lt.f32.partialorder %v4559_v12, 0.0  ;;  %vm1021_vm8 = vcmp.lt.f32.partialorder %v4616_v57, 0.0  ;;  %v2303_v35 = vsel %vm5795_vm12, %v2301_v20, %v2302_v1  ;;  %v2457_v37 = vmul.f32 %v2300_v36, %v4339_v54 }
 0x1b8   : > { %v3873_v58 = vpack.c.bf16 %v3431_v23, %v3430_v15  ;;  %v2458_v56 = vmul.f32 %v2301_v20, %v4342_v55  ;;  %vm958_vm10 = vcmp.ge.f32.partialorder %v4692_v52, 0.0  ;;  %v2459_v53 = vmul.f32 %v2303_v35, %v4346_v60 }
 0x1b9   : > { %v2586_v34 = vrot.slane %v2456_v24, 3  ;;  %vm1022_vm4 = vcmp.lt.f32.partialorder %v4692_v52, 0.0  ;;  %vm1023_vm5 = vcmp.lt.f32.partialorder %v4699_v38, 0.0  ;;  %v2587_v2 = vrot.slane %v2457_v37, 3 }
 0x1ba   : > { %3874 = vmatprep.subr.bf16.mxu1 %v3873_v58  ;;  %v2589_v47 = vrot.slane %v2458_v56, 3  ;;  %v1084_v50 = vsel %vm1020_vm9, 1, %v5770_v31  ;;  %v1085_v28 = vsel %vm1021_vm8, 1, %v5770_v31  ;;  %v2590_v39 = vrot.slane %v2459_v53, 3 }
 0x1bb   : > { %v1086_v11 = vsel %vm1022_vm4, 1, %v5770_v31  ;;  %v1087_v62 = vsel %vm1023_vm5, 1, %v5770_v31  ;;  %v1168_v14 = vrot.slane %v1084_v50, 1  ;;  %vm5796_vm6 = vcmask 1044480  }
 0x1bc   : > { %v2588_v0 = vsel %vm5796_vm6, %v2586_v34, %v2587_v2  ;;  %v2745_v16 = vsub.f32 %v2169_v41, %v2587_v2  ;;  %v1169_v44 = vrot.slane %v1085_v28, 1  ;;  %v1171_v33 = vrot.slane %v1086_v11, 1  ;;  %vm5797_vm7 = vmmov %vm5796_vm6 }
 0x1bd   : > { %v2591_v45 = vsel %vm5797_vm7, %v2589_v47, %v2590_v39  ;;  %v2744_v32 = vsub.f32 %v2168_v26, %v2588_v0  ;;  %v2747_v43 = vsub.f32 %v2171_v42, %v2590_v39  ;;  %v1172_v5 = vrot.slane %v1087_v62, 1 }
 0x1be   : > { %v2746_v10 = vsub.f32 %v2170_v18, %v2591_v45  ;;  %v2809_v21 = vmul.f32 1.25, %v2745_v16  ;;  %vm5798_vm2 = vcmask 1046528   ;;  %vm1245_vm0 = vcmp.ne.s32.totalorder %v1169_v44, 0 }
 0x1bf   : > { %v1170_v30 = vsel %vm5798_vm2, %v1168_v14, %v1169_v44  ;;  %v2808_v48 = vmul.f32 1.25, %v2744_v32  ;;  %v2811_v8 = vmul.f32 1.25, %v2747_v43  ;;  %vm5799_vm15 = vmmov %vm5798_vm2  ;;  %vm1247_vm9 = vcmp.ne.s32.totalorder %v1172_v5, 0 }
 0x1c0   : > { %v1173_v3 = vsel %vm5799_vm15, %v1171_v33, %v1172_v5  ;;  %vm1244_vm1 = vcmp.ne.s32.totalorder %v1170_v30, 0  ;;  %vm4728_vm3 = vmand %vm957_vm11, %vm1245_vm0  ;;  %v2810_v15 = vmul.f32 1.25, %v2746_v10  ;;  %v2971_v26 = vrot.slane %v2809_v21, 5 }
 0x1c1   : > { %vm1246_vm13 = vcmp.ne.s32.totalorder %v1173_v3, 0  ;;  %vm1308_vm8 = vmand %vm956_vm14, %vm1244_vm1  ;;  %v5802_v41 = vcombine.high %v4362_v27, %v4362_v27  ;;  %v2970_v6 = vrot.slane %v2808_v48, 5  ;;  %v2974_v23 = vrot.slane %v2811_v8, 5 }
 0x1c2   : > { %vm959_vm11 = vcmp.ge.f32.partialorder %v4699_v38, 0.0  ;;  %vm1310_vm12 = vmand %vm958_vm10, %vm1246_vm13  ;;  %v5803_v20 = vcombine.high %v4394_v59, %v4394_v59  ;;  %v4751_v24 = vsub.f32 %v4434_v49, %v4136_v19  ;;  %v2973_v27 = vrot.slane %v2810_v15, 5 }
 0x1c3   : > { %v4738_v18 = vrot.slane %v5802_v41, %v4133_v13  ;;  %vm1311_vm14 = vmand %vm959_vm11, %vm1247_vm9  ;;  %v3766_v42 = vsel %vm1308_vm8, 1.0, %v5747_v4  ;;  %vm5804_vm4 = vcmask 1042432   ;;  %v3128_v58 = vmul.f32 %v2970_v6, %v4335_v51 }
 0x1c4   : > { %v4747_v1 = vrot.slane %v5803_v20, %v4133_v13  ;;  %v2972_v36 = vsel %vm5804_vm4, %v2970_v6, %v2971_v26  ;;  %v3767_v35 = vsel %vm4728_vm3, 1.0, %v5747_v4  ;;  %v3768_v59 = vsel %vm1310_vm12, 1.0, %v5747_v4  ;;  %vm5805_vm10 = vmmov %vm5804_vm4 }
 0x1c5   : > { %v2975_v37 = vsel %vm5805_vm10, %v2973_v27, %v2974_v23  ;;  %v3129_v56 = vmul.f32 %v2972_v36, %v4339_v54  ;;  %v3130_v53 = vmul.f32 %v2973_v27, %v4342_v55  ;;  %v3769_v34 = vsel %vm1311_vm14, 1.0, %v5747_v4 }
 0x1c6   : > { %v2870_v2 = vmul.f32 %v2808_v48, %v4335_v51  ;;  %v2871_v47 = vmul.f32 %v2810_v15, %v4342_v55  ;;  %v3131_v50 = vmul.f32 %v2975_v37, %v4346_v60  ;;  %v3258_v28 = vrot.slane %v3128_v58, 4 }
 0x1c7   : > { %v3259_v39 = vrot.slane %v3129_v56, 4  ;;  %v3261_v11 = vrot.slane %v3130_v53, 4  ;;  %v1648_v62 = vrot.slane %v3766_v42, 7  ;;  %v1649_v14 = vrot.slane %v3767_v35, 7 }
 0x1c8   : > { %v3262_v0 = vrot.slane %v3131_v50, 4  ;;  %v1500_v16 = vmul.f32 %v3766_v42, %v4559_v12  ;;  %v1651_v44 = vrot.slane %v3768_v59, 7  ;;  %v1652_v54 = vrot.slane %v3769_v34, 7 }
 0x1c9   : > { %vm5806_vm5 = vcmask 1043456   ;;  %v1501_v45 = vmul.f32 %v3767_v35, %v4616_v57  ;;  %vm5807_vm6 = vcmask 1040384   ;;  %v1788_v55 = vmul.f32 %v1648_v62, %v4559_v12 }
 0x1ca   : > { %v3260_v33 = vsel %vm5806_vm5, %v3258_v28, %v3259_v39  ;;  %v1650_v51 = vsel %vm5807_vm6, %v1648_v62, %v1649_v14  ;;  %vm5808_vm7 = vmmov %vm5806_vm5  ;;  %v1790_v21 = vmul.f32 %v1651_v44, %v4692_v52  ;;  %v1502_v3 = vmul.f32 %v3768_v59, %v4692_v52 }
 0x1cb   : > { %v3263_v60 = vsel %vm5808_vm7, %v3261_v11, %v3262_v0  ;;  %v3382_v32 = vsub.f32 %v2870_v2, %v3260_v33  ;;  %vm5809_vm2 = vmmov %vm5807_vm6  ;;  %v1789_v5 = vmul.f32 %v1650_v51, %v4616_v57  ;;  %v1936_v48 = vrot.slane %v1788_v55, 2 }
 0x1cc   : > { %v1653_v43 = vsel %vm5809_vm2, %v1651_v44, %v1652_v54  ;;  %v3383_v10 = vsub.f32 %v2871_v47, %v3263_v60  ;;  %v1503_v29 = vmul.f32 %v3769_v34, %v4699_v38  ;;  %v1939_v41 = vrot.slane %v1790_v21, 2 }
 0x1cd   : > { %v1791_v30 = vmul.f32 %v1653_v43, %v4699_v38  ;;  %v3414_v8 = vmul.f32 0.8333333, %v3382_v32  ;;  %v1937_v15 = vrot.slane %v1789_v5, 2  ;;  %vm988_vm0 = vcmp.lt.f32.partialorder %v4349_v61, 0.0 }
 0x1ce   : > { %v3415_v26 = vmul.f32 0.8333333, %v3383_v10  ;;  %vm5810_vm15 = vcmask 1045504   ;;  %vm989_vm1 = vcmp.lt.f32.partialorder %v4352_v63, 0.0  ;;  %vm990_vm3 = vcmp.lt.f32.partialorder %v4356_v25, 0.0 }
 0x1cf   : > { %v1940_v6 = vrot.slane %v1791_v30, 2  ;;  %v1938_v23 = vsel %vm5810_vm15, %v1936_v48, %v1937_v15  ;;  %v2077_v20 = vsub.f32 %v1501_v45, %v1937_v15  ;;  %vm5811_vm13 = vmmov %vm5810_vm15  ;;  %vm924_vm9 = vcmp.ge.f32.partialorder %v4349_v61, 0.0 }
 0x1d0   : > { %v3875_v27 = vpack.c.bf16 %v3415_v26, %v3414_v8  ;;  %v2076_v36 = vsub.f32 %v1500_v16, %v1938_v23  ;;  %vm925_vm8 = vcmp.ge.f32.partialorder %v4352_v63, 0.0  ;;  %vm991_vm11 = vcmp.lt.f32.partialorder %v4359_v7, 0.0 }
 0x1d1   : > { %v1941_v42 = vsel %vm5811_vm13, %v1939_v41, %v1940_v6  ;;  %v2079_v58 = vsub.f32 %v1503_v29, %v1940_v6  ;;  %v2141_v59 = vmul.f32 2.5, %v2077_v20  ;;  %vm926_vm12 = vcmp.ge.f32.partialorder %v4356_v25, 0.0 }
 0x1d2   : > { %v2078_v35 = vsub.f32 %v1502_v3, %v1941_v42  ;;  %3876 = vmatpush3.bf16.msra.mxu1 %v3875_v27  ;;  %v2140_v37 = vmul.f32 2.5, %v2076_v36  ;;  %v1052_v53 = vsel %vm988_vm0, 1, %v5770_v31  ;;  %v1053_v34 = vsel %vm989_vm1, 1, %v5770_v31 }
 0x1d3   : > { %v2143_v56 = vmul.f32 2.5, %v2079_v58  ;;  %v2353_v47 = vrot.slane %v2141_v59, 6  ;;  %v1054_v50 = vsel %vm990_vm3, 1, %v5770_v31  ;;  %v1055_v28 = vsel %vm991_vm11, 1, %v5770_v31 }
 0x1d4   : > { %v2142_v2 = vmul.f32 2.5, %v2078_v35  ;;  %v2205_v39 = vmul.f32 %v2141_v59, %v4616_v57  ;;  %v2352_v11 = vrot.slane %v2140_v37, 6  ;;  %vm927_vm14 = vcmp.ge.f32.partialorder %v4359_v7, 0.0 }
 0x1d5   : > { %v2356_v62 = vrot.slane %v2143_v56, 6  ;;  %v2204_v14 = vmul.f32 %v2140_v37, %v4559_v12  ;;  %v1120_v16 = vrot.slane %v1052_v53, 1  ;;  %v1121_v44 = vrot.slane %v1053_v34, 1 }
 0x1d6   : > { %v2355_v0 = vrot.slane %v2142_v2, 6  ;;  %vm5812_vm4 = vcmask 1041408   ;;  %v2492_v33 = vmul.f32 %v2352_v11, %v4559_v12  ;;  %v1123_v45 = vrot.slane %v1054_v50, 1 }
 0x1d7   : > { %v2354_v54 = vsel %vm5812_vm4, %v2352_v11, %v2353_v47  ;;  %v1124_v51 = vrot.slane %v1055_v28, 1  ;;  %vm5813_vm10 = vmmov %vm5812_vm4  ;;  %vm5814_vm5 = vcmask 1046528   ;;  %vm1213_vm2 = vcmp.ne.s32.totalorder %v1121_v44, 0 }
 0x1d8   : > { %v2357_v55 = vsel %vm5813_vm10, %v2355_v0, %v2356_v62  ;;  %v2493_v60 = vmul.f32 %v2354_v54, %v4616_v57  ;;  %v2494_v32 = vmul.f32 %v2355_v0, %v4692_v52  ;;  %v1122_v43 = vsel %vm5814_vm5, %v1120_v16, %v1121_v44  ;;  %vm5815_vm6 = vmmov %vm5814_vm5 }
 0x1d9   : > { %v2495_v5 = vmul.f32 %v2357_v55, %v4699_v38  ;;  %v2640_v10 = vrot.slane %v2492_v33, 3  ;;  %v1125_v21 = vsel %vm5815_vm6, %v1123_v45, %v1124_v51  ;;  %vm1212_vm7 = vcmp.ne.s32.totalorder %v1122_v43, 0  ;;  %vm1277_vm3 = vmand %vm925_vm8, %vm1213_vm2 }
 0x1da   : > { %v2641_v30 = vrot.slane %v2493_v60, 3  ;;  %v2643_v48 = vrot.slane %v2494_v32, 3  ;;  %vm1214_vm0 = vcmp.ne.s32.totalorder %v1125_v21, 0  ;;  %vm1276_vm15 = vmand %vm924_vm9, %vm1212_vm7  ;;  %v2207_v8 = vmul.f32 %v2143_v56, %v4699_v38 }
 0x1db   : > { %v2644_v3 = vrot.slane %v2495_v5, 3  ;;  %vm1215_vm1 = vcmp.ne.s32.totalorder %v1124_v51, 0  ;;  %v3734_v29 = vsel %vm1276_vm15, 1.0, %v5747_v4  ;;  %v2206_v15 = vmul.f32 %v2142_v2, %v4692_v52  ;;  %vm1278_vm11 = vmand %vm926_vm12, %vm1214_vm0 }
 0x1dc   : > { %vm5816_vm13 = vcmask 1044480   ;;  %v2781_v41 = vsub.f32 %v2205_v39, %v2641_v30  ;;  %v3735_v6 = vsel %vm1277_vm3, 1.0, %v5747_v4  ;;  %v4822_v23 = vsub.f32 %v4434_v49, %v4140_v22  ;;  %vm1279_vm8 = vmand %vm927_vm14, %vm1215_vm1 }
 0x1dd   : > { %v2642_v26 = vsel %vm5816_vm13, %v2640_v10, %v2641_v30  ;;  %vm5817_vm9 = vmmov %vm5816_vm13  ;;  %v2783_v42 = vsub.f32 %v2207_v8, %v2644_v3  ;;  %v3736_v35 = vsel %vm1278_vm11, 1.0, %v5747_v4  ;;  %v1468_v59 = vmul.f32 %v3734_v29, %v4349_v61 }
 0x1de   : > { %v2645_v20 = vsel %vm5817_vm9, %v2643_v48, %v2644_v3  ;;  %v2780_v27 = vsub.f32 %v2204_v14, %v2642_v26  ;;  %v2845_v58 = vmul.f32 1.25, %v2781_v41  ;;  %v3737_v53 = vsel %vm1279_vm8, 1.0, %v5747_v4 }
 0x1df   : > { %v2782_v36 = vsub.f32 %v2206_v15, %v2645_v20  ;;  %v2847_v56 = vmul.f32 1.25, %v2783_v42  ;;  %v1469_v49 = vmul.f32 %v3735_v6, %v4352_v63  ;;  %v1600_v47 = vrot.slane %v3734_v29, 7 }
 0x1e0   : > { %v2844_v37 = vmul.f32 1.25, %v2780_v27  ;;  %v3025_v2 = vrot.slane %v2845_v58, 5  ;;  %v1601_v50 = vrot.slane %v3735_v6, 7  ;;  %v1470_v11 = vmul.f32 %v3736_v35, %v4356_v25 }
 0x1e1   : > { %v2846_v34 = vmul.f32 1.25, %v2782_v36  ;;  %v3028_v39 = vrot.slane %v2847_v56, 5  ;;  %v1603_v62 = vrot.slane %v3736_v35, 7  ;;  %v1471_v0 = vmul.f32 %v3737_v53, %v4359_v7 }
 0x1e2   : > { %v3024_v28 = vrot.slane %v2844_v37, 5  ;;  %vm5818_vm12 = vcmask 1040384   ;;  %v1604_v44 = vrot.slane %v3737_v53, 7  ;;  %vm5819_vm14 = vcmask 1042432  }
 0x1e3   : > { %v3027_v14 = vrot.slane %v2846_v34, 5  ;;  %v1602_v16 = vsel %vm5818_vm12, %v1600_v47, %v1601_v50  ;;  %v1756_v45 = vmul.f32 %v1600_v47, %v4349_v61  ;;  %vm5820_vm4 = vmmov %vm5819_vm14  ;;  %v1758_v21 = vmul.f32 %v1603_v62, %v4356_v25 }
 0x1e4   : > { %v3026_v54 = vsel %vm5819_vm14, %v3024_v28, %v3025_v2  ;;  %v3164_v33 = vmul.f32 %v3024_v28, %v4559_v12  ;;  %v1757_v51 = vmul.f32 %v1602_v16, %v4352_v63  ;;  %vm5821_vm10 = vmmov %vm5818_vm12  ;;  %v2888_v15 = vmul.f32 %v2844_v37, %v4559_v12 }
 0x1e5   : > { %v3029_v55 = vsel %vm5820_vm4, %v3027_v14, %v3028_v39  ;;  %v3165_v60 = vmul.f32 %v3026_v54, %v4616_v57  ;;  %v3166_v32 = vmul.f32 %v3027_v14, %v4692_v52  ;;  %v1605_v43 = vsel %vm5821_vm10, %v1603_v62, %v1604_v44 }
 0x1e6   : > { %v3167_v5 = vmul.f32 %v3029_v55, %v4699_v38  ;;  %v3312_v10 = vrot.slane %v3164_v33, 4  ;;  %v1759_v30 = vmul.f32 %v1605_v43, %v4359_v7  ;;  %v1888_v3 = vrot.slane %v1756_v45, 2 }
 0x1e7   : > { %v3313_v48 = vrot.slane %v3165_v60, 4  ;;  %v3315_v8 = vrot.slane %v3166_v32, 4  ;;  %v1889_v29 = vrot.slane %v1757_v51, 2  ;;  %v1891_v41 = vrot.slane %v1758_v21, 2 }
 0x1e8   : > { %v3316_v26 = vrot.slane %v3167_v5, 4  ;;  %v1892_v57 = vrot.slane %v1759_v30, 2  ;;  %v2889_v6 = vmul.f32 %v2846_v34, %v4692_v52  ;;  %vm5822_vm5 = vcmask 1043456  }
 0x1e9   : > { %v3314_v20 = vsel %vm5822_vm5, %v3312_v10, %v3313_v48  ;;  %vm5823_vm6 = vcmask 1045504   ;;  %v2045_v27 = vsub.f32 %v1469_v49, %v1889_v29  ;;  %vm5824_vm7 = vmmov %vm5822_vm5  ;;  %v4853_v37 = vsub.f32 %v4747_v1, %v4136_v19 }
 0x1ea   : > { %v1890_v38 = vsel %vm5823_vm6, %v1888_v3, %v1889_v29  ;;  %v3317_v42 = vsel %vm5824_vm7, %v3315_v8, %v3316_v26  ;;  %v3400_v36 = vsub.f32 %v2888_v15, %v3314_v20  ;;  %vm5825_vm2 = vmmov %vm5823_vm6  ;;  %v2047_v2 = vsub.f32 %v1471_v0, %v1892_v57 }
 0x1eb   : > { %v1893_v58 = vsel %vm5825_vm2, %v1891_v41, %v1892_v57  ;;  %v2044_v35 = vsub.f32 %v1468_v59, %v1890_v38  ;;  %v3401_v56 = vsub.f32 %v2889_v6, %v3317_v42  ;;  %v2109_v12 = vmul.f32 2.5, %v2045_v27 }
 0x1ec   : > { %v2046_v53 = vsub.f32 %v1470_v11, %v1893_v58  ;;  %v4857_v52 = vsub.f32 %v4747_v1, %v4140_v22  ;;  %v3432_v34 = vmul.f32 0.8333333, %v3400_v36  ;;  %v2111_v28 = vmul.f32 2.5, %v2047_v2 }
 0x1ed   : > { %v2108_v49 = vmul.f32 2.5, %v2044_v35  ;;  %v3433_v47 = vmul.f32 0.8333333, %v3401_v56  ;;  %vm1024_vm0 = vcmp.lt.f32.partialorder %v4751_v24, 0.0  ;;  %v2173_v39 = vmul.f32 %v2109_v12, %v4352_v63 }
 0x1ee   : > { %v2110_v50 = vmul.f32 2.5, %v2046_v53  ;;  %v2305_v62 = vrot.slane %v2109_v12, 6  ;;  %vm961_vm15 = vcmp.ge.f32.partialorder %v4822_v23, 0.0  ;;  %vm960_vm1 = vcmp.ge.f32.partialorder %v4751_v24, 0.0 }
 0x1ef   : > { %v2172_v59 = vmul.f32 %v2108_v49, %v4349_v61  ;;  %v2304_v11 = vrot.slane %v2108_v49, 6  ;;  %v3877_v14 = vpack.c.bf16 %v3433_v47, %v3432_v34  ;;  %vm1025_vm3 = vcmp.lt.f32.partialorder %v4822_v23, 0.0 }
 0x1f0   : > { %v2174_v0 = vmul.f32 %v2110_v50, %v4356_v25  ;;  %v2307_v1 = vrot.slane %v2110_v50, 6  ;;  %vm5826_vm13 = vcmask 1041408   ;;  %v2308_v44 = vrot.slane %v2111_v28, 6 }
 0x1f1   : > { %v2306_v16 = vsel %vm5826_vm13, %v2304_v11, %v2305_v62  ;;  %v2460_v54 = vmul.f32 %v2304_v11, %v4349_v61  ;;  %vm962_vm11 = vcmp.ge.f32.partialorder %v4853_v37, 0.0  ;;  %vm1026_vm9 = vcmp.lt.f32.partialorder %v4853_v37, 0.0  ;;  %3878 = vmatprep.subr.bf16.mxu1 %v3877_v14  ;;  %vm5827_vm12 = vmmov %vm5826_vm13 }
 0x1f2   : > { %v2461_v33 = vmul.f32 %v2306_v16, %v4352_v63  ;;  %v2462_v45 = vmul.f32 %v2307_v1, %v4356_v25  ;;  %vm1027_vm8 = vcmp.lt.f32.partialorder %v4857_v52, 0.0  ;;  %v1088_v51 = vsel %vm1024_vm0, 1, %v5770_v31 }
 0x1f3   : > { %v2309_v55 = vsel %vm5827_vm12, %v2307_v1, %v2308_v44  ;;  %v2592_v60 = vrot.slane %v2460_v54, 3  ;;  %v1089_v32 = vsel %vm1025_vm3, 1, %v5770_v31  ;;  %v1090_v43 = vsel %vm1026_vm9, 1, %v5770_v31 }
 0x1f4   : > { %v2463_v5 = vmul.f32 %v2309_v55, %v4359_v7  ;;  %v2593_v10 = vrot.slane %v2461_v33, 3  ;;  %v2595_v21 = vrot.slane %v2462_v45, 3  ;;  %v1091_v30 = vsel %vm1027_vm8, 1, %v5770_v31 }
 0x1f5   : > { %v1174_v48 = vrot.slane %v1088_v51, 1  ;;  %v1175_v8 = vrot.slane %v1089_v32, 1  ;;  %v1177_v3 = vrot.slane %v1090_v43, 1  ;;  %v1178_v29 = vrot.slane %v1091_v30, 1 }
 0x1f6   : > { %v2175_v15 = vmul.f32 %v2111_v28, %v4359_v7  ;;  %vm5828_vm14 = vcmask 1044480   ;;  %v2596_v41 = vrot.slane %v2463_v5, 3  ;;  %v2749_v57 = vsub.f32 %v2173_v39, %v2593_v10 }
 0x1f7   : > { %v2594_v26 = vsel %vm5828_vm14, %v2592_v60, %v2593_v10  ;;  %vm5829_vm4 = vcmask 1046528   ;;  %vm1249_vm5 = vcmp.ne.s32.totalorder %v1175_v8, 0  ;;  %vm5831_vm6 = vmmov %vm5828_vm14  ;;  %vm1251_vm3 = vcmp.ne.s32.totalorder %v1178_v29, 0 }
 0x1f8   : > { %v2748_v6 = vsub.f32 %v2172_v59, %v2594_v26  ;;  %v1176_v20 = vsel %vm5829_vm4, %v1174_v48, %v1175_v8  ;;  %vm5830_vm10 = vmmov %vm5829_vm4  ;;  %v2597_v27 = vsel %vm5831_vm6, %v2595_v21, %v2596_v41  ;;  %v2751_v42 = vsub.f32 %v2175_v15, %v2596_v41 }
 0x1f9   : > { %v1179_v38 = vsel %vm5830_vm10, %v1177_v3, %v1178_v29  ;;  %v2813_v36 = vmul.f32 1.25, %v2749_v57  ;;  %vm1248_vm7 = vcmp.ne.s32.totalorder %v1176_v20, 0  ;;  %vm1313_vm2 = vmand %vm961_vm15, %vm1249_vm5  ;;  %v2750_v58 = vsub.f32 %v2174_v0, %v2597_v27 }
 0x1fa   : > { %v2812_v35 = vmul.f32 1.25, %v2748_v6  ;;  %vm1250_vm0 = vcmp.ne.s32.totalorder %v1179_v38, 0  ;;  %vm1312_vm13 = vmand %vm960_vm1, %vm1248_vm7  ;;  %v4892_v56 = vrot.slane %v4379_v40, %v4133_v13  ;;  %v2815_v53 = vmul.f32 1.25, %v2751_v42 }
 0x1fb   : > { %v2977_v2 = vrot.slane %v2813_v36, 5  ;;  %vm963_vm9 = vcmp.ge.f32.partialorder %v4857_v52, 0.0  ;;  %vm1314_vm8 = vmand %vm962_vm11, %vm1250_vm0  ;;  %v2814_v12 = vmul.f32 1.25, %v2750_v58  ;;  %v3770_v49 = vsel %vm1312_vm13, 1.0, %v5747_v4 }
 0x1fc   : > { %v2976_v34 = vrot.slane %v2812_v35, 5  ;;  %vm1315_vm15 = vmand %vm963_vm9, %vm1251_vm3  ;;  %v3771_v47 = vsel %vm1313_vm2, 1.0, %v5747_v4  ;;  %v4901_v50 = vsub.f32 %v4391_v46, %v4136_v19  ;;  %v2872_v28 = vmul.f32 %v2812_v35, %v4349_v61 }
 0x1fd   : > { %v2980_v59 = vrot.slane %v2815_v53, 5  ;;  %v3772_v39 = vsel %vm1314_vm8, 1.0, %v5747_v4  ;;  %vm5832_vm1 = vcmask 1042432   ;;  %v2979_v62 = vrot.slane %v2814_v12, 5 }
 0x1fe   : > { %v2978_v11 = vsel %vm5832_vm1, %v2976_v34, %v2977_v2  ;;  %v3132_v14 = vmul.f32 %v2976_v34, %v4349_v61  ;;  %v3773_v0 = vsel %vm1315_vm15, 1.0, %v5747_v4  ;;  %v1504_v16 = vmul.f32 %v3770_v49, %v4751_v24  ;;  %vm5833_vm11 = vmmov %vm5832_vm1 }
 0x1ff   : > { %v3133_v1 = vmul.f32 %v2978_v11, %v4352_v63  ;;  %v1505_v44 = vmul.f32 %v3771_v47, %v4822_v23  ;;  %v1654_v54 = vrot.slane %v3770_v49, 7  ;;  %v2981_v33 = vsel %vm5833_vm11, %v2979_v62, %v2980_v59  ;;  %v5841_v11 = vld [vmem:[#allocation22_spill] sm:$0xff] }
 0x200   : > { %v3134_v45 = vmul.f32 %v2979_v62, %v4356_v25  ;;  %v3264_v51 = vrot.slane %v3132_v14, 4  ;;  %v1655_v55 = vrot.slane %v3771_v47, 7  ;;  %v3135_v60 = vmul.f32 %v2981_v33, %v4359_v7  ;;  %v5840_v47 = vld [vmem:[#allocation21_spill] sm:$0xff] }
 0x201   : > { %v3265_v32 = vrot.slane %v3133_v1, 4  ;;  %v1657_v43 = vrot.slane %v3772_v39, 7  ;;  %v1658_v61 = vrot.slane %v3773_v0, 7  ;;  %v2873_v5 = vmul.f32 %v2814_v12, %v4356_v25 }
 0x202   : > { %v3267_v10 = vrot.slane %v3134_v45, 4  ;;  %vm5834_vm12 = vcmask 1040384   ;;  %v1792_v21 = vmul.f32 %v1654_v54, %v4751_v24  ;;  %vm5835_vm14 = vcmask 1043456  }
 0x203   : > { %v1656_v63 = vsel %vm5834_vm12, %v1654_v54, %v1655_v55  ;;  %v3266_v30 = vsel %vm5835_vm14, %v3264_v51, %v3265_v32  ;;  %v3268_v48 = vrot.slane %v3135_v60, 4  ;;  %vm5836_vm4 = vmmov %vm5834_vm12  ;;  %v1794_v7 = vmul.f32 %v1657_v43, %v4853_v37 }
 0x204   : > { %v1659_v8 = vsel %vm5836_vm4, %v1657_v43, %v1658_v61  ;;  %v1793_v3 = vmul.f32 %v1656_v63, %v4822_v23  ;;  %v3384_v29 = vsub.f32 %v2872_v28, %v3266_v30  ;;  %v1942_v26 = vrot.slane %v1792_v21, 2  ;;  %vm5837_vm10 = vmmov %vm5835_vm14 }
 0x205   : > { %v1795_v15 = vmul.f32 %v1659_v8, %v4857_v52  ;;  %v3269_v25 = vsel %vm5837_vm10, %v3267_v10, %v3268_v48  ;;  %v1506_v41 = vmul.f32 %v3772_v39, %v4853_v37  ;;  %v1507_v57 = vmul.f32 %v3773_v0, %v4857_v52 }
 0x206   : > { %v1943_v6 = vrot.slane %v1793_v3, 2  ;;  %v3385_v20 = vsub.f32 %v2873_v5, %v3269_v25  ;;  %v3416_v38 = vmul.f32 0.8333333, %v3384_v29  ;;  %v1945_v27 = vrot.slane %v1794_v7, 2 }
 0x207   : > { %v1946_v42 = vrot.slane %v1795_v15, 2  ;;  %vm5838_vm5 = vcmask 1045504   ;;  %vm992_vm6 = vcmp.lt.f32.partialorder %v4365_v9, 0.0  ;;  %vm993_vm7 = vcmp.lt.f32.partialorder %v4368_v17, 0.0 }
 0x208   : > { %v1944_v36 = vsel %vm5838_vm5, %v1942_v26, %v1943_v6  ;;  %v2081_v58 = vsub.f32 %v1505_v44, %v1943_v6  ;;  %v3417_v35 = vmul.f32 0.8333333, %v3385_v20  ;;  %vm5839_vm2 = vmmov %vm5838_vm5  ;;  %vm928_vm0 = vcmp.ge.f32.partialorder %v4365_v9, 0.0 }
 0x209   : > { %v1947_v53 = vsel %vm5839_vm2, %v1945_v27, %v1946_v42  ;;  %v2080_v2 = vsub.f32 %v1504_v16, %v1944_v36  ;;  %v2083_v12 = vsub.f32 %v1507_v57, %v1946_v42  ;;  %vm994_vm3 = vcmp.lt.f32.partialorder %v5840_v47, 0.0 }
 0x20a   : > { %v2082_v34 = vsub.f32 %v1506_v41, %v1947_v53  ;;  %v2145_v49 = vmul.f32 2.5, %v2081_v58  ;;  %v3879_v28 = vpack.c.bf16 %v3417_v35, %v3416_v38  ;;  %vm929_vm13 = vcmp.ge.f32.partialorder %v4368_v17, 0.0  ;;  %v5850_v35 = vld [vmem:[#allocation24_spill] sm:$0xff] }
 0x20b   : > { %v2144_v59 = vmul.f32 2.5, %v2080_v2  ;;  %v2147_v39 = vmul.f32 2.5, %v2083_v12  ;;  %vm995_vm9 = vcmp.lt.f32.partialorder %v5841_v11, 0.0  ;;  %vm930_vm8 = vcmp.ge.f32.partialorder %v5840_v47, 0.0 }
 0x20c   : > { %v2146_v62 = vmul.f32 2.5, %v2082_v34  ;;  %v2359_v14 = vrot.slane %v2145_v49, 6  ;;  %v1056_v0 = vsel %vm992_vm6, 1, %v5770_v31  ;;  %v1057_v1 = vsel %vm993_vm7, 1, %v5770_v31  ;;  %3880 = vmatpush3.bf16.msra.mxu1 %v3879_v28 }
 0x20d   : > { %v2208_v16 = vmul.f32 %v2144_v59, %v4751_v24  ;;  %v2209_v44 = vmul.f32 %v2145_v49, %v4822_v23  ;;  %v2358_v54 = vrot.slane %v2144_v59, 6  ;;  %v2362_v33 = vrot.slane %v2147_v39, 6 }
 0x20e   : > { %vm931_vm15 = vcmp.ge.f32.partialorder %v5841_v11, 0.0  ;;  %v2211_v45 = vmul.f32 %v2147_v39, %v4857_v52  ;;  %v2361_v51 = vrot.slane %v2146_v62, 6  ;;  %v1058_v55 = vsel %vm994_vm3, 1, %v5770_v31 }
 0x20f   : > { %v1059_v60 = vsel %vm995_vm9, 1, %v5770_v31  ;;  %vm5842_vm1 = vcmask 1041408   ;;  %v2496_v43 = vmul.f32 %v2358_v54, %v4751_v24  ;;  %v1126_v61 = vrot.slane %v1056_v0, 1 }
 0x210   : > { %v2360_v32 = vsel %vm5842_vm1, %v2358_v54, %v2359_v14  ;;  %v1127_v5 = vrot.slane %v1057_v1, 1  ;;  %vm5843_vm11 = vmmov %vm5842_vm1  ;;  %v2498_v21 = vmul.f32 %v2361_v51, %v4853_v37  ;;  %v1129_v30 = vrot.slane %v1058_v55, 1 }
 0x211   : > { %v2363_v10 = vsel %vm5843_vm11, %v2361_v51, %v2362_v33  ;;  %v2497_v63 = vmul.f32 %v2360_v32, %v4822_v23  ;;  %v2646_v8 = vrot.slane %v2496_v43, 3  ;;  %vm5844_vm12 = vcmask 1046528  }
 0x212   : > { %v2499_v48 = vmul.f32 %v2363_v10, %v4857_v52  ;;  %v1128_v3 = vsel %vm5844_vm12, %v1126_v61, %v1127_v5  ;;  %v1130_v29 = vrot.slane %v1059_v60, 1  ;;  %v2649_v15 = vrot.slane %v2498_v21, 3  ;;  %vm5845_vm10 = vmmov %vm5844_vm12 }
 0x213   : > { %v2647_v7 = vrot.slane %v2497_v63, 3  ;;  %vm1216_vm14 = vcmp.ne.s32.totalorder %v1128_v3, 0  ;;  %vm1217_vm4 = vcmp.ne.s32.totalorder %v1127_v5, 0  ;;  %v2210_v26 = vmul.f32 %v2146_v62, %v4853_v37 }
 0x214   : > { %v2650_v25 = vrot.slane %v2499_v48, 3  ;;  %v1131_v41 = vsel %vm5845_vm10, %v1129_v30, %v1130_v29  ;;  %vm4957_vm5 = vcmp.ne.s32.totalorder %v1130_v29, 0  ;;  %vm1280_vm6 = vmand %vm928_vm0, %vm1216_vm14  ;;  %vm5848_vm7 = vcmask 1044480  }
 0x215   : > { %v2648_v6 = vsel %vm5848_vm7, %v2646_v8, %v2647_v7  ;;  %v2785_v20 = vsub.f32 %v2209_v44, %v2647_v7  ;;  %vm1218_vm2 = vcmp.ne.s32.totalorder %v1131_v41, 0  ;;  %vm1281_vm3 = vmand %vm929_vm13, %vm1217_vm4  ;;  %v3738_v38 = vsel %vm1280_vm6, 1.0, %v5747_v4 }
 0x216   : > { %vm5849_vm9 = vmmov %vm5848_vm7  ;;  %v2784_v42 = vsub.f32 %v2208_v16, %v2648_v6  ;;  %v2787_v36 = vsub.f32 %v2211_v45, %v2650_v25  ;;  %v3739_v58 = vsel %vm1281_vm3, 1.0, %v5747_v4  ;;  %v691_v53 = vcombine.high %v5850_v35, %v5850_v35 }
 0x217   : > { %v2651_v27 = vsel %vm5849_vm9, %v2649_v15, %v2650_v25  ;;  %vm1282_vm1 = vmand %vm930_vm8, %vm1218_vm2  ;;  %v2849_v12 = vmul.f32 1.25, %v2785_v20  ;;  %v4980_v49 = vsub.f32 %v4391_v46, %v4140_v22  ;;  %v1472_v0 = vmul.f32 %v3738_v38, %v4365_v9 }
 0x218   : > { %v2786_v2 = vsub.f32 %v2210_v26, %v2651_v27  ;;  %vm1283_vm0 = vmand %vm931_vm15, %vm4957_vm5  ;;  %v3740_v34 = vsel %vm1282_vm1, 1.0, %v5747_v4  ;;  %v2848_v28 = vmul.f32 1.25, %v2784_v42  ;;  %v2851_v59 = vmul.f32 1.25, %v2787_v36 }
 0x219   : > { %v3741_v39 = vsel %vm1283_vm0, 1.0, %v5747_v4  ;;  %v3031_v14 = vrot.slane %v2849_v12, 5  ;;  %v1473_v1 = vmul.f32 %v3739_v58, %v4368_v17  ;;  %v1474_v54 = vmul.f32 %v3740_v34, %v5840_v47 }
 0x21a   : > { %v2850_v62 = vmul.f32 1.25, %v2786_v2  ;;  %v3030_v16 = vrot.slane %v2848_v28, 5  ;;  %v3034_v44 = vrot.slane %v2851_v59, 5  ;;  %v1606_v33 = vrot.slane %v3738_v38, 7 }
 0x21b   : > { %v1475_v51 = vmul.f32 %v3741_v39, %v5841_v11  ;;  %v1607_v46 = vrot.slane %v3739_v58, 7  ;;  %v1609_v55 = vrot.slane %v3740_v34, 7  ;;  %vm5851_vm13 = vcmask 1042432  }
 0x21c   : > { %v3033_v45 = vrot.slane %v2850_v62, 5  ;;  %v3032_v60 = vsel %vm5851_vm13, %v3030_v16, %v3031_v14  ;;  %v3168_v32 = vmul.f32 %v3030_v16, %v4751_v24  ;;  %v1610_v43 = vrot.slane %v3741_v39, 7  ;;  %vm5852_vm8 = vmmov %vm5851_vm13 }
 0x21d   : > { %v1760_v61 = vmul.f32 %v1606_v33, %v4365_v9  ;;  %v3169_v10 = vmul.f32 %v3032_v60, %v4822_v23  ;;  %vm5853_vm15 = vcmask 1040384   ;;  %v1762_v15 = vmul.f32 %v1609_v55, %v5840_v47 }
 0x21e   : > { %v3035_v5 = vsel %vm5852_vm8, %v3033_v45, %v3034_v44  ;;  %v3170_v63 = vmul.f32 %v3033_v45, %v4853_v37  ;;  %v1608_v21 = vsel %vm5853_vm15, %v1606_v33, %v1607_v46  ;;  %v3318_v48 = vrot.slane %v3168_v32, 4  ;;  %vm5854_vm11 = vmmov %vm5853_vm15 }
 0x21f   : > { %v3171_v30 = vmul.f32 %v3035_v5, %v4857_v52  ;;  %v1611_v8 = vsel %vm5854_vm11, %v1609_v55, %v1610_v43  ;;  %v1761_v3 = vmul.f32 %v1608_v21, %v4368_v17  ;;  %v3319_v29 = vrot.slane %v3169_v10, 4 }
 0x220   : > { %v3321_v7 = vrot.slane %v3170_v63, 4  ;;  %v1763_v26 = vmul.f32 %v1611_v8, %v5841_v11  ;;  %v2890_v25 = vmul.f32 %v2848_v28, %v4751_v24  ;;  %v1894_v41 = vrot.slane %v1760_v61, 2  ;;  %v5859_v28 = vld [vmem:[#allocation25_spill] sm:$0xff] }
 0x221   : > { %v3322_v23 = vrot.slane %v3171_v30, 4  ;;  %v1895_v57 = vrot.slane %v1761_v3, 2  ;;  %v2891_v6 = vmul.f32 %v2850_v62, %v4853_v37  ;;  %vm5855_vm12 = vcmask 1043456  }
 0x222   : > { %v3320_v52 = vsel %vm5855_vm12, %v3318_v48, %v3319_v29  ;;  %v1897_v20 = vrot.slane %v1762_v15, 2  ;;  %v1898_v38 = vrot.slane %v1763_v26, 2  ;;  %vm5856_vm14 = vmmov %vm5855_vm12  ;;  %vm5857_vm4 = vcmask 1045504  }
 0x223   : > { %v3323_v27 = vsel %vm5856_vm14, %v3321_v7, %v3322_v23  ;;  %v3402_v42 = vsub.f32 %v2890_v25, %v3320_v52  ;;  %v1896_v36 = vsel %vm5857_vm4, %v1894_v41, %v1895_v57  ;;  %v2049_v58 = vsub.f32 %v1473_v1, %v1895_v57  ;;  %vm5858_vm10 = vmmov %vm5857_vm4 }
 0x224   : > { %v3403_v2 = vsub.f32 %v2891_v6, %v3323_v27  ;;  %v1899_v12 = vsel %vm5858_vm10, %v1897_v20, %v1898_v38  ;;  %v2048_v34 = vsub.f32 %v1472_v0, %v1896_v36  ;;  %v2051_v24 = vsub.f32 %v1475_v51, %v1898_v38 }
 0x225   : > { %v5007_v59 = vsub.f32 %v5859_v28, %v4136_v19  ;;  %v5011_v37 = vsub.f32 %v5859_v28, %v4140_v22  ;;  %v2050_v39 = vsub.f32 %v1474_v54, %v1899_v12  ;;  %v2113_v62 = vmul.f32 2.5, %v2049_v58 }
 0x226   : > { %v3434_v14 = vmul.f32 0.8333333, %v3402_v42  ;;  %v3435_v16 = vmul.f32 0.8333333, %v3403_v2  ;;  %v2112_v44 = vmul.f32 2.5, %v2048_v34  ;;  %v2115_v33 = vmul.f32 2.5, %v2051_v24 }
 0x227   : > { %v2114_v1 = vmul.f32 2.5, %v2050_v39  ;;  %v2177_v45 = vmul.f32 %v2113_v62, %v4368_v17  ;;  %v2311_v46 = vrot.slane %v2113_v62, 6  ;;  %vm965_vm5 = vcmp.ge.f32.partialorder %v4980_v49, 0.0  ;;  %v5866_v39 = vld [vmem:[#allocation23_spill] sm:$0xff] }
 0x228   : > { %vm1028_vm6 = vcmp.lt.f32.partialorder %v4901_v50, 0.0  ;;  %v3881_v0 = vpack.c.bf16 %v3435_v16, %v3434_v14  ;;  %v2176_v51 = vmul.f32 %v2112_v44, %v4365_v9  ;;  %v2310_v55 = vrot.slane %v2112_v44, 6 }
 0x229   : > { %vm1029_vm7 = vcmp.lt.f32.partialorder %v4980_v49, 0.0  ;;  %v2179_v54 = vmul.f32 %v2115_v33, %v5841_v11  ;;  %v2313_v60 = vrot.slane %v2114_v1, 6  ;;  %v2314_v32 = vrot.slane %v2115_v33, 6 }
 0x22a   : > { %vm964_vm2 = vcmp.ge.f32.partialorder %v4901_v50, 0.0  ;;  %vm1030_vm3 = vcmp.lt.f32.partialorder %v5007_v59, 0.0  ;;  %3882 = vmatprep.subr.bf16.mxu1 %v3881_v0  ;;  %vm5860_vm9 = vcmask 1041408   ;;  %v2464_v61 = vmul.f32 %v2310_v55, %v4365_v9 }
 0x22b   : > { %v2312_v43 = vsel %vm5860_vm9, %v2310_v55, %v2311_v46  ;;  %vm966_vm1 = vcmp.ge.f32.partialorder %v5007_v59, 0.0  ;;  %vm1031_vm0 = vcmp.lt.f32.partialorder %v5011_v37, 0.0  ;;  %v1092_v5 = vsel %vm1028_vm6, 1, %v5770_v31  ;;  %vm5861_vm13 = vmmov %vm5860_vm9 }
 0x22c   : > { %v2315_v10 = vsel %vm5861_vm13, %v2313_v60, %v2314_v32  ;;  %v2465_v63 = vmul.f32 %v2312_v43, %v4368_v17  ;;  %v2466_v21 = vmul.f32 %v2313_v60, %v5840_v47  ;;  %v1093_v30 = vsel %vm1029_vm7, 1, %v5770_v31 }
 0x22d   : > { %v2467_v48 = vmul.f32 %v2315_v10, %v5841_v11  ;;  %v2598_v8 = vrot.slane %v2464_v61, 3  ;;  %v1094_v3 = vsel %vm1030_vm3, 1, %v5770_v31  ;;  %v1095_v29 = vsel %vm1031_vm0, 1, %v5770_v31 }
 0x22e   : > { %v2599_v7 = vrot.slane %v2465_v63, 3  ;;  %v2601_v15 = vrot.slane %v2466_v21, 3  ;;  %v1180_v26 = vrot.slane %v1092_v5, 1  ;;  %v1181_v25 = vrot.slane %v1093_v30, 1 }
 0x22f   : > { %v2178_v23 = vmul.f32 %v2114_v1, %v5840_v47  ;;  %v2602_v41 = vrot.slane %v2467_v48, 3  ;;  %v1183_v57 = vrot.slane %v1094_v3, 1  ;;  %v1184_v6 = vrot.slane %v1095_v29, 1 }
 0x230   : > { %vm5862_vm8 = vcmask 1044480   ;;  %v2753_v20 = vsub.f32 %v2177_v45, %v2599_v7  ;;  %vm5863_vm15 = vcmask 1046528   ;;  %vm1253_vm11 = vcmp.ne.s32.totalorder %v1181_v25, 0 }
 0x231   : > { %v2600_v52 = vsel %vm5862_vm8, %v2598_v8, %v2599_v7  ;;  %v1182_v38 = vsel %vm5863_vm15, %v1180_v26, %v1181_v25  ;;  %vm5864_vm12 = vmmov %vm5862_vm8  ;;  %v2755_v36 = vsub.f32 %v2179_v54, %v2602_v41  ;;  %vm1255_vm7 = vcmp.ne.s32.totalorder %v1184_v6, 0 }
 0x232   : > { %v2603_v27 = vsel %vm5864_vm12, %v2601_v15, %v2602_v41  ;;  %v2752_v42 = vsub.f32 %v2176_v51, %v2600_v52  ;;  %vm5865_vm14 = vmmov %vm5863_vm15  ;;  %v2817_v12 = vmul.f32 1.25, %v2753_v20  ;;  %vm1252_vm10 = vcmp.ne.s32.totalorder %v1182_v38, 0 }
 0x233   : > { %v1185_v58 = vsel %vm5865_vm14, %v1183_v57, %v1184_v6  ;;  %vm1317_vm4 = vmand %vm965_vm5, %vm1253_vm11  ;;  %v2754_v2 = vsub.f32 %v2178_v23, %v2603_v27  ;;  %v2819_v24 = vmul.f32 1.25, %v2755_v36  ;;  %v5867_v62 = vcombine.high %v5866_v39, %v5866_v39 }
 0x234   : > { %vm1254_vm6 = vcmp.ne.s32.totalorder %v1185_v58, 0  ;;  %v2816_v34 = vmul.f32 1.25, %v2752_v42  ;;  %vm1316_vm3 = vmand %vm964_vm2, %vm1252_vm10  ;;  %v3775_v28 = vsel %vm1317_vm4, 1.0, %v5747_v4  ;;  %v2983_v44 = vrot.slane %v2817_v12, 5 }
 0x235   : > { %v5047_v14 = vrot.slane %v5867_v62, %v4133_v13  ;;  %v2818_v16 = vmul.f32 1.25, %v2754_v2  ;;  %vm967_vm5 = vcmp.ge.f32.partialorder %v5011_v37, 0.0  ;;  %vm1318_vm9 = vmand %vm966_vm1, %vm1254_vm6  ;;  %v5054_v33 = vsub.f32 %v4738_v18, %v4136_v19 }
 0x236   : > { %v2982_v1 = vrot.slane %v2816_v34, 5  ;;  %v2986_v45 = vrot.slane %v2819_v24, 5  ;;  %vm1319_vm2 = vmand %vm967_vm5, %vm1255_vm7  ;;  %v3774_v46 = vsel %vm1316_vm3, 1.0, %v5747_v4  ;;  %v2874_v0 = vmul.f32 %v2816_v34, %v4365_v9  ;;  %v5874_v34 = vld [vmem:[#allocation6_spill] sm:$0xff]  ;;  %v5875_v24 = vld [vmem:[#allocation7_spill] sm:$0xff] }
 0x237   : > { %v2985_v51 = vrot.slane %v2818_v16, 5  ;;  %v3776_v55 = vsel %vm1318_vm9, 1.0, %v5747_v4  ;;  %v1509_v54 = vmul.f32 %v3775_v28, %v4980_v49  ;;  %v2875_v60 = vmul.f32 %v2818_v16, %v5840_v47  ;;  %v5877_v16 = vld [vmem:[#allocation8_spill] sm:$0xff] }
 0x238   : > { %vm5868_vm0 = vcmask 1042432   ;;  %v3136_v43 = vmul.f32 %v2982_v1, %v4365_v9  ;;  %v3777_v61 = vsel %vm1319_vm2, 1.0, %v5747_v4  ;;  %v1660_v21 = vrot.slane %v3774_v46, 7 }
 0x239   : > { %v2984_v32 = vsel %vm5868_vm0, %v2982_v1, %v2983_v44  ;;  %vm5869_vm1 = vmmov %vm5868_vm0  ;;  %v3138_v63 = vmul.f32 %v2985_v51, %v5840_v47  ;;  %v1661_v8 = vrot.slane %v3775_v28, 7  ;;  %v1663_v3 = vrot.slane %v3776_v55, 7 }
 0x23a   : > { %v2987_v5 = vsel %vm5869_vm1, %v2985_v51, %v2986_v45  ;;  %v3137_v10 = vmul.f32 %v2984_v32, %v4368_v17  ;;  %v3270_v48 = vrot.slane %v3136_v43, 4  ;;  %v1664_v15 = vrot.slane %v3777_v61, 7 }
 0x23b   : > { %v3139_v30 = vmul.f32 %v2987_v5, %v5841_v11  ;;  %v3273_v7 = vrot.slane %v3138_v63, 4  ;;  %v1796_v26 = vmul.f32 %v1660_v21, %v4901_v50  ;;  %v1508_v25 = vmul.f32 %v3774_v46, %v4901_v50  ;;  %v5879_v46 = vld [vmem:[#allocation10_spill] sm:$0xff] }
 0x23c   : > { %v3271_v29 = vrot.slane %v3137_v10, 4  ;;  %vm5870_vm13 = vcmask 1040384   ;;  %v1798_v17 = vmul.f32 %v1663_v3, %v5007_v59  ;;  %vm5871_vm8 = vcmask 1043456  }
 0x23d   : > { %v3274_v9 = vrot.slane %v3139_v30, 4  ;;  %v1662_v23 = vsel %vm5870_vm13, %v1660_v21, %v1661_v8  ;;  %vm5872_vm15 = vmmov %vm5870_vm13  ;;  %v1948_v57 = vrot.slane %v1796_v26, 2  ;;  %v1510_v42 = vmul.f32 %v3776_v55, %v5007_v59 }
 0x23e   : > { %v3272_v47 = vsel %vm5871_vm8, %v3270_v48, %v3271_v29  ;;  %v1665_v41 = vsel %vm5872_vm15, %v1663_v3, %v1664_v15  ;;  %v1797_v11 = vmul.f32 %v1662_v23, %v4980_v49  ;;  %vm5873_vm11 = vmmov %vm5871_vm8  ;;  %v1951_v38 = vrot.slane %v1798_v17, 2 }
 0x23f   : > { %v3275_v6 = vsel %vm5873_vm11, %v3273_v7, %v3274_v9  ;;  %v3386_v52 = vsub.f32 %v2874_v0, %v3272_v47  ;;  %v1799_v20 = vmul.f32 %v1665_v41, %v5011_v37  ;;  %v1511_v36 = vmul.f32 %v3777_v61, %v5011_v37 }
 0x240   : > { %v3387_v27 = vsub.f32 %v2875_v60, %v3275_v6  ;;  %v1949_v58 = vrot.slane %v1797_v11, 2  ;;  %vm996_vm12 = vcmp.lt.f32.partialorder %v5874_v34, 0.0  ;;  %vm997_vm14 = vcmp.lt.f32.partialorder %v5875_v24, 0.0 }
 0x241   : > { %v3418_v2 = vmul.f32 0.8333333, %v3386_v52  ;;  %v1952_v12 = vrot.slane %v1799_v20, 2  ;;  %vm5876_vm4 = vcmask 1045504   ;;  %vm998_vm10 = vcmp.lt.f32.partialorder %v5877_v16, 0.0 }
 0x242   : > { %v3419_v28 = vmul.f32 0.8333333, %v3387_v27  ;;  %v1950_v39 = vsel %vm5876_vm4, %v1948_v57, %v1949_v58  ;;  %v2085_v62 = vsub.f32 %v1509_v54, %v1949_v58  ;;  %vm5878_vm6 = vmmov %vm5876_vm4  ;;  %vm932_vm7 = vcmp.ge.f32.partialorder %v5874_v34, 0.0 }
 0x243   : > { %v1953_v44 = vsel %vm5878_vm6, %v1951_v38, %v1952_v12  ;;  %v2084_v1 = vsub.f32 %v1508_v25, %v1950_v39  ;;  %v2087_v45 = vsub.f32 %v1511_v36, %v1952_v12  ;;  %vm999_vm3 = vcmp.lt.f32.partialorder %v5879_v46, 0.0 }
 0x244   : > { %v3883_v0 = vpack.c.bf16 %v3419_v28, %v3418_v2  ;;  %v2086_v51 = vsub.f32 %v1510_v42, %v1953_v44  ;;  %v2149_v55 = vmul.f32 2.5, %v2085_v62  ;;  %vm933_vm5 = vcmp.ge.f32.partialorder %v5875_v24, 0.0 }
 0x245   : > { %v2148_v60 = vmul.f32 2.5, %v2084_v1  ;;  %v2151_v32 = vmul.f32 2.5, %v2087_v45  ;;  %vm934_vm9 = vcmp.ge.f32.partialorder %v5877_v16, 0.0  ;;  %v1060_v54 = vsel %vm996_vm12, 1, %v5770_v31 }
 0x246   : > { %v1061_v43 = vsel %vm997_vm14, 1, %v5770_v31  ;;  %3884 = vmatpush3.bf16.msra.mxu1 %v3883_v0  ;;  %v2150_v61 = vmul.f32 2.5, %v2086_v51  ;;  %v2365_v5 = vrot.slane %v2149_v55, 6  ;;  %v1062_v10 = vsel %vm998_vm10, 1, %v5770_v31 }
 0x247   : > { %v1063_v63 = vsel %vm999_vm3, 1, %v5770_v31  ;;  %v2213_v21 = vmul.f32 %v2149_v55, %v4980_v49  ;;  %v2364_v30 = vrot.slane %v2148_v60, 6  ;;  %v2368_v48 = vrot.slane %v2151_v32, 6 }
 0x248   : > { %vm935_vm2 = vcmp.ge.f32.partialorder %v5879_v46, 0.0  ;;  %v2212_v8 = vmul.f32 %v2148_v60, %v4901_v50  ;;  %v2367_v3 = vrot.slane %v2150_v61, 6  ;;  %v1132_v29 = vrot.slane %v1060_v54, 1 }
 0x249   : > { %v1133_v7 = vrot.slane %v1061_v43, 1  ;;  %vm5880_vm0 = vcmask 1041408   ;;  %v2500_v26 = vmul.f32 %v2364_v30, %v4901_v50  ;;  %v1135_v9 = vrot.slane %v1062_v10, 1 }
 0x24a   : > { %v2366_v15 = vsel %vm5880_vm0, %v2364_v30, %v2365_v5  ;;  %v1136_v25 = vrot.slane %v1063_v63, 1  ;;  %vm5881_vm1 = vmmov %vm5880_vm0  ;;  %v2502_v47 = vmul.f32 %v2367_v3, %v5007_v59  ;;  %vm5882_vm13 = vcmask 1046528  }
 0x24b   : > { %v2369_v23 = vsel %vm5881_vm1, %v2367_v3, %v2368_v48  ;;  %v2501_v17 = vmul.f32 %v2366_v15, %v4980_v49  ;;  %v1134_v41 = vsel %vm5882_vm13, %v1132_v29, %v1133_v7  ;;  %v2652_v57 = vrot.slane %v2500_v26, 3  ;;  %vm5883_vm8 = vmmov %vm5882_vm13 }
 0x24c   : > { %v2503_v11 = vmul.f32 %v2369_v23, %v5011_v37  ;;  %v1137_v6 = vsel %vm5883_vm8, %v1135_v9, %v1136_v25  ;;  %vm1220_vm15 = vcmp.ne.s32.totalorder %v1134_v41, 0  ;;  %v2655_v20 = vrot.slane %v2502_v47, 3 }
 0x24d   : > { %v2653_v52 = vrot.slane %v2501_v17, 3  ;;  %vm1221_vm11 = vcmp.ne.s32.totalorder %v1133_v7, 0  ;;  %vm1222_vm12 = vcmp.ne.s32.totalorder %v1137_v6, 0  ;;  %vm1284_vm14 = vmand %vm932_vm7, %vm1220_vm15  ;;  %v2215_v38 = vmul.f32 %v2151_v32, %v5011_v37 }
 0x24e   : > { %v2656_v27 = vrot.slane %v2503_v11, 3  ;;  %vm1223_vm4 = vcmp.ne.s32.totalorder %v1136_v25, 0  ;;  %vm1285_vm10 = vmand %vm933_vm5, %vm1221_vm11  ;;  %v3742_v42 = vsel %vm1284_vm14, 1.0, %v5747_v4  ;;  %v2214_v36 = vmul.f32 %v2150_v61, %v5007_v59 }
 0x24f   : > { %vm5884_vm6 = vcmask 1044480   ;;  %v2789_v2 = vsub.f32 %v2213_v21, %v2653_v52  ;;  %vm1286_vm3 = vmand %vm934_vm9, %vm1222_vm12  ;;  %v3743_v12 = vsel %vm1285_vm10, 1.0, %v5747_v4  ;;  %v5122_v28 = vsub.f32 %v4738_v18, %v4140_v22 }
 0x250   : > { %v2654_v58 = vsel %vm5884_vm6, %v2652_v57, %v2653_v52  ;;  %vm5885_vm7 = vmmov %vm5884_vm6  ;;  %v2791_v44 = vsub.f32 %v2215_v38, %v2656_v27  ;;  %v3744_v0 = vsel %vm1286_vm3, 1.0, %v5747_v4  ;;  %v1476_v51 = vmul.f32 %v3742_v42, %v5874_v34 }
 0x251   : > { %v2657_v39 = vsel %vm5885_vm7, %v2655_v20, %v2656_v27  ;;  %v2788_v62 = vsub.f32 %v2212_v8, %v2654_v58  ;;  %vm1287_vm5 = vmand %vm935_vm2, %vm1223_vm4  ;;  %v2853_v45 = vmul.f32 1.25, %v2789_v2  ;;  %v1477_v18 = vmul.f32 %v3743_v12, %v5875_v24 }
 0x252   : > { %v2790_v1 = vsub.f32 %v2214_v36, %v2657_v39  ;;  %v2855_v60 = vmul.f32 1.25, %v2791_v44  ;;  %v3745_v32 = vsel %vm1287_vm5, 1.0, %v5747_v4  ;;  %v1612_v61 = vrot.slane %v3742_v42, 7 }
 0x253   : > { %v2852_v55 = vmul.f32 1.25, %v2788_v62  ;;  %v3037_v43 = vrot.slane %v2853_v45, 5  ;;  %v1613_v5 = vrot.slane %v3743_v12, 7  ;;  %v1478_v21 = vmul.f32 %v3744_v0, %v5877_v16 }
 0x254   : > { %v2854_v54 = vmul.f32 1.25, %v2790_v1  ;;  %v3040_v63 = vrot.slane %v2855_v60, 5  ;;  %v1615_v30 = vrot.slane %v3744_v0, 7  ;;  %v1479_v8 = vmul.f32 %v3745_v32, %v5879_v46 }
 0x255   : > { %v3036_v10 = vrot.slane %v2852_v55, 5  ;;  %vm5886_vm9 = vcmask 1040384   ;;  %v1616_v29 = vrot.slane %v3745_v32, 7  ;;  %vm5887_vm2 = vcmask 1042432  }
 0x256   : > { %v3039_v48 = vrot.slane %v2854_v54, 5  ;;  %v1614_v3 = vsel %vm5886_vm9, %v1612_v61, %v1613_v5  ;;  %v1764_v26 = vmul.f32 %v1612_v61, %v5874_v34  ;;  %vm5888_vm0 = vmmov %vm5887_vm2  ;;  %v1766_v57 = vmul.f32 %v1615_v30, %v5877_v16 }
 0x257   : > { %v3038_v7 = vsel %vm5887_vm2, %v3036_v10, %v3037_v43  ;;  %v3172_v15 = vmul.f32 %v3036_v10, %v4901_v50  ;;  %v1765_v9 = vmul.f32 %v1614_v3, %v5875_v24  ;;  %vm5889_vm1 = vmmov %vm5886_vm9  ;;  %v2892_v42 = vmul.f32 %v2852_v55, %v4901_v50 }
 0x258   : > { %v3041_v25 = vsel %vm5888_vm0, %v3039_v48, %v3040_v63  ;;  %v3173_v23 = vmul.f32 %v3038_v7, %v4980_v49  ;;  %v3174_v17 = vmul.f32 %v3039_v48, %v5007_v59  ;;  %v1617_v47 = vsel %vm5889_vm1, %v1615_v30, %v1616_v29 }
 0x259   : > { %v3175_v41 = vmul.f32 %v3041_v25, %v5011_v37  ;;  %v3324_v11 = vrot.slane %v3172_v15, 4  ;;  %v1767_v6 = vmul.f32 %v1617_v47, %v5879_v46  ;;  %v1900_v38 = vrot.slane %v1764_v26, 2 }
 0x25a   : > { %v3325_v52 = vrot.slane %v3173_v23, 4  ;;  %v3327_v20 = vrot.slane %v3174_v17, 4  ;;  %v1901_v27 = vrot.slane %v1765_v9, 2  ;;  %v1903_v58 = vrot.slane %v1766_v57, 2 }
 0x25b   : > { %v3328_v36 = vrot.slane %v3175_v41, 4  ;;  %v1904_v49 = vrot.slane %v1767_v6, 2  ;;  %v2893_v2 = vmul.f32 %v2854_v54, %v5007_v59  ;;  %vm5890_vm13 = vcmask 1043456  }
 0x25c   : > { %v3326_v12 = vsel %vm5890_vm13, %v3324_v11, %v3325_v52  ;;  %vm5891_vm8 = vcmask 1045504   ;;  %v2053_v39 = vsub.f32 %v1477_v18, %v1901_v27  ;;  %vm5892_vm15 = vmmov %vm5890_vm13  ;;  %v5153_v55 = vsub.f32 %v5047_v14, %v4136_v19 }
 0x25d   : > { %v1902_v37 = vsel %vm5891_vm8, %v1900_v38, %v1901_v27  ;;  %v3329_v62 = vsel %vm5892_vm15, %v3327_v20, %v3328_v36  ;;  %v3404_v44 = vsub.f32 %v2892_v42, %v3326_v12  ;;  %vm5893_vm11 = vmmov %vm5891_vm8  ;;  %v2055_v32 = vsub.f32 %v1479_v8, %v1904_v49 }
 0x25e   : > { %v1905_v1 = vsel %vm5893_vm11, %v1903_v58, %v1904_v49  ;;  %v2052_v45 = vsub.f32 %v1476_v51, %v1902_v37  ;;  %v3405_v0 = vsub.f32 %v2893_v2, %v3329_v62  ;;  %v2117_v50 = vmul.f32 2.5, %v2053_v39 }
 0x25f   : > { %v2054_v60 = vsub.f32 %v1478_v21, %v1905_v1  ;;  %v5157_v59 = vsub.f32 %v5047_v14, %v4140_v22  ;;  %v3436_v54 = vmul.f32 0.8333333, %v3404_v44  ;;  %v2119_v5 = vmul.f32 2.5, %v2055_v32 }
 0x260   : > { %v2116_v18 = vmul.f32 2.5, %v2052_v45  ;;  %v3437_v43 = vmul.f32 0.8333333, %v3405_v0  ;;  %vm1032_vm12 = vcmp.lt.f32.partialorder %v5054_v33, 0.0  ;;  %v2181_v10 = vmul.f32 %v2117_v50, %v5875_v24 }
 0x261   : > { %v2118_v61 = vmul.f32 2.5, %v2054_v60  ;;  %v2317_v21 = vrot.slane %v2117_v50, 6  ;;  %vm969_vm14 = vcmp.ge.f32.partialorder %v5122_v28, 0.0  ;;  %vm968_vm4 = vcmp.ge.f32.partialorder %v5054_v33, 0.0 }
 0x262   : > { %v2180_v51 = vmul.f32 %v2116_v18, %v5874_v34  ;;  %v2316_v63 = vrot.slane %v2116_v18, 6  ;;  %v3885_v30 = vpack.c.bf16 %v3437_v43, %v3436_v54  ;;  %vm1033_vm10 = vcmp.lt.f32.partialorder %v5122_v28, 0.0 }
 0x263   : > { %v2182_v48 = vmul.f32 %v2118_v61, %v5877_v16  ;;  %v2319_v14 = vrot.slane %v2118_v61, 6  ;;  %vm5894_vm6 = vcmask 1041408   ;;  %v2320_v3 = vrot.slane %v2119_v5, 6 }
 0x264   : > { %v2318_v8 = vsel %vm5894_vm6, %v2316_v63, %v2317_v21  ;;  %v2468_v29 = vmul.f32 %v2316_v63, %v5874_v34  ;;  %vm970_vm3 = vcmp.ge.f32.partialorder %v5153_v55, 0.0  ;;  %vm1034_vm7 = vcmp.lt.f32.partialorder %v5153_v55, 0.0  ;;  %3886 = vmatprep.subr.bf16.mxu1 %v3885_v30  ;;  %vm5895_vm9 = vmmov %vm5894_vm6 }
 0x265   : > { %v2469_v7 = vmul.f32 %v2318_v8, %v5875_v24  ;;  %v2470_v15 = vmul.f32 %v2319_v14, %v5877_v16  ;;  %vm1035_vm5 = vcmp.lt.f32.partialorder %v5157_v59, 0.0  ;;  %v1096_v26 = vsel %vm1032_vm12, 1, %v5770_v31 }
 0x266   : > { %v2321_v9 = vsel %vm5895_vm9, %v2319_v14, %v2320_v3  ;;  %v2604_v25 = vrot.slane %v2468_v29, 3  ;;  %v1097_v23 = vsel %vm1033_vm10, 1, %v5770_v31  ;;  %v1098_v17 = vsel %vm1034_vm7, 1, %v5770_v31 }
 0x267   : > { %v2471_v47 = vmul.f32 %v2321_v9, %v5879_v46  ;;  %v2605_v41 = vrot.slane %v2469_v7, 3  ;;  %v2607_v11 = vrot.slane %v2470_v15, 3  ;;  %v1099_v57 = vsel %vm1035_vm5, 1, %v5770_v31 }
 0x268   : > { %v1186_v6 = vrot.slane %v1096_v26, 1  ;;  %v1187_v52 = vrot.slane %v1097_v23, 1  ;;  %v1189_v20 = vrot.slane %v1098_v17, 1  ;;  %v1190_v38 = vrot.slane %v1099_v57, 1 }
 0x269   : > { %v2183_v27 = vmul.f32 %v2119_v5, %v5879_v46  ;;  %vm5896_vm2 = vcmask 1044480   ;;  %v2608_v36 = vrot.slane %v2471_v47, 3  ;;  %v2757_v58 = vsub.f32 %v2181_v10, %v2605_v41 }
 0x26a   : > { %v2606_v42 = vsel %vm5896_vm2, %v2604_v25, %v2605_v41  ;;  %vm5897_vm0 = vcmask 1046528   ;;  %vm1257_vm13 = vcmp.ne.s32.totalorder %v1187_v52, 0  ;;  %vm5899_vm8 = vmmov %vm5896_vm2  ;;  %vm1259_vm10 = vcmp.ne.s32.totalorder %v1190_v38, 0 }
 0x26b   : > { %v2756_v49 = vsub.f32 %v2180_v51, %v2606_v42  ;;  %v1188_v2 = vsel %vm5897_vm0, %v1186_v6, %v1187_v52  ;;  %vm5898_vm1 = vmmov %vm5897_vm0  ;;  %v2609_v37 = vsel %vm5899_vm8, %v2607_v11, %v2608_v36  ;;  %v2759_v39 = vsub.f32 %v2183_v27, %v2608_v36 }
 0x26c   : > { %v1191_v12 = vsel %vm5898_vm1, %v1189_v20, %v1190_v38  ;;  %v2821_v62 = vmul.f32 1.25, %v2757_v58  ;;  %vm1256_vm15 = vcmp.ne.s32.totalorder %v1188_v2, 0  ;;  %vm1321_vm11 = vmand %vm969_vm14, %vm1257_vm13  ;;  %v2758_v44 = vsub.f32 %v2182_v48, %v2609_v37 }
 0x26d   : > { %v2820_v1 = vmul.f32 1.25, %v2756_v49  ;;  %vm1258_vm12 = vcmp.ne.s32.totalorder %v1191_v12, 0  ;;  %vm1320_vm6 = vmand %vm968_vm4, %vm1256_vm15  ;;  %v5192_v45 = vrot.slane %v5850_v35, %v4133_v13  ;;  %v2823_v0 = vmul.f32 1.25, %v2759_v39 }
 0x26e   : > { %v2989_v60 = vrot.slane %v2821_v62, 5  ;;  %vm971_vm7 = vcmp.ge.f32.partialorder %v5157_v59, 0.0  ;;  %vm1322_vm5 = vmand %vm970_vm3, %vm1258_vm12  ;;  %v2822_v32 = vmul.f32 1.25, %v2758_v44  ;;  %v3778_v54 = vsel %vm1320_vm6, 1.0, %v5747_v4  ;;  %v5908_v44 = vld [vmem:[#allocation11_spill] sm:$0xff] }
 0x26f   : > { %v2988_v50 = vrot.slane %v2820_v1, 5  ;;  %vm1323_vm14 = vmand %vm971_vm7, %vm1259_vm10  ;;  %v3779_v18 = vsel %vm1321_vm11, 1.0, %v5747_v4  ;;  %v5900_v43 = vcombine.high %v4379_v40, %v4379_v40  ;;  %v2876_v5 = vmul.f32 %v2820_v1, %v5874_v34  ;;  %v5909_v1 = vld [vmem:[#allocation12_spill] sm:$0xff] }
 0x270   : > { %v2992_v51 = vrot.slane %v2823_v0, 5  ;;  %v3780_v10 = vsel %vm1322_vm5, 1.0, %v5747_v4  ;;  %vm5901_vm4 = vcmask 1042432   ;;  %v2991_v21 = vrot.slane %v2822_v32, 5 }
 0x271   : > { %v5203_v61 = vrot.slane %v5900_v43, %v4133_v13  ;;  %v2990_v63 = vsel %vm5901_vm4, %v2988_v50, %v2989_v60  ;;  %v3140_v30 = vmul.f32 %v2988_v50, %v5874_v34  ;;  %v3781_v48 = vsel %vm1323_vm14, 1.0, %v5747_v4  ;;  %vm5902_vm3 = vmmov %vm5901_vm4  ;;  %v5911_v43 = vld [vmem:[#allocation13_spill] sm:$0xff] }
 0x272   : > { %v3141_v14 = vmul.f32 %v2990_v63, %v5875_v24  ;;  %v1512_v8 = vmul.f32 %v3778_v54, %v5054_v33  ;;  %v1513_v40 = vmul.f32 %v3779_v18, %v5122_v28  ;;  %v1666_v3 = vrot.slane %v3778_v54, 7  ;;  %v5912_v63 = vld [vmem:[#allocation14_spill] sm:$0xff] }
 0x273   : > { %v2993_v29 = vsel %vm5902_vm3, %v2991_v21, %v2992_v51  ;;  %v3142_v7 = vmul.f32 %v2991_v21, %v5877_v16  ;;  %v3276_v15 = vrot.slane %v3140_v30, 4  ;;  %v1667_v26 = vrot.slane %v3779_v18, 7 }
 0x274   : > { %v3143_v9 = vmul.f32 %v2993_v29, %v5879_v46  ;;  %v3277_v25 = vrot.slane %v3141_v14, 4  ;;  %v1669_v23 = vrot.slane %v3780_v10, 7  ;;  %v1670_v34 = vrot.slane %v3781_v48, 7 }
 0x275   : > { %v2877_v17 = vmul.f32 %v2822_v32, %v5877_v16  ;;  %v3279_v47 = vrot.slane %v3142_v7, 4  ;;  %vm5903_vm9 = vcmask 1040384   ;;  %v1800_v41 = vmul.f32 %v1666_v3, %v5054_v33 }
 0x276   : > { %v1668_v24 = vsel %vm5903_vm9, %v1666_v3, %v1667_v26  ;;  %vm5904_vm2 = vcmask 1043456   ;;  %v3280_v57 = vrot.slane %v3143_v9, 4  ;;  %vm5905_vm0 = vmmov %vm5903_vm9  ;;  %v1802_v46 = vmul.f32 %v1669_v23, %v5153_v55 }
 0x277   : > { %v3278_v11 = vsel %vm5904_vm2, %v3276_v15, %v3277_v25  ;;  %v1671_v6 = vsel %vm5905_vm0, %v1669_v23, %v1670_v34  ;;  %v1801_v52 = vmul.f32 %v1668_v24, %v5122_v28  ;;  %v1954_v27 = vrot.slane %v1800_v41, 2  ;;  %vm5906_vm1 = vmmov %vm5904_vm2 }
 0x278   : > { %v3388_v20 = vsub.f32 %v2876_v5, %v3278_v11  ;;  %v1803_v38 = vmul.f32 %v1671_v6, %v5157_v59  ;;  %v3281_v16 = vsel %vm5906_vm1, %v3279_v47, %v3280_v57  ;;  %v1514_v42 = vmul.f32 %v3780_v10, %v5153_v55 }
 0x279   : > { %v1515_v36 = vmul.f32 %v3781_v48, %v5157_v59  ;;  %v1955_v58 = vrot.slane %v1801_v52, 2  ;;  %v3389_v49 = vsub.f32 %v2877_v17, %v3281_v16  ;;  %v1957_v12 = vrot.slane %v1802_v46, 2 }
 0x27a   : > { %v3420_v2 = vmul.f32 0.8333333, %v3388_v20  ;;  %v1958_v37 = vrot.slane %v1803_v38, 2  ;;  %vm5907_vm13 = vcmask 1045504   ;;  %vm1000_vm8 = vcmp.lt.f32.partialorder %v5908_v44, 0.0 }
 0x27b   : > { %v1956_v39 = vsel %vm5907_vm13, %v1954_v27, %v1955_v58  ;;  %v2089_v62 = vsub.f32 %v1513_v40, %v1955_v58  ;;  %vm1001_vm15 = vcmp.lt.f32.partialorder %v5909_v1, 0.0  ;;  %v3421_v0 = vmul.f32 0.8333333, %v3389_v49  ;;  %vm5910_vm11 = vmmov %vm5907_vm13 }
 0x27c   : > { %v1959_v60 = vsel %vm5910_vm11, %v1957_v12, %v1958_v37  ;;  %v2088_v32 = vsub.f32 %v1512_v8, %v1956_v39  ;;  %v2091_v50 = vsub.f32 %v1515_v36, %v1958_v37  ;;  %vm936_vm12 = vcmp.ge.f32.partialorder %v5908_v44, 0.0 }
 0x27d   : > { %v2090_v54 = vsub.f32 %v1514_v42, %v1959_v60  ;;  %v2153_v18 = vmul.f32 2.5, %v2089_v62  ;;  %vm1002_vm10 = vcmp.lt.f32.partialorder %v5911_v43, 0.0  ;;  %v3887_v5 = vpack.c.bf16 %v3421_v0, %v3420_v2 }
 0x27e   : > { %v2152_v51 = vmul.f32 2.5, %v2088_v32  ;;  %v2155_v10 = vmul.f32 2.5, %v2091_v50  ;;  %vm937_vm6 = vcmp.ge.f32.partialorder %v5909_v1, 0.0  ;;  %vm1003_vm7 = vcmp.lt.f32.partialorder %v5912_v63, 0.0 }
 0x27f   : > { %v2154_v21 = vmul.f32 2.5, %v2090_v54  ;;  %v2371_v30 = vrot.slane %v2153_v18, 6  ;;  %vm938_vm5 = vcmp.ge.f32.partialorder %v5911_v43, 0.0  ;;  %v1064_v48 = vsel %vm1000_vm8, 1, %v5770_v31  ;;  %3888 = vmatpush3.bf16.msra.mxu1 %v3887_v5 }
 0x280   : > { %v1065_v14 = vsel %vm1001_vm15, 1, %v5770_v31  ;;  %v2216_v8 = vmul.f32 %v2152_v51, %v5054_v33  ;;  %v2217_v40 = vmul.f32 %v2153_v18, %v5122_v28  ;;  %v2370_v3 = vrot.slane %v2152_v51, 6 }
 0x281   : > { %v2374_v29 = vrot.slane %v2155_v10, 6  ;;  %vm939_vm14 = vcmp.ge.f32.partialorder %v5912_v63, 0.0  ;;  %v2219_v7 = vmul.f32 %v2155_v10, %v5157_v59  ;;  %v2373_v15 = vrot.slane %v2154_v21, 6 }
 0x282   : > { %v1066_v26 = vsel %vm1002_vm10, 1, %v5770_v31  ;;  %v1067_v9 = vsel %vm1003_vm7, 1, %v5770_v31  ;;  %vm5913_vm4 = vcmask 1041408   ;;  %v2504_v23 = vmul.f32 %v2370_v3, %v5054_v33 }
 0x283   : > { %v2372_v25 = vsel %vm5913_vm4, %v2370_v3, %v2371_v30  ;;  %v1138_v34 = vrot.slane %v1064_v48, 1  ;;  %v1139_v17 = vrot.slane %v1065_v14, 1  ;;  %vm5914_vm3 = vmmov %vm5913_vm4  ;;  %v2506_v41 = vmul.f32 %v2373_v15, %v5153_v55 }
 0x284   : > { %v2375_v47 = vsel %vm5914_vm3, %v2373_v15, %v2374_v29  ;;  %v2505_v24 = vmul.f32 %v2372_v25, %v5122_v28  ;;  %v1141_v11 = vrot.slane %v1066_v26, 1  ;;  %v2658_v6 = vrot.slane %v2504_v23, 3 }
 0x285   : > { %v2507_v57 = vmul.f32 %v2375_v47, %v5157_v59  ;;  %vm5915_vm9 = vcmask 1046528   ;;  %v1142_v20 = vrot.slane %v1067_v9, 1  ;;  %v2661_v38 = vrot.slane %v2506_v41, 3 }
 0x286   : > { %v1140_v52 = vsel %vm5915_vm9, %v1138_v34, %v1139_v17  ;;  %v2659_v46 = vrot.slane %v2505_v24, 3  ;;  %vm1225_vm0 = vcmp.ne.s32.totalorder %v1139_v17, 0  ;;  %v2218_v27 = vmul.f32 %v2154_v21, %v5153_v55  ;;  %vm5916_vm1 = vmmov %vm5915_vm9 }
 0x287   : > { %vm1224_vm2 = vcmp.ne.s32.totalorder %v1140_v52, 0  ;;  %v2662_v16 = vrot.slane %v2507_v57, 3  ;;  %v1143_v42 = vsel %vm5916_vm1, %v1141_v11, %v1142_v20  ;;  %vm5259_vm13 = vcmp.ne.s32.totalorder %v1142_v20, 0  ;;  %vm1289_vm10 = vmand %vm937_vm6, %vm1225_vm0 }
 0x288   : > { %vm1288_vm8 = vmand %vm936_vm12, %vm1224_vm2  ;;  %vm5919_vm15 = vcmask 1044480   ;;  %v2793_v49 = vsub.f32 %v2217_v40, %v2659_v46  ;;  %vm1226_vm11 = vcmp.ne.s32.totalorder %v1143_v42, 0  ;;  %v3747_v62 = vsel %vm1289_vm10, 1.0, %v5747_v4 }
 0x289   : > { %v2660_v58 = vsel %vm5919_vm15, %v2658_v6, %v2659_v46  ;;  %v3746_v2 = vsel %vm1288_vm8, 1.0, %v5747_v4  ;;  %vm5920_vm7 = vmmov %vm5919_vm15  ;;  %v2795_v39 = vsub.f32 %v2219_v7, %v2662_v16  ;;  %v5275_v0 = vsub.f32 %v4892_v56, %v4136_v19 }
 0x28a   : > { %v2663_v12 = vsel %vm5920_vm7, %v2661_v38, %v2662_v16  ;;  %v2792_v37 = vsub.f32 %v2216_v8, %v2660_v58  ;;  %vm1290_vm4 = vmand %vm938_vm5, %vm1226_vm11  ;;  %v2857_v32 = vmul.f32 1.25, %v2793_v49  ;;  %v5284_v54 = vsub.f32 %v4892_v56, %v4140_v22 }
 0x28b   : > { %v2794_v60 = vsub.f32 %v2218_v27, %v2663_v12  ;;  %vm1291_vm12 = vmand %vm939_vm14, %vm5259_vm13  ;;  %v3748_v50 = vsel %vm1290_vm4, 1.0, %v5747_v4  ;;  %v2859_v5 = vmul.f32 1.25, %v2795_v39  ;;  %v1480_v30 = vmul.f32 %v3746_v2, %v5908_v44 }
 0x28c   : > { %v2856_v18 = vmul.f32 1.25, %v2792_v37  ;;  %v3749_v51 = vsel %vm1291_vm12, 1.0, %v5747_v4  ;;  %v3043_v21 = vrot.slane %v2857_v32, 5  ;;  %v1481_v48 = vmul.f32 %v3747_v62, %v5909_v1 }
 0x28d   : > { %v2858_v10 = vmul.f32 1.25, %v2794_v60  ;;  %v3046_v8 = vrot.slane %v2859_v5, 5  ;;  %v1482_v40 = vmul.f32 %v3748_v50, %v5911_v43  ;;  %v1618_v3 = vrot.slane %v3746_v2, 7 }
 0x28e   : > { %v3042_v14 = vrot.slane %v2856_v18, 5  ;;  %v1483_v7 = vmul.f32 %v3749_v51, %v5912_v63  ;;  %v1619_v56 = vrot.slane %v3747_v62, 7  ;;  %v1621_v15 = vrot.slane %v3748_v50, 7 }
 0x28f   : > { %v3045_v29 = vrot.slane %v2858_v10, 5  ;;  %vm5921_vm6 = vcmask 1042432   ;;  %v1622_v25 = vrot.slane %v3749_v51, 7  ;;  %v1768_v23 = vmul.f32 %v1618_v3, %v5908_v44 }
 0x290   : > { %v3044_v26 = vsel %vm5921_vm6, %v3042_v14, %v3043_v21  ;;  %v3176_v9 = vmul.f32 %v3042_v14, %v5054_v33  ;;  %vm5922_vm5 = vmmov %vm5921_vm6  ;;  %vm5923_vm14 = vcmask 1040384   ;;  %v1770_v46 = vmul.f32 %v1621_v15, %v5911_v43 }
 0x291   : > { %v3047_v34 = vsel %vm5922_vm5, %v3045_v29, %v3046_v8  ;;  %v3177_v17 = vmul.f32 %v3044_v26, %v5122_v28  ;;  %v3178_v47 = vmul.f32 %v3045_v29, %v5153_v55  ;;  %v1620_v24 = vsel %vm5923_vm14, %v1618_v3, %v1619_v56  ;;  %vm5924_vm3 = vmmov %vm5923_vm14 }
 0x292   : > { %v3179_v41 = vmul.f32 %v3047_v34, %v5157_v59  ;;  %v3330_v11 = vrot.slane %v3176_v9, 4  ;;  %v1623_v57 = vsel %vm5924_vm3, %v1621_v15, %v1622_v25  ;;  %v1769_v6 = vmul.f32 %v1620_v24, %v5909_v1 }
 0x293   : > { %v3331_v52 = vrot.slane %v3177_v17, 4  ;;  %v3333_v20 = vrot.slane %v3178_v47, 4  ;;  %v1771_v38 = vmul.f32 %v1623_v57, %v5912_v63  ;;  %v2894_v27 = vmul.f32 %v2856_v18, %v5054_v33 }
 0x294   : > { %v3334_v28 = vrot.slane %v3179_v41, 4  ;;  %v1906_v16 = vrot.slane %v1768_v23, 2  ;;  %v1907_v42 = vrot.slane %v1769_v6, 2  ;;  %v2895_v36 = vmul.f32 %v2858_v10, %v5153_v55 }
 0x295   : > { %vm5925_vm9 = vcmask 1043456   ;;  %v1909_v58 = vrot.slane %v1770_v46, 2  ;;  %v1910_v49 = vrot.slane %v1771_v38, 2  ;;  %vm5927_vm0 = vcmask 1045504  }
 0x296   : > { %v3332_v59 = vsel %vm5925_vm9, %v3330_v11, %v3331_v52  ;;  %vm5926_vm2 = vmmov %vm5925_vm9  ;;  %v1908_v37 = vsel %vm5927_vm0, %v1906_v16, %v1907_v42  ;;  %v2057_v39 = vsub.f32 %v1481_v48, %v1907_v42  ;;  %v5311_v50 = vsub.f32 %v5192_v45, %v4136_v19 }
 0x297   : > { %v3335_v2 = vsel %vm5926_vm2, %v3333_v20, %v3334_v28  ;;  %v3406_v12 = vsub.f32 %v2894_v27, %v3332_v59  ;;  %vm5928_vm1 = vmmov %vm5927_vm0  ;;  %v2056_v32 = vsub.f32 %v1480_v30, %v1908_v37  ;;  %v2059_v33 = vsub.f32 %v1483_v7, %v1910_v49 }
 0x298   : > { %v3407_v62 = vsub.f32 %v2895_v36, %v3335_v2  ;;  %v1911_v60 = vsel %vm5928_vm1, %v1909_v58, %v1910_v49  ;;  %v5315_v55 = vsub.f32 %v5192_v45, %v4140_v22  ;;  %v2121_v5 = vmul.f32 2.5, %v2057_v39 }
 0x299   : > { %v2058_v18 = vsub.f32 %v1482_v40, %v1911_v60  ;;  %v3438_v51 = vmul.f32 0.8333333, %v3406_v12  ;;  %v2120_v21 = vmul.f32 2.5, %v2056_v32  ;;  %v2123_v14 = vmul.f32 2.5, %v2059_v33 }
 0x29a   : > { %v3439_v10 = vmul.f32 0.8333333, %v3407_v62  ;;  %v2185_v8 = vmul.f32 %v2121_v5, %v5909_v1  ;;  %v2323_v3 = vrot.slane %v2121_v5, 6  ;;  %vm973_vm13 = vcmp.ge.f32.partialorder %v5284_v54, 0.0 }
 0x29b   : > { %v2122_v48 = vmul.f32 2.5, %v2058_v18  ;;  %vm1036_vm8 = vcmp.lt.f32.partialorder %v5275_v0, 0.0  ;;  %v2184_v29 = vmul.f32 %v2120_v21, %v5908_v44  ;;  %v2322_v7 = vrot.slane %v2120_v21, 6 }
 0x29c   : > { %v3889_v30 = vpack.c.bf16 %v3439_v10, %v3438_v51  ;;  %vm1037_vm15 = vcmp.lt.f32.partialorder %v5284_v54, 0.0  ;;  %v2187_v45 = vmul.f32 %v2123_v14, %v5912_v63  ;;  %v2326_v56 = vrot.slane %v2123_v14, 6 }
 0x29d   : > { %v2325_v40 = vrot.slane %v2122_v48, 6  ;;  %vm972_vm11 = vcmp.ge.f32.partialorder %v5275_v0, 0.0  ;;  %vm1038_vm10 = vcmp.lt.f32.partialorder %v5311_v50, 0.0  ;;  %vm5929_vm7 = vcmask 1041408  }
 0x29e   : > { %3890 = vmatprep.subr.bf16.mxu1 %v3889_v30  ;;  %v2324_v15 = vsel %vm5929_vm7, %v2322_v7, %v2323_v3  ;;  %v2472_v26 = vmul.f32 %v2322_v7, %v5908_v44  ;;  %vm974_vm4 = vcmp.ge.f32.partialorder %v5311_v50, 0.0  ;;  %vm1039_vm12 = vcmp.lt.f32.partialorder %v5315_v55, 0.0  ;;  %vm5930_vm6 = vmmov %vm5929_vm7 }
 0x29f   : > { %v1100_v9 = vsel %vm1036_vm8, 1, %v5770_v31  ;;  %v2327_v25 = vsel %vm5930_vm6, %v2325_v40, %v2326_v56  ;;  %v2473_v23 = vmul.f32 %v2324_v15, %v5909_v1  ;;  %v2474_v34 = vmul.f32 %v2325_v40, %v5911_v43 }
 0x2a0   : > { %v1101_v17 = vsel %vm1037_vm15, 1, %v5770_v31  ;;  %v2475_v47 = vmul.f32 %v2327_v25, %v5912_v63  ;;  %v2610_v24 = vrot.slane %v2472_v26, 3  ;;  %v1102_v41 = vsel %vm1038_vm10, 1, %v5770_v31 }
 0x2a1   : > { %v1103_v11 = vsel %vm1039_vm12, 1, %v5770_v31  ;;  %v2611_v57 = vrot.slane %v2473_v23, 3  ;;  %v2613_v6 = vrot.slane %v2474_v34, 3  ;;  %v1192_v52 = vrot.slane %v1100_v9, 1 }
 0x2a2   : > { %v1193_v20 = vrot.slane %v1101_v17, 1  ;;  %v2186_v46 = vmul.f32 %v2122_v48, %v5911_v43  ;;  %v2614_v38 = vrot.slane %v2475_v47, 3  ;;  %v1195_v27 = vrot.slane %v1102_v41, 1 }
 0x2a3   : > { %v1196_v28 = vrot.slane %v1103_v11, 1  ;;  %vm5931_vm5 = vcmask 1044480   ;;  %v2761_v42 = vsub.f32 %v2185_v8, %v2611_v57  ;;  %vm5932_vm14 = vcmask 1046528  }
 0x2a4   : > { %v2612_v16 = vsel %vm5931_vm5, %v2610_v24, %v2611_v57  ;;  %v1194_v36 = vsel %vm5932_vm14, %v1192_v52, %v1193_v20  ;;  %vm1261_vm3 = vcmp.ne.s32.totalorder %v1193_v20, 0  ;;  %vm5933_vm9 = vmmov %vm5931_vm5  ;;  %v2763_v49 = vsub.f32 %v2187_v45, %v2614_v38 }
 0x2a5   : > { %v2615_v59 = vsel %vm5933_vm9, %v2613_v6, %v2614_v38  ;;  %v2760_v58 = vsub.f32 %v2184_v29, %v2612_v16  ;;  %vm5934_vm2 = vmmov %vm5932_vm14  ;;  %v2825_v37 = vmul.f32 1.25, %v2761_v42  ;;  %vm1260_vm1 = vcmp.ne.s32.totalorder %v1194_v36, 0  ;;  %v5941_v36 = vld [vmem:[#allocation15_spill] sm:$0xff] }
 0x2a6   : > { %v1197_v2 = vsel %vm5934_vm2, %v1195_v27, %v1196_v28  ;;  %vm1325_vm0 = vmand %vm973_vm13, %vm1261_vm3  ;;  %v2762_v12 = vsub.f32 %v2186_v46, %v2615_v59  ;;  %v2827_v62 = vmul.f32 1.25, %v2763_v49  ;;  %vm1263_vm15 = vcmp.ne.s32.totalorder %v1196_v28, 0  ;;  %v5942_v59 = vld [vmem:[#allocation16_spill] sm:$0xff] }
 0x2a7   : > { %vm1262_vm8 = vcmp.ne.s32.totalorder %v1197_v2, 0  ;;  %v2824_v39 = vmul.f32 1.25, %v2760_v58  ;;  %vm1324_vm10 = vmand %vm972_vm11, %vm1260_vm1  ;;  %v3783_v60 = vsel %vm1325_vm0, 1.0, %v5747_v4  ;;  %v5351_v32 = vrot.slane %v691_v53, %v4133_v13 }
 0x2a8   : > { %v2826_v33 = vmul.f32 1.25, %v2762_v12  ;;  %v2995_v18 = vrot.slane %v2825_v37, 5  ;;  %vm975_vm13 = vcmp.ge.f32.partialorder %v5315_v55, 0.0  ;;  %vm1326_vm7 = vmand %vm974_vm4, %vm1262_vm8  ;;  %v5358_v5 = vsub.f32 %v5203_v61, %v4136_v19  ;;  %v5944_v12 = vld [vmem:[#allocation17_spill] sm:$0xff] }
 0x2a9   : > { %v2994_v51 = vrot.slane %v2824_v39, 5  ;;  %v2998_v10 = vrot.slane %v2827_v62, 5  ;;  %vm1327_vm11 = vmand %vm975_vm13, %vm1263_vm15  ;;  %v3782_v21 = vsel %vm1324_vm10, 1.0, %v5747_v4  ;;  %v2878_v35 = vmul.f32 %v2824_v39, %v5908_v44 }
 0x2aa   : > { %v2997_v13 = vrot.slane %v2826_v33, 5  ;;  %v3784_v53 = vsel %vm1326_vm7, 1.0, %v5747_v4  ;;  %v1517_v14 = vmul.f32 %v3783_v60, %v5284_v54  ;;  %v2879_v48 = vmul.f32 %v2826_v33, %v5911_v43 }
 0x2ab   : > { %vm5935_vm12 = vcmask 1042432   ;;  %v3144_v3 = vmul.f32 %v2994_v51, %v5908_v44  ;;  %v3785_v30 = vsel %vm1327_vm11, 1.0, %v5747_v4  ;;  %v1672_v40 = vrot.slane %v3782_v21, 7 }
 0x2ac   : > { %v2996_v8 = vsel %vm5935_vm12, %v2994_v51, %v2995_v18  ;;  %vm5936_vm4 = vmmov %vm5935_vm12  ;;  %v3146_v45 = vmul.f32 %v2997_v13, %v5911_v43  ;;  %v1673_v26 = vrot.slane %v3783_v60, 7  ;;  %v1675_v9 = vrot.slane %v3784_v53, 7  ;;  %v5946_v60 = vld [vmem:[#allocation18_spill] sm:$0xff] }
 0x2ad   : > { %v2999_v29 = vsel %vm5936_vm4, %v2997_v13, %v2998_v10  ;;  %v3145_v7 = vmul.f32 %v2996_v8, %v5909_v1  ;;  %v3282_v15 = vrot.slane %v3144_v3, 4  ;;  %v1676_v34 = vrot.slane %v3785_v30, 7 }
 0x2ae   : > { %v3147_v56 = vmul.f32 %v2999_v29, %v5912_v63  ;;  %v3285_v23 = vrot.slane %v3146_v45, 4  ;;  %v1804_v17 = vmul.f32 %v1672_v40, %v5275_v0  ;;  %v1516_v47 = vmul.f32 %v3782_v21, %v5275_v0 }
 0x2af   : > { %v3283_v25 = vrot.slane %v3145_v7, 4  ;;  %vm5937_vm6 = vcmask 1040384   ;;  %v1806_v1 = vmul.f32 %v1675_v9, %v5311_v50  ;;  %vm5938_vm5 = vcmask 1043456  }
 0x2b0   : > { %v3286_v44 = vrot.slane %v3147_v56, 4  ;;  %v1674_v24 = vsel %vm5937_vm6, %v1672_v40, %v1673_v26  ;;  %vm5939_vm14 = vmmov %vm5937_vm6  ;;  %v1960_v11 = vrot.slane %v1804_v17, 2  ;;  %v1518_v38 = vmul.f32 %v3784_v53, %v5311_v50 }
 0x2b1   : > { %v3284_v43 = vsel %vm5938_vm5, %v3282_v15, %v3283_v25  ;;  %v1677_v41 = vsel %vm5939_vm14, %v1675_v9, %v1676_v34  ;;  %v1805_v63 = vmul.f32 %v1674_v24, %v5284_v54  ;;  %vm5940_vm3 = vmmov %vm5938_vm5  ;;  %v1963_v20 = vrot.slane %v1806_v1, 2 }
 0x2b2   : > { %v3287_v57 = vsel %vm5940_vm3, %v3285_v23, %v3286_v44  ;;  %v3390_v6 = vsub.f32 %v2878_v35, %v3284_v43  ;;  %v1807_v52 = vmul.f32 %v1677_v41, %v5315_v55  ;;  %v1519_v27 = vmul.f32 %v3785_v30, %v5315_v55 }
 0x2b3   : > { %v3391_v46 = vsub.f32 %v2879_v48, %v3287_v57  ;;  %v1961_v28 = vrot.slane %v1805_v63, 2  ;;  %vm1004_vm9 = vcmp.lt.f32.partialorder %v5941_v36, 0.0  ;;  %vm1005_vm2 = vcmp.lt.f32.partialorder %v5942_v59, 0.0 }
 0x2b4   : > { %v3422_v16 = vmul.f32 0.8333333, %v3390_v6  ;;  %v1964_v42 = vrot.slane %v1807_v52, 2  ;;  %vm5943_vm0 = vcmask 1045504   ;;  %vm1006_vm1 = vcmp.lt.f32.partialorder %v5944_v12, 0.0 }
 0x2b5   : > { %v3423_v58 = vmul.f32 0.8333333, %v3391_v46  ;;  %v1962_v49 = vsel %vm5943_vm0, %v1960_v11, %v1961_v28  ;;  %v2093_v2 = vsub.f32 %v1517_v14, %v1961_v28  ;;  %vm5945_vm8 = vmmov %vm5943_vm0  ;;  %vm940_vm15 = vcmp.ge.f32.partialorder %v5941_v36, 0.0 }
 0x2b6   : > { %v1965_v37 = vsel %vm5945_vm8, %v1963_v20, %v1964_v42  ;;  %v2092_v39 = vsub.f32 %v1516_v47, %v1962_v49  ;;  %v2095_v62 = vsub.f32 %v1519_v27, %v1964_v42  ;;  %vm1007_vm10 = vcmp.lt.f32.partialorder %v5946_v60, 0.0 }
 0x2b7   : > { %v3891_v33 = vpack.c.bf16 %v3423_v58, %v3422_v16  ;;  %v2094_v18 = vsub.f32 %v1518_v38, %v1965_v37  ;;  %v2157_v51 = vmul.f32 2.5, %v2093_v2  ;;  %vm941_vm13 = vcmp.ge.f32.partialorder %v5942_v59, 0.0 }
 0x2b8   : > { %v2156_v10 = vmul.f32 2.5, %v2092_v39  ;;  %v2159_v21 = vmul.f32 2.5, %v2095_v62  ;;  %vm942_vm7 = vcmp.ge.f32.partialorder %v5944_v12, 0.0  ;;  %v1068_v35 = vsel %vm1004_vm9, 1, %v5770_v31 }
 0x2b9   : > { %v1069_v13 = vsel %vm1005_vm2, 1, %v5770_v31  ;;  %3892 = vmatpush3.bf16.msra.mxu1 %v3891_v33  ;;  %v2158_v53 = vmul.f32 2.5, %v2094_v18  ;;  %v2377_v14 = vrot.slane %v2157_v51, 6  ;;  %v1070_v48 = vsel %vm1006_vm1, 1, %v5770_v31 }
 0x2ba   : > { %v1071_v8 = vsel %vm1007_vm10, 1, %v5770_v31  ;;  %v2221_v3 = vmul.f32 %v2157_v51, %v5284_v54  ;;  %v2376_v30 = vrot.slane %v2156_v10, 6  ;;  %v2380_v29 = vrot.slane %v2159_v21, 6 }
 0x2bb   : > { %vm943_vm11 = vcmp.ge.f32.partialorder %v5946_v60, 0.0  ;;  %v2220_v7 = vmul.f32 %v2156_v10, %v5275_v0  ;;  %v2379_v45 = vrot.slane %v2158_v53, 6  ;;  %v1144_v40 = vrot.slane %v1068_v35, 1 }
 0x2bc   : > { %v1145_v56 = vrot.slane %v1069_v13, 1  ;;  %vm5947_vm12 = vcmask 1041408   ;;  %v2508_v26 = vmul.f32 %v2376_v30, %v5275_v0  ;;  %v1147_v9 = vrot.slane %v1070_v48, 1 }
 0x2bd   : > { %v2378_v15 = vsel %vm5947_vm12, %v2376_v30, %v2377_v14  ;;  %v1148_v25 = vrot.slane %v1071_v8, 1  ;;  %vm5948_vm4 = vmmov %vm5947_vm12  ;;  %v2510_v17 = vmul.f32 %v2379_v45, %v5311_v50  ;;  %vm5949_vm6 = vcmask 1046528  }
 0x2be   : > { %v2381_v23 = vsel %vm5948_vm4, %v2379_v45, %v2380_v29  ;;  %v2509_v34 = vmul.f32 %v2378_v15, %v5284_v54  ;;  %v1146_v44 = vsel %vm5949_vm6, %v1144_v40, %v1145_v56  ;;  %v2664_v24 = vrot.slane %v2508_v26, 3  ;;  %vm5950_vm5 = vmmov %vm5949_vm6 }
 0x2bf   : > { %v2511_v47 = vmul.f32 %v2381_v23, %v5315_v55  ;;  %v1149_v1 = vsel %vm5950_vm5, %v1147_v9, %v1148_v25  ;;  %vm1228_vm14 = vcmp.ne.s32.totalorder %v1146_v44, 0  ;;  %v2667_v41 = vrot.slane %v2510_v17, 3 }
 0x2c0   : > { %v2665_v43 = vrot.slane %v2509_v34, 3  ;;  %vm1229_vm3 = vcmp.ne.s32.totalorder %v1145_v56, 0  ;;  %vm1230_vm9 = vcmp.ne.s32.totalorder %v1149_v1, 0  ;;  %vm1292_vm2 = vmand %vm940_vm15, %vm1228_vm14  ;;  %v2223_v63 = vmul.f32 %v2159_v21, %v5315_v55 }
 0x2c1   : > { %v2668_v11 = vrot.slane %v2511_v47, 3  ;;  %vm1231_vm0 = vcmp.ne.s32.totalorder %v1148_v25, 0  ;;  %vm1293_vm1 = vmand %vm941_vm13, %vm1229_vm3  ;;  %v3750_v57 = vsel %vm1292_vm2, 1.0, %v5747_v4  ;;  %v2222_v6 = vmul.f32 %v2158_v53, %v5311_v50 }
 0x2c2   : > { %vm5951_vm8 = vcmask 1044480   ;;  %v2797_v20 = vsub.f32 %v2221_v3, %v2665_v43  ;;  %vm1294_vm10 = vmand %vm942_vm7, %vm1230_vm9  ;;  %v3751_v46 = vsel %vm1293_vm1, 1.0, %v5747_v4  ;;  %v5426_v38 = vsub.f32 %v5203_v61, %v4140_v22 }
 0x2c3   : > { %v2666_v52 = vsel %vm5951_vm8, %v2664_v24, %v2665_v43  ;;  %vm5952_vm15 = vmmov %vm5951_vm8  ;;  %v2799_v16 = vsub.f32 %v2223_v63, %v2668_v11  ;;  %v3752_v49 = vsel %vm1294_vm10, 1.0, %v5747_v4  ;;  %v1484_v2 = vmul.f32 %v3750_v57, %v5941_v36 }
 0x2c4   : > { %v2669_v27 = vsel %vm5952_vm15, %v2667_v41, %v2668_v11  ;;  %v2796_v28 = vsub.f32 %v2220_v7, %v2666_v52  ;;  %vm1295_vm13 = vmand %vm943_vm11, %vm1231_vm0  ;;  %v2861_v58 = vmul.f32 1.25, %v2797_v20  ;;  %v1485_v61 = vmul.f32 %v3751_v46, %v5942_v59 }
 0x2c5   : > { %v2798_v42 = vsub.f32 %v2222_v6, %v2669_v27  ;;  %v2863_v39 = vmul.f32 1.25, %v2799_v16  ;;  %v3753_v62 = vsel %vm1295_vm13, 1.0, %v5747_v4  ;;  %v1624_v51 = vrot.slane %v3750_v57, 7 }
 0x2c6   : > { %v2860_v37 = vmul.f32 1.25, %v2796_v28  ;;  %v3049_v18 = vrot.slane %v2861_v58, 5  ;;  %v1625_v10 = vrot.slane %v3751_v46, 7  ;;  %v1486_v13 = vmul.f32 %v3752_v49, %v5944_v12 }
 0x2c7   : > { %v2862_v33 = vmul.f32 1.25, %v2798_v42  ;;  %v3052_v35 = vrot.slane %v2863_v39, 5  ;;  %v1627_v53 = vrot.slane %v3752_v49, 7  ;;  %v1487_v48 = vmul.f32 %v3753_v62, %v5946_v60 }
 0x2c8   : > { %v3048_v21 = vrot.slane %v2860_v37, 5  ;;  %vm5953_vm7 = vcmask 1040384   ;;  %v1628_v3 = vrot.slane %v3753_v62, 7  ;;  %vm5954_vm11 = vcmask 1042432  }
 0x2c9   : > { %v3051_v14 = vrot.slane %v2862_v33, 5  ;;  %v1626_v8 = vsel %vm5953_vm7, %v1624_v51, %v1625_v10  ;;  %v1772_v7 = vmul.f32 %v1624_v51, %v5941_v36  ;;  %vm5955_vm12 = vmmov %vm5954_vm11  ;;  %v1774_v23 = vmul.f32 %v1627_v53, %v5944_v12 }
 0x2ca   : > { %v3050_v30 = vsel %vm5954_vm11, %v3048_v21, %v3049_v18  ;;  %v3180_v29 = vmul.f32 %v3048_v21, %v5275_v0  ;;  %v1773_v45 = vmul.f32 %v1626_v8, %v5942_v59  ;;  %vm5956_vm4 = vmmov %vm5953_vm7  ;;  %v2896_v1 = vmul.f32 %v2860_v37, %v5275_v0 }
 0x2cb   : > { %v3053_v40 = vsel %vm5955_vm12, %v3051_v14, %v3052_v35  ;;  %v3181_v56 = vmul.f32 %v3050_v30, %v5284_v54  ;;  %v3182_v15 = vmul.f32 %v3051_v14, %v5311_v50  ;;  %v1629_v26 = vsel %vm5956_vm4, %v1627_v53, %v1628_v3 }
 0x2cc   : > { %v3183_v9 = vmul.f32 %v3053_v40, %v5315_v55  ;;  %v3336_v25 = vrot.slane %v3180_v29, 4  ;;  %v1775_v34 = vmul.f32 %v1629_v26, %v5946_v60  ;;  %v1912_v47 = vrot.slane %v1772_v7, 2 }
 0x2cd   : > { %v3337_v17 = vrot.slane %v3181_v56, 4  ;;  %v3339_v44 = vrot.slane %v3182_v15, 4  ;;  %v1913_v24 = vrot.slane %v1773_v45, 2  ;;  %v1915_v41 = vrot.slane %v1774_v23, 2 }
 0x2ce   : > { %v3340_v43 = vrot.slane %v3183_v9, 4  ;;  %v1916_v54 = vrot.slane %v1775_v34, 2  ;;  %v2897_v63 = vmul.f32 %v2862_v33, %v5311_v50  ;;  %vm5957_vm6 = vcmask 1043456  }
 0x2cf   : > { %v3338_v11 = vsel %vm5957_vm6, %v3336_v25, %v3337_v17  ;;  %vm5958_vm5 = vcmask 1045504   ;;  %v2061_v57 = vsub.f32 %v1485_v61, %v1913_v24  ;;  %vm5959_vm14 = vmmov %vm5957_vm6  ;;  %v5457_v42 = vsub.f32 %v5351_v32, %v4136_v19 }
 0x2d0   : > { %v1914_v55 = vsel %vm5958_vm5, %v1912_v47, %v1913_v24  ;;  %v3341_v6 = vsel %vm5959_vm14, %v3339_v44, %v3340_v43  ;;  %v3408_v52 = vsub.f32 %v2896_v1, %v3338_v11  ;;  %vm5960_vm3 = vmmov %vm5958_vm5  ;;  %v2063_v16 = vsub.f32 %v1487_v48, %v1916_v54 }
 0x2d1   : > { %v1917_v20 = vsel %vm5960_vm3, %v1915_v41, %v1916_v54  ;;  %v2060_v46 = vsub.f32 %v1484_v2, %v1914_v55  ;;  %v3409_v27 = vsub.f32 %v2897_v63, %v3341_v6  ;;  %v2125_v0 = vmul.f32 2.5, %v2061_v57  ;;  %v5967_v55 = vld [vmem:[#allocation9_spill] sm:$0xff] }
 0x2d2   : > { %v2062_v28 = vsub.f32 %v1486_v13, %v1917_v20  ;;  %v5461_v50 = vsub.f32 %v5351_v32, %v4140_v22  ;;  %v3440_v58 = vmul.f32 0.8333333, %v3408_v52  ;;  %v2127_v62 = vmul.f32 2.5, %v2063_v16 }
 0x2d3   : > { %v2124_v49 = vmul.f32 2.5, %v2060_v46  ;;  %v3441_v37 = vmul.f32 0.8333333, %v3409_v27  ;;  %vm1040_vm9 = vcmp.lt.f32.partialorder %v5358_v5, 0.0  ;;  %v2189_v61 = vmul.f32 %v2125_v0, %v5942_v59 }
 0x2d4   : > { %v2126_v39 = vmul.f32 2.5, %v2062_v28  ;;  %v2329_v18 = vrot.slane %v2125_v0, 6  ;;  %vm977_vm2 = vcmp.ge.f32.partialorder %v5426_v38, 0.0  ;;  %vm976_vm0 = vcmp.ge.f32.partialorder %v5358_v5, 0.0 }
 0x2d5   : > { %v2188_v2 = vmul.f32 %v2124_v49, %v5941_v36  ;;  %v2328_v33 = vrot.slane %v2124_v49, 6  ;;  %v3893_v51 = vpack.c.bf16 %v3441_v37, %v3440_v58  ;;  %vm1041_vm1 = vcmp.lt.f32.partialorder %v5426_v38, 0.0 }
 0x2d6   : > { %v2190_v10 = vmul.f32 %v2126_v39, %v5944_v12  ;;  %v2331_v32 = vrot.slane %v2126_v39, 6  ;;  %vm5961_vm8 = vcmask 1041408   ;;  %v2332_v35 = vrot.slane %v2127_v62, 6 }
 0x2d7   : > { %v2330_v21 = vsel %vm5961_vm8, %v2328_v33, %v2329_v18  ;;  %v2476_v13 = vmul.f32 %v2328_v33, %v5941_v36  ;;  %vm978_vm10 = vcmp.ge.f32.partialorder %v5457_v42, 0.0  ;;  %vm1042_vm15 = vcmp.lt.f32.partialorder %v5457_v42, 0.0  ;;  %3894 = vmatprep.subr.bf16.mxu1 %v3893_v51  ;;  %vm5962_vm7 = vmmov %vm5961_vm8 }
 0x2d8   : > { %v2477_v53 = vmul.f32 %v2330_v21, %v5942_v59  ;;  %v2478_v14 = vmul.f32 %v2331_v32, %v5944_v12  ;;  %vm1043_vm13 = vcmp.lt.f32.partialorder %v5461_v50, 0.0  ;;  %v1104_v48 = vsel %vm1040_vm9, 1, %v5770_v31 }
 0x2d9   : > { %v2333_v8 = vsel %vm5962_vm7, %v2331_v32, %v2332_v35  ;;  %v2616_v3 = vrot.slane %v2476_v13, 3  ;;  %v1105_v30 = vsel %vm1041_vm1, 1, %v5770_v31  ;;  %v1106_v29 = vsel %vm1042_vm15, 1, %v5770_v31 }
 0x2da   : > { %v2479_v7 = vmul.f32 %v2333_v8, %v5946_v60  ;;  %v2617_v45 = vrot.slane %v2477_v53, 3  ;;  %v2619_v40 = vrot.slane %v2478_v14, 3  ;;  %v1107_v56 = vsel %vm1043_vm13, 1, %v5770_v31 }
 0x2db   : > { %v1198_v15 = vrot.slane %v1104_v48, 1  ;;  %v1199_v26 = vrot.slane %v1105_v30, 1  ;;  %v1201_v9 = vrot.slane %v1106_v29, 1  ;;  %v1202_v25 = vrot.slane %v1107_v56, 1 }
 0x2dc   : > { %v2191_v23 = vmul.f32 %v2127_v62, %v5946_v60  ;;  %vm5963_vm11 = vcmask 1044480   ;;  %v2620_v17 = vrot.slane %v2479_v7, 3  ;;  %v2765_v44 = vsub.f32 %v2189_v61, %v2617_v45 }
 0x2dd   : > { %v2618_v34 = vsel %vm5963_vm11, %v2616_v3, %v2617_v45  ;;  %vm5964_vm12 = vcmask 1046528   ;;  %vm1265_vm6 = vcmp.ne.s32.totalorder %v1199_v26, 0  ;;  %vm5966_vm5 = vmmov %vm5963_vm11  ;;  %vm1267_vm1 = vcmp.ne.s32.totalorder %v1202_v25, 0 }
 0x2de   : > { %v2764_v47 = vsub.f32 %v2188_v2, %v2618_v34  ;;  %v1200_v24 = vsel %vm5964_vm12, %v1198_v15, %v1199_v26  ;;  %vm5965_vm4 = vmmov %vm5964_vm12  ;;  %v2621_v43 = vsel %vm5966_vm5, %v2619_v40, %v2620_v17  ;;  %v2767_v41 = vsub.f32 %v2191_v23, %v2620_v17 }
 0x2df   : > { %v1203_v1 = vsel %vm5965_vm4, %v1201_v9, %v1202_v25  ;;  %v2829_v54 = vmul.f32 1.25, %v2765_v44  ;;  %vm1264_vm14 = vcmp.ne.s32.totalorder %v1200_v24, 0  ;;  %vm1329_vm3 = vmand %vm977_vm2, %vm1265_vm6  ;;  %v2766_v63 = vsub.f32 %v2190_v10, %v2621_v43  ;;  %v5976_v24 = vld [vmem:[#allocation20_spill] sm:$0xff] }
 0x2e0   : > { %v2828_v11 = vmul.f32 1.25, %v2764_v47  ;;  %vm1266_vm9 = vcmp.ne.s32.totalorder %v1203_v1, 0  ;;  %vm1328_vm8 = vmand %vm976_vm0, %vm1264_vm14  ;;  %v5496_v57 = vsub.f32 %v5967_v55, %v4136_v19  ;;  %v2831_v6 = vmul.f32 1.25, %v2767_v41  ;;  %v5975_v47 = vld [vmem:[#allocation19_spill] sm:$0xff] }
 0x2e1   : > { %v3001_v52 = vrot.slane %v2829_v54, 5  ;;  %vm979_vm15 = vcmp.ge.f32.partialorder %v5461_v50, 0.0  ;;  %vm1330_vm13 = vmand %vm978_vm10, %vm1266_vm9  ;;  %v2830_v20 = vmul.f32 1.25, %v2766_v63  ;;  %v3786_v27 = vsel %vm1328_vm8, 1.0, %v5747_v4 }
 0x2e2   : > { %v3000_v46 = vrot.slane %v2828_v11, 5  ;;  %vm1331_vm2 = vmand %vm979_vm15, %vm1267_vm1  ;;  %v3787_v28 = vsel %vm1329_vm3, 1.0, %v5747_v4  ;;  %v5505_v16 = vsub.f32 %v5967_v55, %v4140_v22  ;;  %v2880_v19 = vmul.f32 %v2828_v11, %v5941_v36 }
 0x2e3   : > { %v3004_v0 = vrot.slane %v2831_v6, 5  ;;  %v3788_v58 = vsel %vm1330_vm13, 1.0, %v5747_v4  ;;  %vm5968_vm0 = vcmask 1042432   ;;  %v3003_v37 = vrot.slane %v2830_v20, 5 }
 0x2e4   : > { %v3002_v49 = vsel %vm5968_vm0, %v3000_v46, %v3001_v52  ;;  %v3148_v39 = vmul.f32 %v3000_v46, %v5941_v36  ;;  %v3789_v62 = vsel %vm1331_vm2, 1.0, %v5747_v4  ;;  %v1520_v61 = vmul.f32 %v3786_v27, %v5358_v5  ;;  %vm5969_vm10 = vmmov %vm5968_vm0 }
 0x2e5   : > { %v3149_v2 = vmul.f32 %v3002_v49, %v5942_v59  ;;  %v1521_v33 = vmul.f32 %v3787_v28, %v5426_v38  ;;  %v1678_v22 = vrot.slane %v3786_v27, 7  ;;  %v3005_v18 = vsel %vm5969_vm10, %v3003_v37, %v3004_v0 }
 0x2e6   : > { %v3150_v51 = vmul.f32 %v3003_v37, %v5944_v12  ;;  %v3288_v10 = vrot.slane %v3148_v39, 4  ;;  %v1679_v32 = vrot.slane %v3787_v28, 7  ;;  %v3151_v21 = vmul.f32 %v3005_v18, %v5946_v60 }
 0x2e7   : > { %v3289_v35 = vrot.slane %v3149_v2, 4  ;;  %v1681_v13 = vrot.slane %v3788_v58, 7  ;;  %v1682_v36 = vrot.slane %v3789_v62, 7  ;;  %v2881_v53 = vmul.f32 %v2830_v20, %v5944_v12 }
 0x2e8   : > { %v3291_v14 = vrot.slane %v3150_v51, 4  ;;  %vm5970_vm7 = vcmask 1040384   ;;  %v1808_v48 = vmul.f32 %v1678_v22, %v5358_v5  ;;  %vm5971_vm11 = vcmask 1043456  }
 0x2e9   : > { %v1680_v59 = vsel %vm5970_vm7, %v1678_v22, %v1679_v32  ;;  %v3290_v8 = vsel %vm5971_vm11, %v3288_v10, %v3289_v35  ;;  %v3292_v3 = vrot.slane %v3151_v21, 4  ;;  %vm5972_vm12 = vmmov %vm5970_vm7  ;;  %v1810_v60 = vmul.f32 %v1681_v13, %v5457_v42 }
 0x2ea   : > { %v1683_v30 = vsel %vm5972_vm12, %v1681_v13, %v1682_v36  ;;  %v1809_v29 = vmul.f32 %v1680_v59, %v5426_v38  ;;  %v3392_v7 = vsub.f32 %v2880_v19, %v3290_v8  ;;  %v1966_v40 = vrot.slane %v1808_v48, 2  ;;  %vm5973_vm4 = vmmov %vm5971_vm11  ;;  %v5563_v48 = vld [vmem:[%s5687_s2] sm:$0x3f] }
 0x2eb   : > { %v1811_v45 = vmul.f32 %v1683_v30, %v5461_v50  ;;  %v3293_v12 = vsel %vm5973_vm4, %v3291_v14, %v3292_v3  ;;  %v1522_v56 = vmul.f32 %v3788_v58, %v5457_v42  ;;  %v1523_v15 = vmul.f32 %v3789_v62, %v5461_v50 }
 0x2ec   : > { %v1967_v26 = vrot.slane %v1809_v29, 2  ;;  %v3393_v9 = vsub.f32 %v2881_v53, %v3293_v12  ;;  %v3424_v25 = vmul.f32 0.8333333, %v3392_v7  ;;  %v1969_v23 = vrot.slane %v1810_v60, 2 }
 0x2ed   : > { %v1970_v34 = vrot.slane %v1811_v45, 2  ;;  %vm5974_vm6 = vcmask 1045504   ;;  %vm1008_vm5 = vcmp.lt.f32.partialorder %v5975_v47, 0.0  ;;  %vm1009_vm14 = vcmp.lt.f32.partialorder %v5976_v24, 0.0 }
 0x2ee   : > { %v1968_v17 = vsel %vm5974_vm6, %v1966_v40, %v1967_v26  ;;  %v2097_v44 = vsub.f32 %v1521_v33, %v1967_v26  ;;  %v3425_v1 = vmul.f32 0.8333333, %v3393_v9  ;;  %vm5977_vm3 = vmmov %vm5974_vm6  ;;  %vm944_vm9 = vcmp.ge.f32.partialorder %v5975_v47, 0.0 }
 0x2ef   : > { %v1971_v43 = vsel %vm5977_vm3, %v1969_v23, %v1970_v34  ;;  %v2096_v41 = vsub.f32 %v1520_v61, %v1968_v17  ;;  %v2099_v54 = vsub.f32 %v1523_v15, %v1970_v34  ;;  %vm1010_vm1 = vcmp.lt.f32.partialorder %v5496_v57, 0.0 }
 0x2f0   : > { %v2098_v63 = vsub.f32 %v1522_v56, %v1971_v43  ;;  %v2161_v11 = vmul.f32 2.5, %v2097_v44  ;;  %vm1011_vm8 = vcmp.lt.f32.partialorder %v5505_v16, 0.0  ;;  %v3895_v55 = vpack.c.bf16 %v3425_v1, %v3424_v25 }
 0x2f1   : > { %v2160_v6 = vmul.f32 2.5, %v2096_v41  ;;  %v2163_v52 = vmul.f32 2.5, %v2099_v54  ;;  %vm945_vm15 = vcmp.ge.f32.partialorder %v5976_v24, 0.0  ;;  %v1072_v20 = vsel %vm1008_vm5, 1, %v5770_v31 }
 0x2f2   : > { %v2162_v46 = vmul.f32 2.5, %v2098_v63  ;;  %v2225_v27 = vmul.f32 %v2161_v11, %v5426_v38  ;;  %v2383_v28 = vrot.slane %v2161_v11, 6  ;;  %vm946_vm13 = vcmp.ge.f32.partialorder %v5496_v57, 0.0  ;;  %3896 = vmatpush3.bf16.msra.mxu1 %v3895_v55 }
 0x2f3   : > { %v1073_v19 = vsel %vm1009_vm14, 1, %v5770_v31  ;;  %v2224_v0 = vmul.f32 %v2160_v6, %v5358_v5  ;;  %v2227_v58 = vmul.f32 %v2163_v52, %v5461_v50  ;;  %v2382_v49 = vrot.slane %v2160_v6, 6 }
 0x2f4   : > { %v2386_v37 = vrot.slane %v2163_v52, 6  ;;  %vm947_vm2 = vcmp.ge.f32.partialorder %v5505_v16, 0.0  ;;  %v2226_v39 = vmul.f32 %v2162_v46, %v5457_v42  ;;  %v2385_v62 = vrot.slane %v2162_v46, 6 }
 0x2f5   : > { %v1074_v2 = vsel %vm1010_vm1, 1, %v5770_v31  ;;  %v1075_v61 = vsel %vm1011_vm8, 1, %v5770_v31  ;;  %vm5978_vm0 = vcmask 1041408   ;;  %v2512_v22 = vmul.f32 %v2382_v49, %v5358_v5 }
 0x2f6   : > { %v2384_v33 = vsel %vm5978_vm0, %v2382_v49, %v2383_v28  ;;  %v1150_v18 = vrot.slane %v1072_v20, 1  ;;  %v1151_v51 = vrot.slane %v1073_v19, 1  ;;  %vm5979_vm10 = vmmov %vm5978_vm0  ;;  %v2514_v21 = vmul.f32 %v2385_v62, %v5457_v42 }
 0x2f7   : > { %v2387_v10 = vsel %vm5979_vm10, %v2385_v62, %v2386_v37  ;;  %v2513_v32 = vmul.f32 %v2384_v33, %v5426_v38  ;;  %v1153_v35 = vrot.slane %v1074_v2, 1  ;;  %v2670_v36 = vrot.slane %v2512_v22, 3 }
 0x2f8   : > { %v2515_v13 = vmul.f32 %v2387_v10, %v5461_v50  ;;  %vm5980_vm7 = vcmask 1046528   ;;  %v1154_v14 = vrot.slane %v1075_v61, 1  ;;  %v2673_v59 = vrot.slane %v2514_v21, 3 }
 0x2f9   : > { %v1152_v53 = vsel %vm5980_vm7, %v1150_v18, %v1151_v51  ;;  %v2671_v31 = vrot.slane %v2513_v32, 3  ;;  %vm1233_vm12 = vcmp.ne.s32.totalorder %v1151_v51, 0  ;;  %vm5981_vm4 = vmmov %vm5980_vm7  ;;  %v3474_v29 = vcombine.high %v5563_v48, %v5563_v48 }
 0x2fa   : > { %vm1232_vm11 = vcmp.ne.s32.totalorder %v1152_v53, 0  ;;  %v2674_v8 = vrot.slane %v2515_v13, 3  ;;  %v1155_v3 = vsel %vm5981_vm4, %v1153_v35, %v1154_v14  ;;  %vm5566_vm6 = vcmp.ne.s32.totalorder %v1154_v14, 0  ;;  %vm1297_vm1 = vmand %vm945_vm15, %vm1233_vm12 }
 0x2fb   : > { %vm1296_vm5 = vmand %vm944_vm9, %vm1232_vm11  ;;  %vm5984_vm14 = vcmask 1044480   ;;  %v2801_v60 = vsub.f32 %v2225_v27, %v2671_v31  ;;  %vm1234_vm3 = vcmp.ne.s32.totalorder %v1155_v3, 0  ;;  %v3755_v15 = vsel %vm1297_vm1, 1.0, %v5747_v4 }
 0x2fc   : > { %v2672_v7 = vsel %vm5984_vm14, %v2670_v36, %v2671_v31  ;;  %v3754_v45 = vsel %vm1296_vm5, 1.0, %v5747_v4  ;;  %vm5985_vm8 = vmmov %vm5984_vm14  ;;  %v2803_v56 = vsub.f32 %v2227_v58, %v2674_v8  ;;  %v1489_v1 = vmul.f32 %v3755_v15, %v5976_v24 }
 0x2fd   : > { %v2675_v40 = vsel %vm5985_vm8, %v2673_v59, %v2674_v8  ;;  %v2800_v12 = vsub.f32 %v2224_v0, %v2672_v7  ;;  %vm1298_vm0 = vmand %vm946_vm13, %vm1234_vm3  ;;  %v2865_v9 = vmul.f32 1.25, %v2801_v60  ;;  %v1488_v23 = vmul.f32 %v3754_v45, %v5975_v47 }
 0x2fe   : > { %v2802_v26 = vsub.f32 %v2226_v39, %v2675_v40  ;;  %vm1299_vm9 = vmand %vm947_vm2, %vm5566_vm6  ;;  %v3756_v25 = vsel %vm1298_vm0, 1.0, %v5747_v4  ;;  %v2867_v17 = vmul.f32 1.25, %v2803_v56  ;;  %v1630_v52 = vrot.slane %v3754_v45, 7 }
 0x2ff   : > { %v2864_v34 = vmul.f32 1.25, %v2800_v12  ;;  %v3757_v44 = vsel %vm1299_vm9, 1.0, %v5747_v4  ;;  %v3055_v41 = vrot.slane %v2865_v9, 5  ;;  %v1490_v54 = vmul.f32 %v3756_v25, %v5496_v57  ;;  %vm5997_vm1 = vmmov %vm5985_vm8 }
 0x300   : > { %v2866_v43 = vmul.f32 1.25, %v2802_v26  ;;  %v1491_v63 = vmul.f32 %v3757_v44, %v5505_v16  ;;  %v3058_v6 = vrot.slane %v2867_v17, 5  ;;  %v1631_v27 = vrot.slane %v3755_v15, 7  ;;  %v5994_v17 = vld [vmem:[#allocation5_spill] sm:$0xff]  ;;  %vm5998_vm8 = vmmov %vm5997_vm1 }
 0x301   : > { %v2898_v11 = vmul.f32 %v2864_v34, %v5358_v5  ;;  %v3054_v55 = vrot.slane %v2864_v34, 5  ;;  %v1633_v28 = vrot.slane %v3756_v25, 7  ;;  %vm5986_vm15 = vcmask 1042432  }
 0x302   : > { %v2899_v20 = vmul.f32 %v2866_v43, %v5457_v42  ;;  %v3057_v46 = vrot.slane %v2866_v43, 5  ;;  %v1634_v58 = vrot.slane %v3757_v44, 7  ;;  %v1776_v49 = vmul.f32 %v1630_v52, %v5975_v47  ;;  %vm5987_vm13 = vmmov %vm5986_vm15 }
 0x303   : > { %v3056_v19 = vsel %vm5986_vm15, %v3054_v55, %v3055_v41  ;;  %v3184_v0 = vmul.f32 %v3054_v55, %v5358_v5  ;;  %vm5988_vm2 = vcmask 1040384   ;;  %v1778_v10 = vmul.f32 %v1633_v28, %v5496_v57  ;;  %vm5999_vm0 = vmmov %vm5987_vm13 }
 0x304   : > { %v3059_v37 = vsel %vm5987_vm13, %v3057_v46, %v3058_v6  ;;  %v3185_v39 = vmul.f32 %v3056_v19, %v5426_v38  ;;  %v3186_v62 = vmul.f32 %v3057_v46, %v5457_v42  ;;  %v1632_v2 = vsel %vm5988_vm2, %v1630_v52, %v1631_v27  ;;  %vm5989_vm10 = vmmov %vm5988_vm2 }
 0x305   : > { %v3187_v61 = vmul.f32 %v3059_v37, %v5461_v50  ;;  %v3342_v33 = vrot.slane %v3184_v0, 4  ;;  %v1635_v22 = vsel %vm5989_vm10, %v1633_v28, %v1634_v58  ;;  %v1777_v18 = vmul.f32 %v1632_v2, %v5976_v24  ;;  %vm6000_vm9 = vmmov %vm5999_vm0 }
 0x306   : > { %v3343_v51 = vrot.slane %v3185_v39, 4  ;;  %v3345_v5 = vrot.slane %v3186_v62, 4  ;;  %v1779_v32 = vmul.f32 %v1635_v22, %v5505_v16  ;;  %v1918_v35 = vrot.slane %v1776_v49, 2 }
 0x307   : > { %v3346_v21 = vrot.slane %v3187_v61, 4  ;;  %v1919_v38 = vrot.slane %v1777_v18, 2  ;;  %vm5990_vm7 = vcmask 1043456   ;;  %v1921_v13 = vrot.slane %v1778_v10, 2 }
 0x308   : > { %v3344_v42 = vsel %vm5990_vm7, %v3342_v33, %v3343_v51  ;;  %v1922_v36 = vrot.slane %v1779_v32, 2  ;;  %v4041_v53 = vmov 1983009808   ;;  %vm5991_vm11 = vmmov %vm5990_vm7  ;;  %vm5992_vm12 = vcmask 1045504  }
 0x309   : > { %v3476_v50 = vunpack.c.l.s4 %v4041_v53  ;;  %v3347_v14 = vsel %vm5991_vm11, %v3345_v5, %v3346_v21  ;;  %v3410_v31 = vsub.f32 %v2898_v11, %v3344_v42  ;;  %v1920_v59 = vsel %vm5992_vm12, %v1918_v35, %v1919_v38  ;;  %vm5993_vm4 = vmmov %vm5992_vm12 }
 0x30a   : > { %v2065_v8 = vsub.f32 %v1489_v1, %v1919_v38  ;;  %v3411_v3 = vsub.f32 %v2899_v20, %v3347_v14  ;;  %v1923_v30 = vsel %vm5993_vm4, %v1921_v13, %v1922_v36  ;;  %v2064_v7 = vsub.f32 %v1488_v23, %v1920_v59  ;;  %vm6001_vm15 = vmmov %vm5990_vm7 }
 0x30b   : > { %v2067_v60 = vsub.f32 %v1491_v63, %v1922_v36  ;;  %v3442_v45 = vmul.f32 0.8333333, %v3410_v31  ;;  %v2066_v40 = vsub.f32 %v1490_v54, %v1923_v30  ;;  %v3477_v56 = vunpack.c.0.s8 %v3476_v50  ;;  %vm6002_vm13 = vmmov %vm5990_vm7 }
 0x30c   : > { %v2129_v12 = vmul.f32 2.5, %v2065_v8  ;;  %v3443_v15 = vmul.f32 0.8333333, %v3411_v3  ;;  %v2128_v26 = vmul.f32 2.5, %v2064_v7  ;;  %vm4042_vm6 = vmmov 0  }
 0x30d   : > { %v2131_v9 = vmul.f32 2.5, %v2067_v60  ;;  %v2130_v25 = vmul.f32 2.5, %v2066_v40  ;;  %v3480_v44 = vsub.s32 %v3477_v56, %v5994_v17  ;;  %3862 = vmatprep.mubr.msk.f32.mxu0 %vm4042_vm6, %v5747_v4  ;;  %vm5995_vm5 = vcmask 1041408  }
 0x30e   : > { %v2335_v34 = vrot.slane %v2129_v12, 6  ;;  %v3897_v1 = vpack.c.bf16 %v3443_v15, %v3442_v45  ;;  %v2334_v43 = vrot.slane %v2128_v26, 6  ;;  %vm3492_vm14 = vcmask 261120   ;;  %vm5996_vm3 = vmmov %vm5995_vm5 }
 0x30f   : > { %v2337_v41 = vrot.slane %v2130_v25, 6  ;;  %v2338_v11 = vrot.slane %v2131_v9, 6  ;;  %v3481_v23 = vrot.slane %v5563_v48, %v3480_v44  ;;  %v3488_v55 = vrot.slane %v3474_v29, %v3480_v44 }
 0x310   : > { %3898 = vmatprep.subr.bf16.mxu1 %v3897_v1  ;;  %v2336_v54 = vsel %vm5995_vm5, %v2334_v43, %v2335_v34  ;;  %v2480_v63 = vmul.f32 %v2334_v43, %v5975_v47  ;;  %v2193_v28 = vmul.f32 %v2129_v12, %v5976_v24  ;;  %v2192_v48 = vmul.f32 %v2128_v26, %v5975_v47 }
 0x311   : > { %v2339_v6 = vsel %vm5996_vm3, %v2337_v41, %v2338_v11  ;;  %v2481_v4 = vmul.f32 %v2336_v54, %v5976_v24  ;;  %v2482_v52 = vmul.f32 %v2337_v41, %v5496_v57  ;;  %v3489_v20 = vcombine.high %v3481_v23, %v3481_v23  ;;  %3863 = vmatmul.mubr.msk.f32.vlgmr.msra.gmra.mrb[4].mxu0 %vm3492_vm14, %v3488_v55 }
 0x312   : > { %v2483_v46 = vmul.f32 %v2339_v6, %v5505_v16  ;;  %v2622_v27 = vrot.slane %v2480_v63, 3  ;;  %v2195_v29 = vmul.f32 %v2131_v9, %v5505_v16  ;;  %v2194_v49 = vmul.f32 %v2130_v25, %v5496_v57 }
 0x313   : > { %v2623_v19 = vrot.slane %v2481_v4, 3  ;;  %v2625_v0 = vrot.slane %v2482_v52, 3  ;;  %3559 = vmatprep.mubr.f32.mxu1 %v3489_v20 }
 0x314   : > { %v2626_v58 = vrot.slane %v2483_v46, 3 }
 0x315   : > { %v2624_v37 = vsel %vm5997_vm1, %v2622_v27, %v2623_v19  ;;  %v2769_v39 = vsub.f32 %v2193_v28, %v2623_v19 }
 0x316   : > { %v2627_v62 = vsel %vm5998_vm8, %v2625_v0, %v2626_v58  ;;  %v2768_v2 = vsub.f32 %v2192_v48, %v2624_v37  ;;  %v2771_v61 = vsub.f32 %v2195_v29, %v2626_v58 }
 0x317   : > { %v2770_v33 = vsub.f32 %v2194_v49, %v2627_v62  ;;  %v2833_v22 = vmul.f32 1.25, %v2769_v39 }
 0x318   : > { %v2832_v18 = vmul.f32 1.25, %v2768_v2  ;;  %v2835_v51 = vmul.f32 1.25, %v2771_v61 }
 0x319   : > { %v2834_v5 = vmul.f32 1.25, %v2770_v33  ;;  %v3007_v10 = vrot.slane %v2833_v22, 5 }
 0x31a   : > { %v3006_v32 = vrot.slane %v2832_v18, 5  ;;  %v3010_v21 = vrot.slane %v2835_v51, 5  ;;  %v2882_v8 = vmul.f32 %v2832_v18, %v5975_v47 }
 0x31b   : > { %v3009_v35 = vrot.slane %v2834_v5, 5  ;;  %v2883_v30 = vmul.f32 %v2834_v5, %v5496_v57 }
 0x31c   : > { %v3008_v38 = vsel %vm5999_vm0, %v3006_v32, %v3007_v10  ;;  %v3152_v42 = vmul.f32 %v3006_v32, %v5975_v47 }
 0x31d   : > { %v3011_v13 = vsel %vm6000_vm9, %v3009_v35, %v3010_v21  ;;  %v3153_v36 = vmul.f32 %v3008_v38, %v5976_v24  ;;  %v3154_v53 = vmul.f32 %v3009_v35, %v5496_v57 }
 0x31e   : > { %v3155_v50 = vmul.f32 %v3011_v13, %v5505_v16  ;;  %v3294_v14 = vrot.slane %v3152_v42, 4 }
 0x31f   : > { %v3295_v31 = vrot.slane %v3153_v36, 4  ;;  %v3297_v59 = vrot.slane %v3154_v53, 4 }
 0x320   : > { %v3298_v3 = vrot.slane %v3155_v50, 4 }
 0x321   : > { %v3296_v7 = vsel %vm6001_vm15, %v3294_v14, %v3295_v31 }
 0x322   : > { %v3299_v60 = vsel %vm6002_vm13, %v3297_v59, %v3298_v3  ;;  %v3394_v45 = vsub.f32 %v2882_v8, %v3296_v7 }
 0x323   : > { %v3395_v24 = vsub.f32 %v2883_v30, %v3299_v60 }
 0x324   : > { %v3426_v40 = vmul.f32 0.8333333, %v3394_v45 }
 0x325   : > { %v3427_v12 = vmul.f32 0.8333333, %v3395_v24 }
 0x327   : > { %v3899_v56 = vpack.c.bf16 %v3427_v12, %v3426_v40 }
 0x329   : > { %3900 = vmatpush3.bf16.msra.mxu1 %v3899_v56 }
 0x32c   : > { %3560 = vmatmul.mubr.f32.vlgmr.msra.gmra.mrb[0].mxu1 %v3481_v23 }
 0x3e4   : > { %v3631_v16 = vpop.f32.mrb[4].mxu0 }
 0x3e5   : > { %v3864_v15 = vpop.f32.mrb[5].mxu0 }
 0x3ff   : > { %v3834_v47 = vpop.f32.mrb[0].mxu1 }
 0x400   : > { %v3835_v26 = vpop.f32.mrb[1].mxu1 }
 0x401   : > { %v3836_v57 = vadd.f32 %v3835_v26, %v3834_v47 }
 0x403   : > { %v3632_v9 = vadd.f32 %v3836_v57, %v3631_v16 }
 0x405   : > { %3635 = vst [vmem:[%s161_s24] sm:$0x3] %v3632_v9 }
 0x406   : > { %3986 = shalt.err (!%p3983_p3)
}
 0x407   : > { %s3987_s6 = scalar_lea.hbm %s5643_s28, 32  ;;  %s3991_s9 = scalar_lea.hbm %s5688_s3, 64 }
 0x408   : > { %p3988_p4 = scmp.ne.s32.totalorder %s5643_s28, %s3987_s6  ;;  %p3992_p9 = scmp.lt.u32.totalorder %s5643_s28, %s5688_s3 }
 0x409   : > { %p3993_p10 = scmp.lt.u32.totalorder %s3991_s9, %s3987_s6  ;;  %p3995_p12 = scmp.lt.u32.totalorder %s3987_s6, %s5643_s28 }
 0x40a   : > { %p3989_p7 = pnand %p3988_p4, %p4102_p5 }
 0x40b   : > { %p3994_p11 = por %p3993_p10, %p3992_p9 }
 0x40c   : > { %p3990_p8 = pneg %p3989_p7 }
 0x40d   : > { %p3996_p13 = por %p3995_p12, %p3994_p11 }
 0x40f   : > { %p3997_p0 = pnand %p3996_p13, %p3990_p8 }
 0x411   : > { %4000 = shalt.err (!%p3997_p0)
}
 0x412   : > { %3907 = dma.vmem_to_hbm [thread:$0]  (%p4102_p5), %s5645_s25, 32, %s5643_s28, %s3637_s29  }
 0x413 PF: > { %p3913_p1 = scmp.ge.s32.totalorder %s4035_s15, 2  ;;  %s3662_s17 = sand.u32 1, %s4023_s12  }
 0x414   : > { %s3663_s19 = scalar_lea.sflag [#allocation3], %s3662_s17 }
 0x415   : > { %p3910_p2 = pnand %p3913_p1, %p4106_p6 }
 0x417   : > { %4018 = dma.done.wait (!%p3910_p2), %s3663_s19, 32  }
 0x418   : > { %4020 = vsyncadd (!%p3910_p2), %s3663_s19, 4294967264  ;;  %p13_p3 = scmp.ge.s32.totalorder %s4089_s18, 4   ;;  %s6003_s12 = smov %s4027_s13 }
 0x419   : > { %s6004_s13 = smov %s4031_s14  ;;  %s6005_s14 = smov %s4100_s21 }
 0x41a   : > { %s6006_s15 = smov %s4089_s18  ;;  %15 = sbr.rel (!%p13_p3) target bundleno = 3 (0x3), region = 67 }
 0x421   :  { %3668 = vsyncpa [#allocation3], 1 }
 0x422   :  { %3670 = vsyncpa [#allocation3 + $0x1], 1 }

</bundles_post_ra>
